<compile_context>
chip_gen: v7x
topology: tpu7x:2x2x1
jax: 0.10.0
libtpu: 0.0.40
codegen_flags: <defaults>
</compile_context>

<pallas_src>
import jax
import jax.numpy as jnp
from jax.experimental import pallas as pl
from jax.experimental.pallas import tpu as pltpu

# ---------------- config (small, consistent with the module) ----------------
DIM = 32
DEPTH = 2
DIM_HEAD = 8
HEADS = 4
NUM_LATENTS = 8
NUM_MEDIA_EMBEDS = 4
FF_MULT = 4

INNER = DIM_HEAD * HEADS          # 32
FF_INNER = DIM * FF_MULT          # 128
SCALE = DIM_HEAD ** (-0.5)
LN_EPS = 1e-5
NEG_INF = -1e30                   # additive mask value for cross-batch scores

BATCH = 2
SEQ = 16


# ---------------- in-kernel math helpers ----------------
def _layernorm(v, w, b):
    # torch.nn.LayerNorm: biased variance, eps=1e-5, affine.
    mu = jnp.mean(v, axis=-1, keepdims=True)
    var = jnp.mean((v - mu) ** 2, axis=-1, keepdims=True)
    return (v - mu) * jax.lax.rsqrt(var + LN_EPS) * w + b


def _erf_poly(x):
    # Abramowitz & Stegun 7.1.26 rational approximation, |err| < 1.5e-7.
    a1, a2, a3, a4, a5 = 0.254829592, -0.284496736, 1.421413741, -1.453152027, 1.061405429
    p = 0.3275911
    sgn = jnp.where(x >= 0.0, 1.0, -1.0)
    ax = jnp.abs(x)
    t = 1.0 / (1.0 + p * ax)
    poly = ((((a5 * t + a4) * t + a3) * t + a2) * t + a1) * t
    return sgn * (1.0 - poly * jnp.exp(-ax * ax))


def _gelu_exact(x):
    # nn.GELU() default == exact erf GELU.
    return 0.5 * x * (1.0 + _erf_poly(x * 0.7071067811865476))


# ---------------- fused Pallas kernel ----------------
def _make_fused_kernel(bt, nl, depth, heads, dim):
    """Build the fused forward kernel for static (bt, nl, depth, heads, dim)."""

    def kernel(x_ref, pos_ref, lat0_ref, maskx_ref, maskl_ref,
               nm_w_ref, nm_b_ref, nl_w_ref, nl_b_ref,
               m_ref, p_ref, fw_ref, fb_ref, w1_ref, w2_ref,
               onw_ref, onb_ref, out_ref):
        f32 = jnp.float32
        # media positional embedding added in-kernel (T == 1 -> one row, sublane-broadcast)
        x = x_ref[...] + pos_ref[...]                       # (bt*n, dim)
        lat = lat0_ref[...]                                 # (bt*nl, dim), pre-tiled host-side
        mask_x = maskx_ref[...]                             # (bt*nl, bt*n) block-diagonal
        mask_l = maskl_ref[...]                             # (bt*nl, bt*nl) block-diagonal

        # TODO(synk): switch to lax.fori_loop over the stacked weight refs if DEPTH grows past ~4.
        for l in range(depth):                              # static layer loop (DEPTH == 2)
            # ---------- PerceiverAttention (+ residual) ----------
            xn = _layernorm(x, nm_w_ref[l], nm_b_ref[l])     # (bt*n, dim)
            latn = _layernorm(lat, nl_w_ref[l], nl_b_ref[l])  # (bt*nl, dim)

            upd = jnp.zeros((bt * nl, dim), f32)
            for h in range(heads):                           # static head loop; all mats (dim, dim)
                mh = m_ref[l, h]                             # scale * Wq_h @ Wk_h^T
                ph = p_ref[l, h]                             # Wv_h @ Wo_h
                tmp = jnp.dot(latn, mh, preferred_element_type=f32)       # (bt*nl, dim)
                # scores vs media tokens and vs latents == scores vs concat(x, latents);
                # cross-batch entries are killed by the additive -1e30 mask.
                sim_x = jnp.einsum('id,jd->ij', tmp, xn,
                                   preferred_element_type=f32) + mask_x   # (bt*nl, bt*n)
                sim_l = jnp.einsum('id,jd->ij', tmp, latn,
                                   preferred_element_type=f32) + mask_l   # (bt*nl, bt*nl)
                m = jnp.maximum(jnp.max(sim_x, axis=-1, keepdims=True),
                                jnp.max(sim_l, axis=-1, keepdims=True))
                px = jnp.exp(sim_x - m)
                pt = jnp.exp(sim_l - m)
                inv = pl.reciprocal(jnp.sum(px, axis=-1, keepdims=True)
                                    + jnp.sum(pt, axis=-1, keepdims=True),
                                    approx=True)             # EUP, ~2^-12 rel err
                vx = jnp.dot(xn, ph, preferred_element_type=f32)          # (bt*n, dim)
                vl = jnp.dot(latn, ph, preferred_element_type=f32)        # (bt*nl, dim)
                upd = upd + (jnp.dot(px, vx, preferred_element_type=f32)
                             + jnp.dot(pt, vl, preferred_element_type=f32)) * inv
            lat = upd + lat                                  # residual

            # ---------- FeedForward (+ residual), BT-batched rows ----------
            ffn = _layernorm(lat, fw_ref[l], fb_ref[l])
            h1 = _gelu_exact(jnp.dot(ffn, w1_ref[l], preferred_element_type=f32))
            lat = jnp.dot(h1, w2_ref[l], preferred_element_type=f32) + lat

        out_ref[...] = _layernorm(lat, onw_ref[...], onb_ref[...])

    return kernel


# ---------------- host-side param staging (run ONCE at init time) ----------------
def stage_params(params, batch, seq, times=1):
    """Stack / fold all per-layer weights and build static masks & tiled latents."""
    bt = batch * times
    att = [l["attn"] for l in params["layers"]]
    ffs = [l["ff"] for l in params["layers"]]
    depth = len(att)

    def stack(key, group):
        return jnp.stack([g[key] for g in group], axis=0)

    wq = stack("wq", att)                         # (depth, D, INNER)
    wkv = stack("wkv", att)                       # (depth, D, 2*INNER)
    wk, wv = wkv[..., :INNER], wkv[..., INNER:]
    wo = stack("wo", att)                         # (depth, INNER, D)

    def split_heads(w):                           # (depth, D, INNER) -> (depth, H, D, DH)
        return w.reshape(depth, DIM, HEADS, DIM_HEAD).transpose(0, 2, 1, 3)

    wq_h, wk_h, wv_h = split_heads(wq), split_heads(wk), split_heads(wv)
    wo_h = wo.reshape(depth, HEADS, DIM_HEAD, DIM)            # (depth, H, DH, D)

    # fold scale + head structure into per-head (D, D) matrices
    m_mat = SCALE * jnp.einsum('lhde,lhfe->lhdf', wq_h, wk_h)  # scale*Wq_h@Wk_h^T
    p_mat = jnp.einsum('lhde,lhef->lhdf', wv_h, wo_h)          # Wv_h@Wo_h

    # block-diagonal (batch-local) additive attention masks
    q_batch = jnp.repeat(jnp.arange(bt), NUM_LATENTS)          # (bt*nl,)
    k_batch = jnp.repeat(jnp.arange(bt), seq)                  # (bt*n,)
    mask_x = jnp.where(q_batch[:, None] == k_batch[None, :], 0.0, NEG_INF).astype(jnp.float32)
    mask_l = jnp.where(q_batch[:, None] == q_batch[None, :], 0.0, NEG_INF).astype(jnp.float32)

    return dict(
        pos=params["media_pos_emb"][0],                        # (1, D) row for the single time step
        lat0=jnp.tile(params["latents"], (bt, 1)),             # (bt*nl, D)
        mask_x=mask_x, mask_l=mask_l,
        nm_w=stack("nm_w", att), nm_b=stack("nm_b", att),      # (depth, 1, D)
        nl_w=stack("nl_w", att), nl_b=stack("nl_b", att),
        m_mat=m_mat, p_mat=p_mat,                              # (depth, H, D, D)
        f_w=stack("ln_w", ffs), f_b=stack("ln_b", ffs),
        w1=stack("w1", ffs), w2=stack("w2", ffs),
        onw=params["final_ln_w"], onb=params["final_ln_b"],
    )


@jax.jit
def perceiver_resampler(staged, x):
    """3-D input path of PerceiverResampler.forward: x is (B, N, D), T == 1."""
    # TODO(synk): multi-time path (x.ndim == 4, times > 1) would add time rows to the
    # flattened batch axis and per-time positional rows; not needed for this spec.
    B, N, D = x.shape
    bt = B  # times == 1

    kernel = _make_fused_kernel(bt, NUM_LATENTS, DEPTH, HEADS, D)
    vmem = pl.BlockSpec(memory_space=pltpu.MemorySpace.VMEM)
    out_flat = pl.pallas_call(
        kernel,
        out_shape=jax.ShapeDtypeStruct((bt * NUM_LATENTS, D), jnp.float32),
        in_specs=[vmem] * 17,
        out_specs=vmem,
    )(
        x.reshape(bt * N, D), staged["pos"], staged["lat0"],
        staged["mask_x"], staged["mask_l"],
        staged["nm_w"], staged["nm_b"], staged["nl_w"], staged["nl_b"],
        staged["m_mat"], staged["p_mat"],
        staged["f_w"], staged["f_b"], staged["w1"], staged["w2"],
        staged["onw"], staged["onb"],
    )
    return out_flat.reshape(B, 1, NUM_LATENTS, D)[:, 0]        # squeeze(1)


# ---------------- parameter init (deterministic, synthetic) ----------------
def init_params(key):
    keys = jax.random.split(key, 2 + DEPTH)
    params = {
        "latents": jax.random.normal(keys[0], (NUM_LATENTS, DIM), jnp.float32),
        "media_pos_emb": jax.random.normal(keys[1], (NUM_MEDIA_EMBEDS, 1, DIM), jnp.float32),
        "final_ln_w": jnp.ones((1, DIM), jnp.float32),
        "final_ln_b": jnp.zeros((1, DIM), jnp.float32),
        "layers": [],
    }
    for d in range(DEPTH):
        lk = jax.random.split(keys[2 + d], 5)
        params["layers"].append({
            "attn": {
                "nm_w": jnp.ones((1, DIM), jnp.float32),
                "nm_b": jnp.zeros((1, DIM), jnp.float32),
                "nl_w": jnp.ones((1, DIM), jnp.float32),
                "nl_b": jnp.zeros((1, DIM), jnp.float32),
                "wq": 0.05 * jax.random.normal(lk[0], (DIM, INNER), jnp.float32),
                "wkv": 0.05 * jax.random.normal(lk[1], (DIM, 2 * INNER), jnp.float32),
                "wo": 0.05 * jax.random.normal(lk[2], (INNER, DIM), jnp.float32),
            },
            "ff": {
                "ln_w": jnp.ones((1, DIM), jnp.float32),
                "ln_b": jnp.zeros((1, DIM), jnp.float32),
                "w1": 0.05 * jax.random.normal(lk[3], (DIM, FF_INNER), jnp.float32),
                "w2": 0.05 * jax.random.normal(lk[4], (FF_INNER, DIM), jnp.float32),
            },
        })
    return params


# ---------------- pure-JAX reference for validation ----------------
def reference(params, x):
    B, N, D = x.shape
    x4 = x[:, None] + params["media_pos_emb"][:1]
    lat = jnp.broadcast_to(params["latents"], (B, 1, NUM_LATENTS, D))

    def ln(v, w, b):
        mu = v.mean(-1, keepdims=True)
        var = ((v - mu) ** 2).mean(-1, keepdims=True)
        return (v - mu) / jnp.sqrt(var + LN_EPS) * w[0] + b[0]

    def split_heads(t):  # (B,1,n,INNER) -> (B,H,1,n,DH)
        return t.reshape(B, 1, -1, HEADS, DIM_HEAD).transpose(0, 3, 1, 2, 4)

    for layer in params["layers"]:
        a = layer["attn"]
        xn = ln(x4, a["nm_w"], a["nm_b"])
        latn = ln(lat, a["nl_w"], a["nl_b"])
        q = latn @ a["wq"]
        kv = jnp.concatenate([xn, latn], axis=-2) @ a["wkv"]
        k, v = kv[..., :INNER], kv[..., INNER:]
        q, k, v = split_heads(q) * SCALE, split_heads(k), split_heads(v)
        sim = jnp.einsum('bhtid,bhtjd->bhtij', q, k)
        sim = sim - sim.max(-1, keepdims=True)
        attn = jax.nn.softmax(sim, axis=-1)
        o = jnp.einsum('bhtij,bhtjd->bhtid', attn, v)
        o = o.transpose(0, 2, 3, 1, 4).reshape(B, 1, NUM_LATENTS, INNER)
        lat = o @ a["wo"] + lat

        f = layer["ff"]
        h = ln(lat, f["ln_w"], f["ln_b"]) @ f["w1"]
        h = jax.nn.gelu(h, approximate=False)
        lat = h @ f["w2"] + lat

    return ln(lat, params["final_ln_w"], params["final_ln_b"])[:, 0]


if __name__ == "__main__":
    key = jax.random.PRNGKey(0)
    pkey, xkey = jax.random.split(key)
    params = init_params(pkey)
    staged = jax.tree_util.tree_map(jax.block_until_ready,
                                    stage_params(params, BATCH, SEQ))  # one-time staging
    x = jax.random.normal(xkey, (BATCH, SEQ, DIM), jnp.float32)

    out = jax.block_until_ready(perceiver_resampler(staged, x))
    ref = jax.block_until_ready(reference(params, x))

    assert out.shape == (BATCH, NUM_LATENTS, DIM), out.shape
    err = float(jnp.max(jnp.abs(out - ref)))
    assert jnp.allclose(out, ref, atol=2e-3, rtol=2e-3), err

    print("KERNEL_OK")
</pallas_src>

<mosaic_0001>
module attributes {stable_mosaic.version = 11 : i64} {
  func.func @kernel(%arg0: memref<32x32xf32, #tpu.memory_space<vmem>>, %arg1: memref<1x32xf32, #tpu.memory_space<vmem>>, %arg2: memref<16x32xf32, #tpu.memory_space<vmem>>, %arg3: memref<16x32xf32, #tpu.memory_space<vmem>>, %arg4: memref<16x16xf32, #tpu.memory_space<vmem>>, %arg5: memref<2x1x32xf32, #tpu.memory_space<vmem>>, %arg6: memref<2x1x32xf32, #tpu.memory_space<vmem>>, %arg7: memref<2x1x32xf32, #tpu.memory_space<vmem>>, %arg8: memref<2x1x32xf32, #tpu.memory_space<vmem>>, %arg9: memref<2x4x32x32xf32, #tpu.memory_space<vmem>>, %arg10: memref<2x4x32x32xf32, #tpu.memory_space<vmem>>, %arg11: memref<2x1x32xf32, #tpu.memory_space<vmem>>, %arg12: memref<2x1x32xf32, #tpu.memory_space<vmem>>, %arg13: memref<2x32x128xf32, #tpu.memory_space<vmem>>, %arg14: memref<2x128x32xf32, #tpu.memory_space<vmem>>, %arg15: memref<1x32xf32, #tpu.memory_space<vmem>>, %arg16: memref<1x32xf32, #tpu.memory_space<vmem>>, %arg17: memref<16x32xf32, #tpu.memory_space<vmem>>) attributes {dimension_semantics = [], scalar_prefetch = 0 : i64, scratch_operands = 0 : i64, tpu.core_type = #tpu.core_type<tc>} {
    %c0 = arith.constant 0 : index
    %c0_0 = arith.constant 0 : index
    %0 = vector.load %arg0[%c0, %c0_0] : memref<32x32xf32, #tpu.memory_space<vmem>>, vector<32x32xf32>
    %c0_1 = arith.constant 0 : index
    %c0_2 = arith.constant 0 : index
    %1 = vector.load %arg1[%c0_1, %c0_2] : memref<1x32xf32, #tpu.memory_space<vmem>>, vector<1x32xf32>
    %2 = vector.broadcast %1 : vector<1x32xf32> to vector<32x32xf32>
    %3 = arith.addf %0, %2 : vector<32x32xf32>
    %c0_3 = arith.constant 0 : index
    %c0_4 = arith.constant 0 : index
    %4 = vector.load %arg2[%c0_3, %c0_4] : memref<16x32xf32, #tpu.memory_space<vmem>>, vector<16x32xf32>
    %c0_5 = arith.constant 0 : index
    %c0_6 = arith.constant 0 : index
    %5 = vector.load %arg3[%c0_5, %c0_6] : memref<16x32xf32, #tpu.memory_space<vmem>>, vector<16x32xf32>
    %c0_7 = arith.constant 0 : index
    %c0_8 = arith.constant 0 : index
    %6 = vector.load %arg4[%c0_7, %c0_8] : memref<16x16xf32, #tpu.memory_space<vmem>>, vector<16x16xf32>
    %c0_9 = arith.constant 0 : index
    %c0_10 = arith.constant 0 : index
    %c0_11 = arith.constant 0 : index
    %7 = vector.load %arg5[%c0_9, %c0_10, %c0_11] : memref<2x1x32xf32, #tpu.memory_space<vmem>>, vector<1x1x32xf32>
    %8 = vector.shape_cast %7 : vector<1x1x32xf32> to vector<1x32xf32>
    %c0_12 = arith.constant 0 : index
    %c0_13 = arith.constant 0 : index
    %c0_14 = arith.constant 0 : index
    %9 = vector.load %arg6[%c0_12, %c0_13, %c0_14] : memref<2x1x32xf32, #tpu.memory_space<vmem>>, vector<1x1x32xf32>
    %10 = vector.shape_cast %9 : vector<1x1x32xf32> to vector<1x32xf32>
    %cst = arith.constant dense<0.000000e+00> : vector<32xf32>
    %11 = vector.multi_reduction <add>, %3, %cst [1] : vector<32x32xf32> to vector<32xf32>
    %12 = vector.shape_cast %11 : vector<32xf32> to vector<32x1xf32>
    %cst_15 = arith.constant 3.200000e+01 : f32
    %13 = vector.broadcast %cst_15 : f32 to vector<32x1xf32>
    %14 = arith.divf %12, %13 : vector<32x1xf32>
    %15 = vector.broadcast %14 : vector<32x1xf32> to vector<32x32xf32>
    %16 = arith.subf %3, %15 : vector<32x32xf32>
    %17 = arith.mulf %16, %16 : vector<32x32xf32>
    %cst_16 = arith.constant dense<0.000000e+00> : vector<32xf32>
    %18 = vector.multi_reduction <add>, %17, %cst_16 [1] : vector<32x32xf32> to vector<32xf32>
    %19 = vector.shape_cast %18 : vector<32xf32> to vector<32x1xf32>
    %cst_17 = arith.constant 3.200000e+01 : f32
    %20 = vector.broadcast %cst_17 : f32 to vector<32x1xf32>
    %21 = arith.divf %19, %20 : vector<32x1xf32>
    %22 = vector.broadcast %14 : vector<32x1xf32> to vector<32x32xf32>
    %23 = arith.subf %3, %22 : vector<32x32xf32>
    %cst_18 = arith.constant 9.99999974E-6 : f32
    %24 = vector.broadcast %cst_18 : f32 to vector<32x1xf32>
    %25 = arith.addf %21, %24 : vector<32x1xf32>
    %26 = math.rsqrt %25 : vector<32x1xf32>
    %27 = vector.broadcast %26 : vector<32x1xf32> to vector<32x32xf32>
    %28 = arith.mulf %23, %27 : vector<32x32xf32>
    %29 = vector.broadcast %8 : vector<1x32xf32> to vector<32x32xf32>
    %30 = arith.mulf %28, %29 : vector<32x32xf32>
    %31 = vector.broadcast %10 : vector<1x32xf32> to vector<32x32xf32>
    %32 = arith.addf %30, %31 : vector<32x32xf32>
    %c0_19 = arith.constant 0 : index
    %c0_20 = arith.constant 0 : index
    %c0_21 = arith.constant 0 : index
    %33 = vector.load %arg7[%c0_19, %c0_20, %c0_21] : memref<2x1x32xf32, #tpu.memory_space<vmem>>, vector<1x1x32xf32>
    %34 = vector.shape_cast %33 : vector<1x1x32xf32> to vector<1x32xf32>
    %c0_22 = arith.constant 0 : index
    %c0_23 = arith.constant 0 : index
    %c0_24 = arith.constant 0 : index
    %35 = vector.load %arg8[%c0_22, %c0_23, %c0_24] : memref<2x1x32xf32, #tpu.memory_space<vmem>>, vector<1x1x32xf32>
    %36 = vector.shape_cast %35 : vector<1x1x32xf32> to vector<1x32xf32>
    %cst_25 = arith.constant dense<0.000000e+00> : vector<16xf32>
    %37 = vector.multi_reduction <add>, %4, %cst_25 [1] : vector<16x32xf32> to vector<16xf32>
    %38 = vector.shape_cast %37 : vector<16xf32> to vector<16x1xf32>
    %cst_26 = arith.constant 3.200000e+01 : f32
    %39 = vector.broadcast %cst_26 : f32 to vector<16x1xf32>
    %40 = arith.divf %38, %39 : vector<16x1xf32>
    %41 = vector.broadcast %40 : vector<16x1xf32> to vector<16x32xf32>
    %42 = arith.subf %4, %41 : vector<16x32xf32>
    %43 = arith.mulf %42, %42 : vector<16x32xf32>
    %cst_27 = arith.constant dense<0.000000e+00> : vector<16xf32>
    %44 = vector.multi_reduction <add>, %43, %cst_27 [1] : vector<16x32xf32> to vector<16xf32>
    %45 = vector.shape_cast %44 : vector<16xf32> to vector<16x1xf32>
    %cst_28 = arith.constant 3.200000e+01 : f32
    %46 = vector.broadcast %cst_28 : f32 to vector<16x1xf32>
    %47 = arith.divf %45, %46 : vector<16x1xf32>
    %48 = vector.broadcast %40 : vector<16x1xf32> to vector<16x32xf32>
    %49 = arith.subf %4, %48 : vector<16x32xf32>
    %cst_29 = arith.constant 9.99999974E-6 : f32
    %50 = vector.broadcast %cst_29 : f32 to vector<16x1xf32>
    %51 = arith.addf %47, %50 : vector<16x1xf32>
    %52 = math.rsqrt %51 : vector<16x1xf32>
    %53 = vector.broadcast %52 : vector<16x1xf32> to vector<16x32xf32>
    %54 = arith.mulf %49, %53 : vector<16x32xf32>
    %55 = vector.broadcast %34 : vector<1x32xf32> to vector<16x32xf32>
    %56 = arith.mulf %54, %55 : vector<16x32xf32>
    %57 = vector.broadcast %36 : vector<1x32xf32> to vector<16x32xf32>
    %58 = arith.addf %56, %57 : vector<16x32xf32>
    %cst_30 = arith.constant 0.000000e+00 : f32
    %59 = vector.broadcast %cst_30 : f32 to vector<16x32xf32>
    %c0_31 = arith.constant 0 : index
    %c0_32 = arith.constant 0 : index
    %c0_33 = arith.constant 0 : index
    %c0_34 = arith.constant 0 : index
    %60 = vector.load %arg9[%c0_31, %c0_32, %c0_33, %c0_34] : memref<2x4x32x32xf32, #tpu.memory_space<vmem>>, vector<1x1x32x32xf32>
    %61 = vector.shape_cast %60 : vector<1x1x32x32xf32> to vector<32x32xf32>
    %c0_35 = arith.constant 0 : index
    %c0_36 = arith.constant 0 : index
    %c0_37 = arith.constant 0 : index
    %c0_38 = arith.constant 0 : index
    %62 = vector.load %arg10[%c0_35, %c0_36, %c0_37, %c0_38] : memref<2x4x32x32xf32, #tpu.memory_space<vmem>>, vector<1x1x32x32xf32>
    %63 = vector.shape_cast %62 : vector<1x1x32x32xf32> to vector<32x32xf32>
    %cst_39 = arith.constant dense<0.000000e+00> : vector<16x32xf32>
    %64 = tpu.matmul %58, %61, %cst_39 {dimension_numbers = #tpu.dot_dimension_numbers<[1], [0], [0], [1], [0, 0, 1, 1], [], []>} : vector<16x32xf32>, vector<32x32xf32>, vector<16x32xf32> -> vector<16x32xf32>
    "tpu.trace_start"() <{level = 10 : i32, message = "id,jd->ij"}> : () -> ()
    %cst_40 = arith.constant dense<0.000000e+00> : vector<16x32xf32>
    %65 = tpu.matmul %64, %32, %cst_40 {dimension_numbers = #tpu.dot_dimension_numbers<[1], [1], [0], [0], [0, 0, 1, 0], [], []>} : vector<16x32xf32>, vector<32x32xf32>, vector<16x32xf32> -> vector<16x32xf32>
    "tpu.trace_stop"() : () -> ()
    %66 = arith.addf %65, %5 : vector<16x32xf32>
    "tpu.trace_start"() <{level = 10 : i32, message = "id,jd->ij"}> : () -> ()
    %cst_41 = arith.constant dense<0.000000e+00> : vector<16x16xf32>
    %67 = tpu.matmul %64, %58, %cst_41 {dimension_numbers = #tpu.dot_dimension_numbers<[1], [1], [0], [0], [0, 0, 1, 0], [], []>} : vector<16x32xf32>, vector<16x32xf32>, vector<16x16xf32> -> vector<16x16xf32>
    "tpu.trace_stop"() : () -> ()
    %68 = arith.addf %67, %6 : vector<16x16xf32>
    %cst_42 = arith.constant dense<0xFF800000> : vector<16xf32>
    %69 = vector.multi_reduction <maximumf>, %66, %cst_42 [1] : vector<16x32xf32> to vector<16xf32>
    %70 = vector.shape_cast %69 : vector<16xf32> to vector<16x1xf32>
    %cst_43 = arith.constant dense<0xFF800000> : vector<16xf32>
    %71 = vector.multi_reduction <maximumf>, %68, %cst_43 [1] : vector<16x16xf32> to vector<16xf32>
    %72 = vector.shape_cast %71 : vector<16xf32> to vector<16x1xf32>
    %73 = arith.maximumf %70, %72 : vector<16x1xf32>
    %74 = vector.broadcast %73 : vector<16x1xf32> to vector<16x32xf32>
    %75 = arith.subf %66, %74 : vector<16x32xf32>
    %76 = math.exp %75 : vector<16x32xf32>
    %77 = vector.broadcast %73 : vector<16x1xf32> to vector<16x16xf32>
    %78 = arith.subf %68, %77 : vector<16x16xf32>
    %79 = math.exp %78 : vector<16x16xf32>
    %cst_44 = arith.constant dense<0.000000e+00> : vector<16xf32>
    %80 = vector.multi_reduction <add>, %76, %cst_44 [1] : vector<16x32xf32> to vector<16xf32>
    %81 = vector.shape_cast %80 : vector<16xf32> to vector<16x1xf32>
    %cst_45 = arith.constant dense<0.000000e+00> : vector<16xf32>
    %82 = vector.multi_reduction <add>, %79, %cst_45 [1] : vector<16x16xf32> to vector<16xf32>
    %83 = vector.shape_cast %82 : vector<16xf32> to vector<16x1xf32>
    %84 = arith.addf %81, %83 : vector<16x1xf32>
    %85 = tpu.reciprocal %84 {approx = true} : vector<16x1xf32> -> vector<16x1xf32>
    %cst_46 = arith.constant dense<0.000000e+00> : vector<32x32xf32>
    %86 = tpu.matmul %32, %63, %cst_46 {dimension_numbers = #tpu.dot_dimension_numbers<[1], [0], [0], [1], [0, 0, 1, 1], [], []>} : vector<32x32xf32>, vector<32x32xf32>, vector<32x32xf32> -> vector<32x32xf32>
    %cst_47 = arith.constant dense<0.000000e+00> : vector<16x32xf32>
    %87 = tpu.matmul %58, %63, %cst_47 {dimension_numbers = #tpu.dot_dimension_numbers<[1], [0], [0], [1], [0, 0, 1, 1], [], []>} : vector<16x32xf32>, vector<32x32xf32>, vector<16x32xf32> -> vector<16x32xf32>
    %cst_48 = arith.constant dense<0.000000e+00> : vector<16x32xf32>
    %88 = tpu.matmul %76, %86, %cst_48 {dimension_numbers = #tpu.dot_dimension_numbers<[1], [0], [0], [1], [0, 0, 1, 1], [], []>} : vector<16x32xf32>, vector<32x32xf32>, vector<16x32xf32> -> vector<16x32xf32>
    %cst_49 = arith.constant dense<0.000000e+00> : vector<16x32xf32>
    %89 = tpu.matmul %79, %87, %cst_49 {dimension_numbers = #tpu.dot_dimension_numbers<[1], [0], [0], [1], [0, 0, 1, 1], [], []>} : vector<16x16xf32>, vector<16x32xf32>, vector<16x32xf32> -> vector<16x32xf32>
    %90 = arith.addf %88, %89 : vector<16x32xf32>
    %91 = vector.broadcast %85 : vector<16x1xf32> to vector<16x32xf32>
    %92 = arith.mulf %90, %91 : vector<16x32xf32>
    %93 = arith.addf %59, %92 : vector<16x32xf32>
    %c0_50 = arith.constant 0 : index
    %c1 = arith.constant 1 : index
    %c0_51 = arith.constant 0 : index
    %c0_52 = arith.constant 0 : index
    %94 = vector.load %arg9[%c0_50, %c1, %c0_51, %c0_52] : memref<2x4x32x32xf32, #tpu.memory_space<vmem>>, vector<1x1x32x32xf32>
    %95 = vector.shape_cast %94 : vector<1x1x32x32xf32> to vector<32x32xf32>
    %c0_53 = arith.constant 0 : index
    %c1_54 = arith.constant 1 : index
    %c0_55 = arith.constant 0 : index
    %c0_56 = arith.constant 0 : index
    %96 = vector.load %arg10[%c0_53, %c1_54, %c0_55, %c0_56] : memref<2x4x32x32xf32, #tpu.memory_space<vmem>>, vector<1x1x32x32xf32>
    %97 = vector.shape_cast %96 : vector<1x1x32x32xf32> to vector<32x32xf32>
    %cst_57 = arith.constant dense<0.000000e+00> : vector<16x32xf32>
    %98 = tpu.matmul %58, %95, %cst_57 {dimension_numbers = #tpu.dot_dimension_numbers<[1], [0], [0], [1], [0, 0, 1, 1], [], []>} : vector<16x32xf32>, vector<32x32xf32>, vector<16x32xf32> -> vector<16x32xf32>
    "tpu.trace_start"() <{level = 10 : i32, message = "id,jd->ij"}> : () -> ()
    %cst_58 = arith.constant dense<0.000000e+00> : vector<16x32xf32>
    %99 = tpu.matmul %98, %32, %cst_58 {dimension_numbers = #tpu.dot_dimension_numbers<[1], [1], [0], [0], [0, 0, 1, 0], [], []>} : vector<16x32xf32>, vector<32x32xf32>, vector<16x32xf32> -> vector<16x32xf32>
    "tpu.trace_stop"() : () -> ()
    %100 = arith.addf %99, %5 : vector<16x32xf32>
    "tpu.trace_start"() <{level = 10 : i32, message = "id,jd->ij"}> : () -> ()
    %cst_59 = arith.constant dense<0.000000e+00> : vector<16x16xf32>
    %101 = tpu.matmul %98, %58, %cst_59 {dimension_numbers = #tpu.dot_dimension_numbers<[1], [1], [0], [0], [0, 0, 1, 0], [], []>} : vector<16x32xf32>, vector<16x32xf32>, vector<16x16xf32> -> vector<16x16xf32>
    "tpu.trace_stop"() : () -> ()
    %102 = arith.addf %101, %6 : vector<16x16xf32>
    %cst_60 = arith.constant dense<0xFF800000> : vector<16xf32>
    %103 = vector.multi_reduction <maximumf>, %100, %cst_60 [1] : vector<16x32xf32> to vector<16xf32>
    %104 = vector.shape_cast %103 : vector<16xf32> to vector<16x1xf32>
    %cst_61 = arith.constant dense<0xFF800000> : vector<16xf32>
    %105 = vector.multi_reduction <maximumf>, %102, %cst_61 [1] : vector<16x16xf32> to vector<16xf32>
    %106 = vector.shape_cast %105 : vector<16xf32> to vector<16x1xf32>
    %107 = arith.maximumf %104, %106 : vector<16x1xf32>
    %108 = vector.broadcast %107 : vector<16x1xf32> to vector<16x32xf32>
    %109 = arith.subf %100, %108 : vector<16x32xf32>
    %110 = math.exp %109 : vector<16x32xf32>
    %111 = vector.broadcast %107 : vector<16x1xf32> to vector<16x16xf32>
    %112 = arith.subf %102, %111 : vector<16x16xf32>
    %113 = math.exp %112 : vector<16x16xf32>
    %cst_62 = arith.constant dense<0.000000e+00> : vector<16xf32>
    %114 = vector.multi_reduction <add>, %110, %cst_62 [1] : vector<16x32xf32> to vector<16xf32>
    %115 = vector.shape_cast %114 : vector<16xf32> to vector<16x1xf32>
    %cst_63 = arith.constant dense<0.000000e+00> : vector<16xf32>
    %116 = vector.multi_reduction <add>, %113, %cst_63 [1] : vector<16x16xf32> to vector<16xf32>
    %117 = vector.shape_cast %116 : vector<16xf32> to vector<16x1xf32>
    %118 = arith.addf %115, %117 : vector<16x1xf32>
    %119 = tpu.reciprocal %118 {approx = true} : vector<16x1xf32> -> vector<16x1xf32>
    %cst_64 = arith.constant dense<0.000000e+00> : vector<32x32xf32>
    %120 = tpu.matmul %32, %97, %cst_64 {dimension_numbers = #tpu.dot_dimension_numbers<[1], [0], [0], [1], [0, 0, 1, 1], [], []>} : vector<32x32xf32>, vector<32x32xf32>, vector<32x32xf32> -> vector<32x32xf32>
    %cst_65 = arith.constant dense<0.000000e+00> : vector<16x32xf32>
    %121 = tpu.matmul %58, %97, %cst_65 {dimension_numbers = #tpu.dot_dimension_numbers<[1], [0], [0], [1], [0, 0, 1, 1], [], []>} : vector<16x32xf32>, vector<32x32xf32>, vector<16x32xf32> -> vector<16x32xf32>
    %cst_66 = arith.constant dense<0.000000e+00> : vector<16x32xf32>
    %122 = tpu.matmul %110, %120, %cst_66 {dimension_numbers = #tpu.dot_dimension_numbers<[1], [0], [0], [1], [0, 0, 1, 1], [], []>} : vector<16x32xf32>, vector<32x32xf32>, vector<16x32xf32> -> vector<16x32xf32>
    %cst_67 = arith.constant dense<0.000000e+00> : vector<16x32xf32>
    %123 = tpu.matmul %113, %121, %cst_67 {dimension_numbers = #tpu.dot_dimension_numbers<[1], [0], [0], [1], [0, 0, 1, 1], [], []>} : vector<16x16xf32>, vector<16x32xf32>, vector<16x32xf32> -> vector<16x32xf32>
    %124 = arith.addf %122, %123 : vector<16x32xf32>
    %125 = vector.broadcast %119 : vector<16x1xf32> to vector<16x32xf32>
    %126 = arith.mulf %124, %125 : vector<16x32xf32>
    %127 = arith.addf %93, %126 : vector<16x32xf32>
    %c0_68 = arith.constant 0 : index
    %c2 = arith.constant 2 : index
    %c0_69 = arith.constant 0 : index
    %c0_70 = arith.constant 0 : index
    %128 = vector.load %arg9[%c0_68, %c2, %c0_69, %c0_70] : memref<2x4x32x32xf32, #tpu.memory_space<vmem>>, vector<1x1x32x32xf32>
    %129 = vector.shape_cast %128 : vector<1x1x32x32xf32> to vector<32x32xf32>
    %c0_71 = arith.constant 0 : index
    %c2_72 = arith.constant 2 : index
    %c0_73 = arith.constant 0 : index
    %c0_74 = arith.constant 0 : index
    %130 = vector.load %arg10[%c0_71, %c2_72, %c0_73, %c0_74] : memref<2x4x32x32xf32, #tpu.memory_space<vmem>>, vector<1x1x32x32xf32>
    %131 = vector.shape_cast %130 : vector<1x1x32x32xf32> to vector<32x32xf32>
    %cst_75 = arith.constant dense<0.000000e+00> : vector<16x32xf32>
    %132 = tpu.matmul %58, %129, %cst_75 {dimension_numbers = #tpu.dot_dimension_numbers<[1], [0], [0], [1], [0, 0, 1, 1], [], []>} : vector<16x32xf32>, vector<32x32xf32>, vector<16x32xf32> -> vector<16x32xf32>
    "tpu.trace_start"() <{level = 10 : i32, message = "id,jd->ij"}> : () -> ()
    %cst_76 = arith.constant dense<0.000000e+00> : vector<16x32xf32>
    %133 = tpu.matmul %132, %32, %cst_76 {dimension_numbers = #tpu.dot_dimension_numbers<[1], [1], [0], [0], [0, 0, 1, 0], [], []>} : vector<16x32xf32>, vector<32x32xf32>, vector<16x32xf32> -> vector<16x32xf32>
    "tpu.trace_stop"() : () -> ()
    %134 = arith.addf %133, %5 : vector<16x32xf32>
    "tpu.trace_start"() <{level = 10 : i32, message = "id,jd->ij"}> : () -> ()
    %cst_77 = arith.constant dense<0.000000e+00> : vector<16x16xf32>
    %135 = tpu.matmul %132, %58, %cst_77 {dimension_numbers = #tpu.dot_dimension_numbers<[1], [1], [0], [0], [0, 0, 1, 0], [], []>} : vector<16x32xf32>, vector<16x32xf32>, vector<16x16xf32> -> vector<16x16xf32>
    "tpu.trace_stop"() : () -> ()
    %136 = arith.addf %135, %6 : vector<16x16xf32>
    %cst_78 = arith.constant dense<0xFF800000> : vector<16xf32>
    %137 = vector.multi_reduction <maximumf>, %134, %cst_78 [1] : vector<16x32xf32> to vector<16xf32>
    %138 = vector.shape_cast %137 : vector<16xf32> to vector<16x1xf32>
    %cst_79 = arith.constant dense<0xFF800000> : vector<16xf32>
    %139 = vector.multi_reduction <maximumf>, %136, %cst_79 [1] : vector<16x16xf32> to vector<16xf32>
    %140 = vector.shape_cast %139 : vector<16xf32> to vector<16x1xf32>
    %141 = arith.maximumf %138, %140 : vector<16x1xf32>
    %142 = vector.broadcast %141 : vector<16x1xf32> to vector<16x32xf32>
    %143 = arith.subf %134, %142 : vector<16x32xf32>
    %144 = math.exp %143 : vector<16x32xf32>
    %145 = vector.broadcast %141 : vector<16x1xf32> to vector<16x16xf32>
    %146 = arith.subf %136, %145 : vector<16x16xf32>
    %147 = math.exp %146 : vector<16x16xf32>
    %cst_80 = arith.constant dense<0.000000e+00> : vector<16xf32>
    %148 = vector.multi_reduction <add>, %144, %cst_80 [1] : vector<16x32xf32> to vector<16xf32>
    %149 = vector.shape_cast %148 : vector<16xf32> to vector<16x1xf32>
    %cst_81 = arith.constant dense<0.000000e+00> : vector<16xf32>
    %150 = vector.multi_reduction <add>, %147, %cst_81 [1] : vector<16x16xf32> to vector<16xf32>
    %151 = vector.shape_cast %150 : vector<16xf32> to vector<16x1xf32>
    %152 = arith.addf %149, %151 : vector<16x1xf32>
    %153 = tpu.reciprocal %152 {approx = true} : vector<16x1xf32> -> vector<16x1xf32>
    %cst_82 = arith.constant dense<0.000000e+00> : vector<32x32xf32>
    %154 = tpu.matmul %32, %131, %cst_82 {dimension_numbers = #tpu.dot_dimension_numbers<[1], [0], [0], [1], [0, 0, 1, 1], [], []>} : vector<32x32xf32>, vector<32x32xf32>, vector<32x32xf32> -> vector<32x32xf32>
    %cst_83 = arith.constant dense<0.000000e+00> : vector<16x32xf32>
    %155 = tpu.matmul %58, %131, %cst_83 {dimension_numbers = #tpu.dot_dimension_numbers<[1], [0], [0], [1], [0, 0, 1, 1], [], []>} : vector<16x32xf32>, vector<32x32xf32>, vector<16x32xf32> -> vector<16x32xf32>
    %cst_84 = arith.constant dense<0.000000e+00> : vector<16x32xf32>
    %156 = tpu.matmul %144, %154, %cst_84 {dimension_numbers = #tpu.dot_dimension_numbers<[1], [0], [0], [1], [0, 0, 1, 1], [], []>} : vector<16x32xf32>, vector<32x32xf32>, vector<16x32xf32> -> vector<16x32xf32>
    %cst_85 = arith.constant dense<0.000000e+00> : vector<16x32xf32>
    %157 = tpu.matmul %147, %155, %cst_85 {dimension_numbers = #tpu.dot_dimension_numbers<[1], [0], [0], [1], [0, 0, 1, 1], [], []>} : vector<16x16xf32>, vector<16x32xf32>, vector<16x32xf32> -> vector<16x32xf32>
    %158 = arith.addf %156, %157 : vector<16x32xf32>
    %159 = vector.broadcast %153 : vector<16x1xf32> to vector<16x32xf32>
    %160 = arith.mulf %158, %159 : vector<16x32xf32>
    %161 = arith.addf %127, %160 : vector<16x32xf32>
    %c0_86 = arith.constant 0 : index
    %c3 = arith.constant 3 : index
    %c0_87 = arith.constant 0 : index
    %c0_88 = arith.constant 0 : index
    %162 = vector.load %arg9[%c0_86, %c3, %c0_87, %c0_88] : memref<2x4x32x32xf32, #tpu.memory_space<vmem>>, vector<1x1x32x32xf32>
    %163 = vector.shape_cast %162 : vector<1x1x32x32xf32> to vector<32x32xf32>
    %c0_89 = arith.constant 0 : index
    %c3_90 = arith.constant 3 : index
    %c0_91 = arith.constant 0 : index
    %c0_92 = arith.constant 0 : index
    %164 = vector.load %arg10[%c0_89, %c3_90, %c0_91, %c0_92] : memref<2x4x32x32xf32, #tpu.memory_space<vmem>>, vector<1x1x32x32xf32>
    %165 = vector.shape_cast %164 : vector<1x1x32x32xf32> to vector<32x32xf32>
    %cst_93 = arith.constant dense<0.000000e+00> : vector<16x32xf32>
    %166 = tpu.matmul %58, %163, %cst_93 {dimension_numbers = #tpu.dot_dimension_numbers<[1], [0], [0], [1], [0, 0, 1, 1], [], []>} : vector<16x32xf32>, vector<32x32xf32>, vector<16x32xf32> -> vector<16x32xf32>
    "tpu.trace_start"() <{level = 10 : i32, message = "id,jd->ij"}> : () -> ()
    %cst_94 = arith.constant dense<0.000000e+00> : vector<16x32xf32>
    %167 = tpu.matmul %166, %32, %cst_94 {dimension_numbers = #tpu.dot_dimension_numbers<[1], [1], [0], [0], [0, 0, 1, 0], [], []>} : vector<16x32xf32>, vector<32x32xf32>, vector<16x32xf32> -> vector<16x32xf32>
    "tpu.trace_stop"() : () -> ()
    %168 = arith.addf %167, %5 : vector<16x32xf32>
    "tpu.trace_start"() <{level = 10 : i32, message = "id,jd->ij"}> : () -> ()
    %cst_95 = arith.constant dense<0.000000e+00> : vector<16x16xf32>
    %169 = tpu.matmul %166, %58, %cst_95 {dimension_numbers = #tpu.dot_dimension_numbers<[1], [1], [0], [0], [0, 0, 1, 0], [], []>} : vector<16x32xf32>, vector<16x32xf32>, vector<16x16xf32> -> vector<16x16xf32>
    "tpu.trace_stop"() : () -> ()
    %170 = arith.addf %169, %6 : vector<16x16xf32>
    %cst_96 = arith.constant dense<0xFF800000> : vector<16xf32>
    %171 = vector.multi_reduction <maximumf>, %168, %cst_96 [1] : vector<16x32xf32> to vector<16xf32>
    %172 = vector.shape_cast %171 : vector<16xf32> to vector<16x1xf32>
    %cst_97 = arith.constant dense<0xFF800000> : vector<16xf32>
    %173 = vector.multi_reduction <maximumf>, %170, %cst_97 [1] : vector<16x16xf32> to vector<16xf32>
    %174 = vector.shape_cast %173 : vector<16xf32> to vector<16x1xf32>
    %175 = arith.maximumf %172, %174 : vector<16x1xf32>
    %176 = vector.broadcast %175 : vector<16x1xf32> to vector<16x32xf32>
    %177 = arith.subf %168, %176 : vector<16x32xf32>
    %178 = math.exp %177 : vector<16x32xf32>
    %179 = vector.broadcast %175 : vector<16x1xf32> to vector<16x16xf32>
    %180 = arith.subf %170, %179 : vector<16x16xf32>
    %181 = math.exp %180 : vector<16x16xf32>
    %cst_98 = arith.constant dense<0.000000e+00> : vector<16xf32>
    %182 = vector.multi_reduction <add>, %178, %cst_98 [1] : vector<16x32xf32> to vector<16xf32>
    %183 = vector.shape_cast %182 : vector<16xf32> to vector<16x1xf32>
    %cst_99 = arith.constant dense<0.000000e+00> : vector<16xf32>
    %184 = vector.multi_reduction <add>, %181, %cst_99 [1] : vector<16x16xf32> to vector<16xf32>
    %185 = vector.shape_cast %184 : vector<16xf32> to vector<16x1xf32>
    %186 = arith.addf %183, %185 : vector<16x1xf32>
    %187 = tpu.reciprocal %186 {approx = true} : vector<16x1xf32> -> vector<16x1xf32>
    %cst_100 = arith.constant dense<0.000000e+00> : vector<32x32xf32>
    %188 = tpu.matmul %32, %165, %cst_100 {dimension_numbers = #tpu.dot_dimension_numbers<[1], [0], [0], [1], [0, 0, 1, 1], [], []>} : vector<32x32xf32>, vector<32x32xf32>, vector<32x32xf32> -> vector<32x32xf32>
    %cst_101 = arith.constant dense<0.000000e+00> : vector<16x32xf32>
    %189 = tpu.matmul %58, %165, %cst_101 {dimension_numbers = #tpu.dot_dimension_numbers<[1], [0], [0], [1], [0, 0, 1, 1], [], []>} : vector<16x32xf32>, vector<32x32xf32>, vector<16x32xf32> -> vector<16x32xf32>
    %cst_102 = arith.constant dense<0.000000e+00> : vector<16x32xf32>
    %190 = tpu.matmul %178, %188, %cst_102 {dimension_numbers = #tpu.dot_dimension_numbers<[1], [0], [0], [1], [0, 0, 1, 1], [], []>} : vector<16x32xf32>, vector<32x32xf32>, vector<16x32xf32> -> vector<16x32xf32>
    %cst_103 = arith.constant dense<0.000000e+00> : vector<16x32xf32>
    %191 = tpu.matmul %181, %189, %cst_103 {dimension_numbers = #tpu.dot_dimension_numbers<[1], [0], [0], [1], [0, 0, 1, 1], [], []>} : vector<16x16xf32>, vector<16x32xf32>, vector<16x32xf32> -> vector<16x32xf32>
    %192 = arith.addf %190, %191 : vector<16x32xf32>
    %193 = vector.broadcast %187 : vector<16x1xf32> to vector<16x32xf32>
    %194 = arith.mulf %192, %193 : vector<16x32xf32>
    %195 = arith.addf %161, %194 : vector<16x32xf32>
    %196 = arith.addf %195, %4 : vector<16x32xf32>
    %c0_104 = arith.constant 0 : index
    %c0_105 = arith.constant 0 : index
    %c0_106 = arith.constant 0 : index
    %197 = vector.load %arg11[%c0_104, %c0_105, %c0_106] : memref<2x1x32xf32, #tpu.memory_space<vmem>>, vector<1x1x32xf32>
    %198 = vector.shape_cast %197 : vector<1x1x32xf32> to vector<1x32xf32>
    %c0_107 = arith.constant 0 : index
    %c0_108 = arith.constant 0 : index
    %c0_109 = arith.constant 0 : index
    %199 = vector.load %arg12[%c0_107, %c0_108, %c0_109] : memref<2x1x32xf32, #tpu.memory_space<vmem>>, vector<1x1x32xf32>
    %200 = vector.shape_cast %199 : vector<1x1x32xf32> to vector<1x32xf32>
    %cst_110 = arith.constant dense<0.000000e+00> : vector<16xf32>
    %201 = vector.multi_reduction <add>, %196, %cst_110 [1] : vector<16x32xf32> to vector<16xf32>
    %202 = vector.shape_cast %201 : vector<16xf32> to vector<16x1xf32>
    %cst_111 = arith.constant 3.200000e+01 : f32
    %203 = vector.broadcast %cst_111 : f32 to vector<16x1xf32>
    %204 = arith.divf %202, %203 : vector<16x1xf32>
    %205 = vector.broadcast %204 : vector<16x1xf32> to vector<16x32xf32>
    %206 = arith.subf %196, %205 : vector<16x32xf32>
    %207 = arith.mulf %206, %206 : vector<16x32xf32>
    %cst_112 = arith.constant dense<0.000000e+00> : vector<16xf32>
    %208 = vector.multi_reduction <add>, %207, %cst_112 [1] : vector<16x32xf32> to vector<16xf32>
    %209 = vector.shape_cast %208 : vector<16xf32> to vector<16x1xf32>
    %cst_113 = arith.constant 3.200000e+01 : f32
    %210 = vector.broadcast %cst_113 : f32 to vector<16x1xf32>
    %211 = arith.divf %209, %210 : vector<16x1xf32>
    %212 = vector.broadcast %204 : vector<16x1xf32> to vector<16x32xf32>
    %213 = arith.subf %196, %212 : vector<16x32xf32>
    %cst_114 = arith.constant 9.99999974E-6 : f32
    %214 = vector.broadcast %cst_114 : f32 to vector<16x1xf32>
    %215 = arith.addf %211, %214 : vector<16x1xf32>
    %216 = math.rsqrt %215 : vector<16x1xf32>
    %217 = vector.broadcast %216 : vector<16x1xf32> to vector<16x32xf32>
    %218 = arith.mulf %213, %217 : vector<16x32xf32>
    %219 = vector.broadcast %198 : vector<1x32xf32> to vector<16x32xf32>
    %220 = arith.mulf %218, %219 : vector<16x32xf32>
    %221 = vector.broadcast %200 : vector<1x32xf32> to vector<16x32xf32>
    %222 = arith.addf %220, %221 : vector<16x32xf32>
    %c0_115 = arith.constant 0 : index
    %c0_116 = arith.constant 0 : index
    %c0_117 = arith.constant 0 : index
    %223 = vector.load %arg13[%c0_115, %c0_116, %c0_117] : memref<2x32x128xf32, #tpu.memory_space<vmem>>, vector<1x32x128xf32>
    %224 = vector.shape_cast %223 : vector<1x32x128xf32> to vector<32x128xf32>
    %cst_118 = arith.constant dense<0.000000e+00> : vector<16x128xf32>
    %225 = tpu.matmul %222, %224, %cst_118 {dimension_numbers = #tpu.dot_dimension_numbers<[1], [0], [0], [1], [0, 0, 1, 1], [], []>} : vector<16x32xf32>, vector<32x128xf32>, vector<16x128xf32> -> vector<16x128xf32>
    %cst_119 = arith.constant 5.000000e-01 : f32
    %226 = vector.broadcast %cst_119 : f32 to vector<16x128xf32>
    %227 = arith.mulf %226, %225 : vector<16x128xf32>
    %cst_120 = arith.constant 0.707106769 : f32
    %228 = vector.broadcast %cst_120 : f32 to vector<16x128xf32>
    %229 = arith.mulf %225, %228 : vector<16x128xf32>
    %cst_121 = arith.constant 0.000000e+00 : f32
    %230 = vector.broadcast %cst_121 : f32 to vector<16x128xf32>
    %231 = arith.cmpf oge, %229, %230 : vector<16x128xf32>
    %cst_122 = arith.constant 1.000000e+00 : f32
    %cst_123 = arith.constant -1.000000e+00 : f32
    %232 = vector.broadcast %cst_122 : f32 to vector<16x128xf32>
    %233 = vector.broadcast %cst_123 : f32 to vector<16x128xf32>
    %234 = arith.select %231, %232, %233 : vector<16x128xi1>, vector<16x128xf32>
    %235 = math.absf %229 : vector<16x128xf32>
    %cst_124 = arith.constant 0.327591091 : f32
    %236 = vector.broadcast %cst_124 : f32 to vector<16x128xf32>
    %237 = arith.mulf %236, %235 : vector<16x128xf32>
    %cst_125 = arith.constant 1.000000e+00 : f32
    %238 = vector.broadcast %cst_125 : f32 to vector<16x128xf32>
    %239 = arith.addf %238, %237 : vector<16x128xf32>
    %cst_126 = arith.constant 1.000000e+00 : f32
    %240 = vector.broadcast %cst_126 : f32 to vector<16x128xf32>
    %241 = arith.divf %240, %239 : vector<16x128xf32>
    %cst_127 = arith.constant 1.06140542 : f32
    %242 = vector.broadcast %cst_127 : f32 to vector<16x128xf32>
    %243 = arith.mulf %242, %241 : vector<16x128xf32>
    %cst_128 = arith.constant -1.45315206 : f32
    %244 = vector.broadcast %cst_128 : f32 to vector<16x128xf32>
    %245 = arith.addf %243, %244 : vector<16x128xf32>
    %246 = arith.mulf %245, %241 : vector<16x128xf32>
    %cst_129 = arith.constant 1.42141378 : f32
    %247 = vector.broadcast %cst_129 : f32 to vector<16x128xf32>
    %248 = arith.addf %246, %247 : vector<16x128xf32>
    %249 = arith.mulf %248, %241 : vector<16x128xf32>
    %cst_130 = arith.constant -0.284496725 : f32
    %250 = vector.broadcast %cst_130 : f32 to vector<16x128xf32>
    %251 = arith.addf %249, %250 : vector<16x128xf32>
    %252 = arith.mulf %251, %241 : vector<16x128xf32>
    %cst_131 = arith.constant 0.254829586 : f32
    %253 = vector.broadcast %cst_131 : f32 to vector<16x128xf32>
    %254 = arith.addf %252, %253 : vector<16x128xf32>
    %255 = arith.mulf %254, %241 : vector<16x128xf32>
    %cst_132 = arith.constant 0.000000e+00 : f32
    %256 = vector.broadcast %cst_132 : f32 to vector<16x128xf32>
    %257 = arith.subf %256, %235 : vector<16x128xf32>
    %258 = arith.mulf %257, %235 : vector<16x128xf32>
    %259 = math.exp %258 : vector<16x128xf32>
    %260 = arith.mulf %255, %259 : vector<16x128xf32>
    %cst_133 = arith.constant 1.000000e+00 : f32
    %261 = vector.broadcast %cst_133 : f32 to vector<16x128xf32>
    %262 = arith.subf %261, %260 : vector<16x128xf32>
    %263 = arith.mulf %234, %262 : vector<16x128xf32>
    %cst_134 = arith.constant 1.000000e+00 : f32
    %264 = vector.broadcast %cst_134 : f32 to vector<16x128xf32>
    %265 = arith.addf %264, %263 : vector<16x128xf32>
    %266 = arith.mulf %227, %265 : vector<16x128xf32>
    %c0_135 = arith.constant 0 : index
    %c0_136 = arith.constant 0 : index
    %c0_137 = arith.constant 0 : index
    %267 = vector.load %arg14[%c0_135, %c0_136, %c0_137] : memref<2x128x32xf32, #tpu.memory_space<vmem>>, vector<1x128x32xf32>
    %268 = vector.shape_cast %267 : vector<1x128x32xf32> to vector<128x32xf32>
    %cst_138 = arith.constant dense<0.000000e+00> : vector<16x32xf32>
    %269 = tpu.matmul %266, %268, %cst_138 {dimension_numbers = #tpu.dot_dimension_numbers<[1], [0], [0], [1], [0, 0, 1, 1], [], []>} : vector<16x128xf32>, vector<128x32xf32>, vector<16x32xf32> -> vector<16x32xf32>
    %270 = arith.addf %269, %196 : vector<16x32xf32>
    %c1_139 = arith.constant 1 : index
    %c0_140 = arith.constant 0 : index
    %c0_141 = arith.constant 0 : index
    %271 = vector.load %arg5[%c1_139, %c0_140, %c0_141] : memref<2x1x32xf32, #tpu.memory_space<vmem>>, vector<1x1x32xf32>
    %272 = vector.shape_cast %271 : vector<1x1x32xf32> to vector<1x32xf32>
    %c1_142 = arith.constant 1 : index
    %c0_143 = arith.constant 0 : index
    %c0_144 = arith.constant 0 : index
    %273 = vector.load %arg6[%c1_142, %c0_143, %c0_144] : memref<2x1x32xf32, #tpu.memory_space<vmem>>, vector<1x1x32xf32>
    %274 = vector.shape_cast %273 : vector<1x1x32xf32> to vector<1x32xf32>
    %cst_145 = arith.constant dense<0.000000e+00> : vector<32xf32>
    %275 = vector.multi_reduction <add>, %3, %cst_145 [1] : vector<32x32xf32> to vector<32xf32>
    %276 = vector.shape_cast %275 : vector<32xf32> to vector<32x1xf32>
    %cst_146 = arith.constant 3.200000e+01 : f32
    %277 = vector.broadcast %cst_146 : f32 to vector<32x1xf32>
    %278 = arith.divf %276, %277 : vector<32x1xf32>
    %279 = vector.broadcast %278 : vector<32x1xf32> to vector<32x32xf32>
    %280 = arith.subf %3, %279 : vector<32x32xf32>
    %281 = arith.mulf %280, %280 : vector<32x32xf32>
    %cst_147 = arith.constant dense<0.000000e+00> : vector<32xf32>
    %282 = vector.multi_reduction <add>, %281, %cst_147 [1] : vector<32x32xf32> to vector<32xf32>
    %283 = vector.shape_cast %282 : vector<32xf32> to vector<32x1xf32>
    %cst_148 = arith.constant 3.200000e+01 : f32
    %284 = vector.broadcast %cst_148 : f32 to vector<32x1xf32>
    %285 = arith.divf %283, %284 : vector<32x1xf32>
    %286 = vector.broadcast %278 : vector<32x1xf32> to vector<32x32xf32>
    %287 = arith.subf %3, %286 : vector<32x32xf32>
    %cst_149 = arith.constant 9.99999974E-6 : f32
    %288 = vector.broadcast %cst_149 : f32 to vector<32x1xf32>
    %289 = arith.addf %285, %288 : vector<32x1xf32>
    %290 = math.rsqrt %289 : vector<32x1xf32>
    %291 = vector.broadcast %290 : vector<32x1xf32> to vector<32x32xf32>
    %292 = arith.mulf %287, %291 : vector<32x32xf32>
    %293 = vector.broadcast %272 : vector<1x32xf32> to vector<32x32xf32>
    %294 = arith.mulf %292, %293 : vector<32x32xf32>
    %295 = vector.broadcast %274 : vector<1x32xf32> to vector<32x32xf32>
    %296 = arith.addf %294, %295 : vector<32x32xf32>
    %c1_150 = arith.constant 1 : index
    %c0_151 = arith.constant 0 : index
    %c0_152 = arith.constant 0 : index
    %297 = vector.load %arg7[%c1_150, %c0_151, %c0_152] : memref<2x1x32xf32, #tpu.memory_space<vmem>>, vector<1x1x32xf32>
    %298 = vector.shape_cast %297 : vector<1x1x32xf32> to vector<1x32xf32>
    %c1_153 = arith.constant 1 : index
    %c0_154 = arith.constant 0 : index
    %c0_155 = arith.constant 0 : index
    %299 = vector.load %arg8[%c1_153, %c0_154, %c0_155] : memref<2x1x32xf32, #tpu.memory_space<vmem>>, vector<1x1x32xf32>
    %300 = vector.shape_cast %299 : vector<1x1x32xf32> to vector<1x32xf32>
    %cst_156 = arith.constant dense<0.000000e+00> : vector<16xf32>
    %301 = vector.multi_reduction <add>, %270, %cst_156 [1] : vector<16x32xf32> to vector<16xf32>
    %302 = vector.shape_cast %301 : vector<16xf32> to vector<16x1xf32>
    %cst_157 = arith.constant 3.200000e+01 : f32
    %303 = vector.broadcast %cst_157 : f32 to vector<16x1xf32>
    %304 = arith.divf %302, %303 : vector<16x1xf32>
    %305 = vector.broadcast %304 : vector<16x1xf32> to vector<16x32xf32>
    %306 = arith.subf %270, %305 : vector<16x32xf32>
    %307 = arith.mulf %306, %306 : vector<16x32xf32>
    %cst_158 = arith.constant dense<0.000000e+00> : vector<16xf32>
    %308 = vector.multi_reduction <add>, %307, %cst_158 [1] : vector<16x32xf32> to vector<16xf32>
    %309 = vector.shape_cast %308 : vector<16xf32> to vector<16x1xf32>
    %cst_159 = arith.constant 3.200000e+01 : f32
    %310 = vector.broadcast %cst_159 : f32 to vector<16x1xf32>
    %311 = arith.divf %309, %310 : vector<16x1xf32>
    %312 = vector.broadcast %304 : vector<16x1xf32> to vector<16x32xf32>
    %313 = arith.subf %270, %312 : vector<16x32xf32>
    %cst_160 = arith.constant 9.99999974E-6 : f32
    %314 = vector.broadcast %cst_160 : f32 to vector<16x1xf32>
    %315 = arith.addf %311, %314 : vector<16x1xf32>
    %316 = math.rsqrt %315 : vector<16x1xf32>
    %317 = vector.broadcast %316 : vector<16x1xf32> to vector<16x32xf32>
    %318 = arith.mulf %313, %317 : vector<16x32xf32>
    %319 = vector.broadcast %298 : vector<1x32xf32> to vector<16x32xf32>
    %320 = arith.mulf %318, %319 : vector<16x32xf32>
    %321 = vector.broadcast %300 : vector<1x32xf32> to vector<16x32xf32>
    %322 = arith.addf %320, %321 : vector<16x32xf32>
    %cst_161 = arith.constant 0.000000e+00 : f32
    %323 = vector.broadcast %cst_161 : f32 to vector<16x32xf32>
    %c1_162 = arith.constant 1 : index
    %c0_163 = arith.constant 0 : index
    %c0_164 = arith.constant 0 : index
    %c0_165 = arith.constant 0 : index
    %324 = vector.load %arg9[%c1_162, %c0_163, %c0_164, %c0_165] : memref<2x4x32x32xf32, #tpu.memory_space<vmem>>, vector<1x1x32x32xf32>
    %325 = vector.shape_cast %324 : vector<1x1x32x32xf32> to vector<32x32xf32>
    %c1_166 = arith.constant 1 : index
    %c0_167 = arith.constant 0 : index
    %c0_168 = arith.constant 0 : index
    %c0_169 = arith.constant 0 : index
    %326 = vector.load %arg10[%c1_166, %c0_167, %c0_168, %c0_169] : memref<2x4x32x32xf32, #tpu.memory_space<vmem>>, vector<1x1x32x32xf32>
    %327 = vector.shape_cast %326 : vector<1x1x32x32xf32> to vector<32x32xf32>
    %cst_170 = arith.constant dense<0.000000e+00> : vector<16x32xf32>
    %328 = tpu.matmul %322, %325, %cst_170 {dimension_numbers = #tpu.dot_dimension_numbers<[1], [0], [0], [1], [0, 0, 1, 1], [], []>} : vector<16x32xf32>, vector<32x32xf32>, vector<16x32xf32> -> vector<16x32xf32>
    "tpu.trace_start"() <{level = 10 : i32, message = "id,jd->ij"}> : () -> ()
    %cst_171 = arith.constant dense<0.000000e+00> : vector<16x32xf32>
    %329 = tpu.matmul %328, %296, %cst_171 {dimension_numbers = #tpu.dot_dimension_numbers<[1], [1], [0], [0], [0, 0, 1, 0], [], []>} : vector<16x32xf32>, vector<32x32xf32>, vector<16x32xf32> -> vector<16x32xf32>
    "tpu.trace_stop"() : () -> ()
    %330 = arith.addf %329, %5 : vector<16x32xf32>
    "tpu.trace_start"() <{level = 10 : i32, message = "id,jd->ij"}> : () -> ()
    %cst_172 = arith.constant dense<0.000000e+00> : vector<16x16xf32>
    %331 = tpu.matmul %328, %322, %cst_172 {dimension_numbers = #tpu.dot_dimension_numbers<[1], [1], [0], [0], [0, 0, 1, 0], [], []>} : vector<16x32xf32>, vector<16x32xf32>, vector<16x16xf32> -> vector<16x16xf32>
    "tpu.trace_stop"() : () -> ()
    %332 = arith.addf %331, %6 : vector<16x16xf32>
    %cst_173 = arith.constant dense<0xFF800000> : vector<16xf32>
    %333 = vector.multi_reduction <maximumf>, %330, %cst_173 [1] : vector<16x32xf32> to vector<16xf32>
    %334 = vector.shape_cast %333 : vector<16xf32> to vector<16x1xf32>
    %cst_174 = arith.constant dense<0xFF800000> : vector<16xf32>
    %335 = vector.multi_reduction <maximumf>, %332, %cst_174 [1] : vector<16x16xf32> to vector<16xf32>
    %336 = vector.shape_cast %335 : vector<16xf32> to vector<16x1xf32>
    %337 = arith.maximumf %334, %336 : vector<16x1xf32>
    %338 = vector.broadcast %337 : vector<16x1xf32> to vector<16x32xf32>
    %339 = arith.subf %330, %338 : vector<16x32xf32>
    %340 = math.exp %339 : vector<16x32xf32>
    %341 = vector.broadcast %337 : vector<16x1xf32> to vector<16x16xf32>
    %342 = arith.subf %332, %341 : vector<16x16xf32>
    %343 = math.exp %342 : vector<16x16xf32>
    %cst_175 = arith.constant dense<0.000000e+00> : vector<16xf32>
    %344 = vector.multi_reduction <add>, %340, %cst_175 [1] : vector<16x32xf32> to vector<16xf32>
    %345 = vector.shape_cast %344 : vector<16xf32> to vector<16x1xf32>
    %cst_176 = arith.constant dense<0.000000e+00> : vector<16xf32>
    %346 = vector.multi_reduction <add>, %343, %cst_176 [1] : vector<16x16xf32> to vector<16xf32>
    %347 = vector.shape_cast %346 : vector<16xf32> to vector<16x1xf32>
    %348 = arith.addf %345, %347 : vector<16x1xf32>
    %349 = tpu.reciprocal %348 {approx = true} : vector<16x1xf32> -> vector<16x1xf32>
    %cst_177 = arith.constant dense<0.000000e+00> : vector<32x32xf32>
    %350 = tpu.matmul %296, %327, %cst_177 {dimension_numbers = #tpu.dot_dimension_numbers<[1], [0], [0], [1], [0, 0, 1, 1], [], []>} : vector<32x32xf32>, vector<32x32xf32>, vector<32x32xf32> -> vector<32x32xf32>
    %cst_178 = arith.constant dense<0.000000e+00> : vector<16x32xf32>
    %351 = tpu.matmul %322, %327, %cst_178 {dimension_numbers = #tpu.dot_dimension_numbers<[1], [0], [0], [1], [0, 0, 1, 1], [], []>} : vector<16x32xf32>, vector<32x32xf32>, vector<16x32xf32> -> vector<16x32xf32>
    %cst_179 = arith.constant dense<0.000000e+00> : vector<16x32xf32>
    %352 = tpu.matmul %340, %350, %cst_179 {dimension_numbers = #tpu.dot_dimension_numbers<[1], [0], [0], [1], [0, 0, 1, 1], [], []>} : vector<16x32xf32>, vector<32x32xf32>, vector<16x32xf32> -> vector<16x32xf32>
    %cst_180 = arith.constant dense<0.000000e+00> : vector<16x32xf32>
    %353 = tpu.matmul %343, %351, %cst_180 {dimension_numbers = #tpu.dot_dimension_numbers<[1], [0], [0], [1], [0, 0, 1, 1], [], []>} : vector<16x16xf32>, vector<16x32xf32>, vector<16x32xf32> -> vector<16x32xf32>
    %354 = arith.addf %352, %353 : vector<16x32xf32>
    %355 = vector.broadcast %349 : vector<16x1xf32> to vector<16x32xf32>
    %356 = arith.mulf %354, %355 : vector<16x32xf32>
    %357 = arith.addf %323, %356 : vector<16x32xf32>
    %c1_181 = arith.constant 1 : index
    %c1_182 = arith.constant 1 : index
    %c0_183 = arith.constant 0 : index
    %c0_184 = arith.constant 0 : index
    %358 = vector.load %arg9[%c1_181, %c1_182, %c0_183, %c0_184] : memref<2x4x32x32xf32, #tpu.memory_space<vmem>>, vector<1x1x32x32xf32>
    %359 = vector.shape_cast %358 : vector<1x1x32x32xf32> to vector<32x32xf32>
    %c1_185 = arith.constant 1 : index
    %c1_186 = arith.constant 1 : index
    %c0_187 = arith.constant 0 : index
    %c0_188 = arith.constant 0 : index
    %360 = vector.load %arg10[%c1_185, %c1_186, %c0_187, %c0_188] : memref<2x4x32x32xf32, #tpu.memory_space<vmem>>, vector<1x1x32x32xf32>
    %361 = vector.shape_cast %360 : vector<1x1x32x32xf32> to vector<32x32xf32>
    %cst_189 = arith.constant dense<0.000000e+00> : vector<16x32xf32>
    %362 = tpu.matmul %322, %359, %cst_189 {dimension_numbers = #tpu.dot_dimension_numbers<[1], [0], [0], [1], [0, 0, 1, 1], [], []>} : vector<16x32xf32>, vector<32x32xf32>, vector<16x32xf32> -> vector<16x32xf32>
    "tpu.trace_start"() <{level = 10 : i32, message = "id,jd->ij"}> : () -> ()
    %cst_190 = arith.constant dense<0.000000e+00> : vector<16x32xf32>
    %363 = tpu.matmul %362, %296, %cst_190 {dimension_numbers = #tpu.dot_dimension_numbers<[1], [1], [0], [0], [0, 0, 1, 0], [], []>} : vector<16x32xf32>, vector<32x32xf32>, vector<16x32xf32> -> vector<16x32xf32>
    "tpu.trace_stop"() : () -> ()
    %364 = arith.addf %363, %5 : vector<16x32xf32>
    "tpu.trace_start"() <{level = 10 : i32, message = "id,jd->ij"}> : () -> ()
    %cst_191 = arith.constant dense<0.000000e+00> : vector<16x16xf32>
    %365 = tpu.matmul %362, %322, %cst_191 {dimension_numbers = #tpu.dot_dimension_numbers<[1], [1], [0], [0], [0, 0, 1, 0], [], []>} : vector<16x32xf32>, vector<16x32xf32>, vector<16x16xf32> -> vector<16x16xf32>
    "tpu.trace_stop"() : () -> ()
    %366 = arith.addf %365, %6 : vector<16x16xf32>
    %cst_192 = arith.constant dense<0xFF800000> : vector<16xf32>
    %367 = vector.multi_reduction <maximumf>, %364, %cst_192 [1] : vector<16x32xf32> to vector<16xf32>
    %368 = vector.shape_cast %367 : vector<16xf32> to vector<16x1xf32>
    %cst_193 = arith.constant dense<0xFF800000> : vector<16xf32>
    %369 = vector.multi_reduction <maximumf>, %366, %cst_193 [1] : vector<16x16xf32> to vector<16xf32>
    %370 = vector.shape_cast %369 : vector<16xf32> to vector<16x1xf32>
    %371 = arith.maximumf %368, %370 : vector<16x1xf32>
    %372 = vector.broadcast %371 : vector<16x1xf32> to vector<16x32xf32>
    %373 = arith.subf %364, %372 : vector<16x32xf32>
    %374 = math.exp %373 : vector<16x32xf32>
    %375 = vector.broadcast %371 : vector<16x1xf32> to vector<16x16xf32>
    %376 = arith.subf %366, %375 : vector<16x16xf32>
    %377 = math.exp %376 : vector<16x16xf32>
    %cst_194 = arith.constant dense<0.000000e+00> : vector<16xf32>
    %378 = vector.multi_reduction <add>, %374, %cst_194 [1] : vector<16x32xf32> to vector<16xf32>
    %379 = vector.shape_cast %378 : vector<16xf32> to vector<16x1xf32>
    %cst_195 = arith.constant dense<0.000000e+00> : vector<16xf32>
    %380 = vector.multi_reduction <add>, %377, %cst_195 [1] : vector<16x16xf32> to vector<16xf32>
    %381 = vector.shape_cast %380 : vector<16xf32> to vector<16x1xf32>
    %382 = arith.addf %379, %381 : vector<16x1xf32>
    %383 = tpu.reciprocal %382 {approx = true} : vector<16x1xf32> -> vector<16x1xf32>
    %cst_196 = arith.constant dense<0.000000e+00> : vector<32x32xf32>
    %384 = tpu.matmul %296, %361, %cst_196 {dimension_numbers = #tpu.dot_dimension_numbers<[1], [0], [0], [1], [0, 0, 1, 1], [], []>} : vector<32x32xf32>, vector<32x32xf32>, vector<32x32xf32> -> vector<32x32xf32>
    %cst_197 = arith.constant dense<0.000000e+00> : vector<16x32xf32>
    %385 = tpu.matmul %322, %361, %cst_197 {dimension_numbers = #tpu.dot_dimension_numbers<[1], [0], [0], [1], [0, 0, 1, 1], [], []>} : vector<16x32xf32>, vector<32x32xf32>, vector<16x32xf32> -> vector<16x32xf32>
    %cst_198 = arith.constant dense<0.000000e+00> : vector<16x32xf32>
    %386 = tpu.matmul %374, %384, %cst_198 {dimension_numbers = #tpu.dot_dimension_numbers<[1], [0], [0], [1], [0, 0, 1, 1], [], []>} : vector<16x32xf32>, vector<32x32xf32>, vector<16x32xf32> -> vector<16x32xf32>
    %cst_199 = arith.constant dense<0.000000e+00> : vector<16x32xf32>
    %387 = tpu.matmul %377, %385, %cst_199 {dimension_numbers = #tpu.dot_dimension_numbers<[1], [0], [0], [1], [0, 0, 1, 1], [], []>} : vector<16x16xf32>, vector<16x32xf32>, vector<16x32xf32> -> vector<16x32xf32>
    %388 = arith.addf %386, %387 : vector<16x32xf32>
    %389 = vector.broadcast %383 : vector<16x1xf32> to vector<16x32xf32>
    %390 = arith.mulf %388, %389 : vector<16x32xf32>
    %391 = arith.addf %357, %390 : vector<16x32xf32>
    %c1_200 = arith.constant 1 : index
    %c2_201 = arith.constant 2 : index
    %c0_202 = arith.constant 0 : index
    %c0_203 = arith.constant 0 : index
    %392 = vector.load %arg9[%c1_200, %c2_201, %c0_202, %c0_203] : memref<2x4x32x32xf32, #tpu.memory_space<vmem>>, vector<1x1x32x32xf32>
    %393 = vector.shape_cast %392 : vector<1x1x32x32xf32> to vector<32x32xf32>
    %c1_204 = arith.constant 1 : index
    %c2_205 = arith.constant 2 : index
    %c0_206 = arith.constant 0 : index
    %c0_207 = arith.constant 0 : index
    %394 = vector.load %arg10[%c1_204, %c2_205, %c0_206, %c0_207] : memref<2x4x32x32xf32, #tpu.memory_space<vmem>>, vector<1x1x32x32xf32>
    %395 = vector.shape_cast %394 : vector<1x1x32x32xf32> to vector<32x32xf32>
    %cst_208 = arith.constant dense<0.000000e+00> : vector<16x32xf32>
    %396 = tpu.matmul %322, %393, %cst_208 {dimension_numbers = #tpu.dot_dimension_numbers<[1], [0], [0], [1], [0, 0, 1, 1], [], []>} : vector<16x32xf32>, vector<32x32xf32>, vector<16x32xf32> -> vector<16x32xf32>
    "tpu.trace_start"() <{level = 10 : i32, message = "id,jd->ij"}> : () -> ()
    %cst_209 = arith.constant dense<0.000000e+00> : vector<16x32xf32>
    %397 = tpu.matmul %396, %296, %cst_209 {dimension_numbers = #tpu.dot_dimension_numbers<[1], [1], [0], [0], [0, 0, 1, 0], [], []>} : vector<16x32xf32>, vector<32x32xf32>, vector<16x32xf32> -> vector<16x32xf32>
    "tpu.trace_stop"() : () -> ()
    %398 = arith.addf %397, %5 : vector<16x32xf32>
    "tpu.trace_start"() <{level = 10 : i32, message = "id,jd->ij"}> : () -> ()
    %cst_210 = arith.constant dense<0.000000e+00> : vector<16x16xf32>
    %399 = tpu.matmul %396, %322, %cst_210 {dimension_numbers = #tpu.dot_dimension_numbers<[1], [1], [0], [0], [0, 0, 1, 0], [], []>} : vector<16x32xf32>, vector<16x32xf32>, vector<16x16xf32> -> vector<16x16xf32>
    "tpu.trace_stop"() : () -> ()
    %400 = arith.addf %399, %6 : vector<16x16xf32>
    %cst_211 = arith.constant dense<0xFF800000> : vector<16xf32>
    %401 = vector.multi_reduction <maximumf>, %398, %cst_211 [1] : vector<16x32xf32> to vector<16xf32>
    %402 = vector.shape_cast %401 : vector<16xf32> to vector<16x1xf32>
    %cst_212 = arith.constant dense<0xFF800000> : vector<16xf32>
    %403 = vector.multi_reduction <maximumf>, %400, %cst_212 [1] : vector<16x16xf32> to vector<16xf32>
    %404 = vector.shape_cast %403 : vector<16xf32> to vector<16x1xf32>
    %405 = arith.maximumf %402, %404 : vector<16x1xf32>
    %406 = vector.broadcast %405 : vector<16x1xf32> to vector<16x32xf32>
    %407 = arith.subf %398, %406 : vector<16x32xf32>
    %408 = math.exp %407 : vector<16x32xf32>
    %409 = vector.broadcast %405 : vector<16x1xf32> to vector<16x16xf32>
    %410 = arith.subf %400, %409 : vector<16x16xf32>
    %411 = math.exp %410 : vector<16x16xf32>
    %cst_213 = arith.constant dense<0.000000e+00> : vector<16xf32>
    %412 = vector.multi_reduction <add>, %408, %cst_213 [1] : vector<16x32xf32> to vector<16xf32>
    %413 = vector.shape_cast %412 : vector<16xf32> to vector<16x1xf32>
    %cst_214 = arith.constant dense<0.000000e+00> : vector<16xf32>
    %414 = vector.multi_reduction <add>, %411, %cst_214 [1] : vector<16x16xf32> to vector<16xf32>
    %415 = vector.shape_cast %414 : vector<16xf32> to vector<16x1xf32>
    %416 = arith.addf %413, %415 : vector<16x1xf32>
    %417 = tpu.reciprocal %416 {approx = true} : vector<16x1xf32> -> vector<16x1xf32>
    %cst_215 = arith.constant dense<0.000000e+00> : vector<32x32xf32>
    %418 = tpu.matmul %296, %395, %cst_215 {dimension_numbers = #tpu.dot_dimension_numbers<[1], [0], [0], [1], [0, 0, 1, 1], [], []>} : vector<32x32xf32>, vector<32x32xf32>, vector<32x32xf32> -> vector<32x32xf32>
    %cst_216 = arith.constant dense<0.000000e+00> : vector<16x32xf32>
    %419 = tpu.matmul %322, %395, %cst_216 {dimension_numbers = #tpu.dot_dimension_numbers<[1], [0], [0], [1], [0, 0, 1, 1], [], []>} : vector<16x32xf32>, vector<32x32xf32>, vector<16x32xf32> -> vector<16x32xf32>
    %cst_217 = arith.constant dense<0.000000e+00> : vector<16x32xf32>
    %420 = tpu.matmul %408, %418, %cst_217 {dimension_numbers = #tpu.dot_dimension_numbers<[1], [0], [0], [1], [0, 0, 1, 1], [], []>} : vector<16x32xf32>, vector<32x32xf32>, vector<16x32xf32> -> vector<16x32xf32>
    %cst_218 = arith.constant dense<0.000000e+00> : vector<16x32xf32>
    %421 = tpu.matmul %411, %419, %cst_218 {dimension_numbers = #tpu.dot_dimension_numbers<[1], [0], [0], [1], [0, 0, 1, 1], [], []>} : vector<16x16xf32>, vector<16x32xf32>, vector<16x32xf32> -> vector<16x32xf32>
    %422 = arith.addf %420, %421 : vector<16x32xf32>
    %423 = vector.broadcast %417 : vector<16x1xf32> to vector<16x32xf32>
    %424 = arith.mulf %422, %423 : vector<16x32xf32>
    %425 = arith.addf %391, %424 : vector<16x32xf32>
    %c1_219 = arith.constant 1 : index
    %c3_220 = arith.constant 3 : index
    %c0_221 = arith.constant 0 : index
    %c0_222 = arith.constant 0 : index
    %426 = vector.load %arg9[%c1_219, %c3_220, %c0_221, %c0_222] : memref<2x4x32x32xf32, #tpu.memory_space<vmem>>, vector<1x1x32x32xf32>
    %427 = vector.shape_cast %426 : vector<1x1x32x32xf32> to vector<32x32xf32>
    %c1_223 = arith.constant 1 : index
    %c3_224 = arith.constant 3 : index
    %c0_225 = arith.constant 0 : index
    %c0_226 = arith.constant 0 : index
    %428 = vector.load %arg10[%c1_223, %c3_224, %c0_225, %c0_226] : memref<2x4x32x32xf32, #tpu.memory_space<vmem>>, vector<1x1x32x32xf32>
    %429 = vector.shape_cast %428 : vector<1x1x32x32xf32> to vector<32x32xf32>
    %cst_227 = arith.constant dense<0.000000e+00> : vector<16x32xf32>
    %430 = tpu.matmul %322, %427, %cst_227 {dimension_numbers = #tpu.dot_dimension_numbers<[1], [0], [0], [1], [0, 0, 1, 1], [], []>} : vector<16x32xf32>, vector<32x32xf32>, vector<16x32xf32> -> vector<16x32xf32>
    "tpu.trace_start"() <{level = 10 : i32, message = "id,jd->ij"}> : () -> ()
    %cst_228 = arith.constant dense<0.000000e+00> : vector<16x32xf32>
    %431 = tpu.matmul %430, %296, %cst_228 {dimension_numbers = #tpu.dot_dimension_numbers<[1], [1], [0], [0], [0, 0, 1, 0], [], []>} : vector<16x32xf32>, vector<32x32xf32>, vector<16x32xf32> -> vector<16x32xf32>
    "tpu.trace_stop"() : () -> ()
    %432 = arith.addf %431, %5 : vector<16x32xf32>
    "tpu.trace_start"() <{level = 10 : i32, message = "id,jd->ij"}> : () -> ()
    %cst_229 = arith.constant dense<0.000000e+00> : vector<16x16xf32>
    %433 = tpu.matmul %430, %322, %cst_229 {dimension_numbers = #tpu.dot_dimension_numbers<[1], [1], [0], [0], [0, 0, 1, 0], [], []>} : vector<16x32xf32>, vector<16x32xf32>, vector<16x16xf32> -> vector<16x16xf32>
    "tpu.trace_stop"() : () -> ()
    %434 = arith.addf %433, %6 : vector<16x16xf32>
    %cst_230 = arith.constant dense<0xFF800000> : vector<16xf32>
    %435 = vector.multi_reduction <maximumf>, %432, %cst_230 [1] : vector<16x32xf32> to vector<16xf32>
    %436 = vector.shape_cast %435 : vector<16xf32> to vector<16x1xf32>
    %cst_231 = arith.constant dense<0xFF800000> : vector<16xf32>
    %437 = vector.multi_reduction <maximumf>, %434, %cst_231 [1] : vector<16x16xf32> to vector<16xf32>
    %438 = vector.shape_cast %437 : vector<16xf32> to vector<16x1xf32>
    %439 = arith.maximumf %436, %438 : vector<16x1xf32>
    %440 = vector.broadcast %439 : vector<16x1xf32> to vector<16x32xf32>
    %441 = arith.subf %432, %440 : vector<16x32xf32>
    %442 = math.exp %441 : vector<16x32xf32>
    %443 = vector.broadcast %439 : vector<16x1xf32> to vector<16x16xf32>
    %444 = arith.subf %434, %443 : vector<16x16xf32>
    %445 = math.exp %444 : vector<16x16xf32>
    %cst_232 = arith.constant dense<0.000000e+00> : vector<16xf32>
    %446 = vector.multi_reduction <add>, %442, %cst_232 [1] : vector<16x32xf32> to vector<16xf32>
    %447 = vector.shape_cast %446 : vector<16xf32> to vector<16x1xf32>
    %cst_233 = arith.constant dense<0.000000e+00> : vector<16xf32>
    %448 = vector.multi_reduction <add>, %445, %cst_233 [1] : vector<16x16xf32> to vector<16xf32>
    %449 = vector.shape_cast %448 : vector<16xf32> to vector<16x1xf32>
    %450 = arith.addf %447, %449 : vector<16x1xf32>
    %451 = tpu.reciprocal %450 {approx = true} : vector<16x1xf32> -> vector<16x1xf32>
    %cst_234 = arith.constant dense<0.000000e+00> : vector<32x32xf32>
    %452 = tpu.matmul %296, %429, %cst_234 {dimension_numbers = #tpu.dot_dimension_numbers<[1], [0], [0], [1], [0, 0, 1, 1], [], []>} : vector<32x32xf32>, vector<32x32xf32>, vector<32x32xf32> -> vector<32x32xf32>
    %cst_235 = arith.constant dense<0.000000e+00> : vector<16x32xf32>
    %453 = tpu.matmul %322, %429, %cst_235 {dimension_numbers = #tpu.dot_dimension_numbers<[1], [0], [0], [1], [0, 0, 1, 1], [], []>} : vector<16x32xf32>, vector<32x32xf32>, vector<16x32xf32> -> vector<16x32xf32>
    %cst_236 = arith.constant dense<0.000000e+00> : vector<16x32xf32>
    %454 = tpu.matmul %442, %452, %cst_236 {dimension_numbers = #tpu.dot_dimension_numbers<[1], [0], [0], [1], [0, 0, 1, 1], [], []>} : vector<16x32xf32>, vector<32x32xf32>, vector<16x32xf32> -> vector<16x32xf32>
    %cst_237 = arith.constant dense<0.000000e+00> : vector<16x32xf32>
    %455 = tpu.matmul %445, %453, %cst_237 {dimension_numbers = #tpu.dot_dimension_numbers<[1], [0], [0], [1], [0, 0, 1, 1], [], []>} : vector<16x16xf32>, vector<16x32xf32>, vector<16x32xf32> -> vector<16x32xf32>
    %456 = arith.addf %454, %455 : vector<16x32xf32>
    %457 = vector.broadcast %451 : vector<16x1xf32> to vector<16x32xf32>
    %458 = arith.mulf %456, %457 : vector<16x32xf32>
    %459 = arith.addf %425, %458 : vector<16x32xf32>
    %460 = arith.addf %459, %270 : vector<16x32xf32>
    %c1_238 = arith.constant 1 : index
    %c0_239 = arith.constant 0 : index
    %c0_240 = arith.constant 0 : index
    %461 = vector.load %arg11[%c1_238, %c0_239, %c0_240] : memref<2x1x32xf32, #tpu.memory_space<vmem>>, vector<1x1x32xf32>
    %462 = vector.shape_cast %461 : vector<1x1x32xf32> to vector<1x32xf32>
    %c1_241 = arith.constant 1 : index
    %c0_242 = arith.constant 0 : index
    %c0_243 = arith.constant 0 : index
    %463 = vector.load %arg12[%c1_241, %c0_242, %c0_243] : memref<2x1x32xf32, #tpu.memory_space<vmem>>, vector<1x1x32xf32>
    %464 = vector.shape_cast %463 : vector<1x1x32xf32> to vector<1x32xf32>
    %cst_244 = arith.constant dense<0.000000e+00> : vector<16xf32>
    %465 = vector.multi_reduction <add>, %460, %cst_244 [1] : vector<16x32xf32> to vector<16xf32>
    %466 = vector.shape_cast %465 : vector<16xf32> to vector<16x1xf32>
    %cst_245 = arith.constant 3.200000e+01 : f32
    %467 = vector.broadcast %cst_245 : f32 to vector<16x1xf32>
    %468 = arith.divf %466, %467 : vector<16x1xf32>
    %469 = vector.broadcast %468 : vector<16x1xf32> to vector<16x32xf32>
    %470 = arith.subf %460, %469 : vector<16x32xf32>
    %471 = arith.mulf %470, %470 : vector<16x32xf32>
    %cst_246 = arith.constant dense<0.000000e+00> : vector<16xf32>
    %472 = vector.multi_reduction <add>, %471, %cst_246 [1] : vector<16x32xf32> to vector<16xf32>
    %473 = vector.shape_cast %472 : vector<16xf32> to vector<16x1xf32>
    %cst_247 = arith.constant 3.200000e+01 : f32
    %474 = vector.broadcast %cst_247 : f32 to vector<16x1xf32>
    %475 = arith.divf %473, %474 : vector<16x1xf32>
    %476 = vector.broadcast %468 : vector<16x1xf32> to vector<16x32xf32>
    %477 = arith.subf %460, %476 : vector<16x32xf32>
    %cst_248 = arith.constant 9.99999974E-6 : f32
    %478 = vector.broadcast %cst_248 : f32 to vector<16x1xf32>
    %479 = arith.addf %475, %478 : vector<16x1xf32>
    %480 = math.rsqrt %479 : vector<16x1xf32>
    %481 = vector.broadcast %480 : vector<16x1xf32> to vector<16x32xf32>
    %482 = arith.mulf %477, %481 : vector<16x32xf32>
    %483 = vector.broadcast %462 : vector<1x32xf32> to vector<16x32xf32>
    %484 = arith.mulf %482, %483 : vector<16x32xf32>
    %485 = vector.broadcast %464 : vector<1x32xf32> to vector<16x32xf32>
    %486 = arith.addf %484, %485 : vector<16x32xf32>
    %c1_249 = arith.constant 1 : index
    %c0_250 = arith.constant 0 : index
    %c0_251 = arith.constant 0 : index
    %487 = vector.load %arg13[%c1_249, %c0_250, %c0_251] : memref<2x32x128xf32, #tpu.memory_space<vmem>>, vector<1x32x128xf32>
    %488 = vector.shape_cast %487 : vector<1x32x128xf32> to vector<32x128xf32>
    %cst_252 = arith.constant dense<0.000000e+00> : vector<16x128xf32>
    %489 = tpu.matmul %486, %488, %cst_252 {dimension_numbers = #tpu.dot_dimension_numbers<[1], [0], [0], [1], [0, 0, 1, 1], [], []>} : vector<16x32xf32>, vector<32x128xf32>, vector<16x128xf32> -> vector<16x128xf32>
    %cst_253 = arith.constant 5.000000e-01 : f32
    %490 = vector.broadcast %cst_253 : f32 to vector<16x128xf32>
    %491 = arith.mulf %490, %489 : vector<16x128xf32>
    %cst_254 = arith.constant 0.707106769 : f32
    %492 = vector.broadcast %cst_254 : f32 to vector<16x128xf32>
    %493 = arith.mulf %489, %492 : vector<16x128xf32>
    %cst_255 = arith.constant 0.000000e+00 : f32
    %494 = vector.broadcast %cst_255 : f32 to vector<16x128xf32>
    %495 = arith.cmpf oge, %493, %494 : vector<16x128xf32>
    %cst_256 = arith.constant 1.000000e+00 : f32
    %cst_257 = arith.constant -1.000000e+00 : f32
    %496 = vector.broadcast %cst_256 : f32 to vector<16x128xf32>
    %497 = vector.broadcast %cst_257 : f32 to vector<16x128xf32>
    %498 = arith.select %495, %496, %497 : vector<16x128xi1>, vector<16x128xf32>
    %499 = math.absf %493 : vector<16x128xf32>
    %cst_258 = arith.constant 0.327591091 : f32
    %500 = vector.broadcast %cst_258 : f32 to vector<16x128xf32>
    %501 = arith.mulf %500, %499 : vector<16x128xf32>
    %cst_259 = arith.constant 1.000000e+00 : f32
    %502 = vector.broadcast %cst_259 : f32 to vector<16x128xf32>
    %503 = arith.addf %502, %501 : vector<16x128xf32>
    %cst_260 = arith.constant 1.000000e+00 : f32
    %504 = vector.broadcast %cst_260 : f32 to vector<16x128xf32>
    %505 = arith.divf %504, %503 : vector<16x128xf32>
    %cst_261 = arith.constant 1.06140542 : f32
    %506 = vector.broadcast %cst_261 : f32 to vector<16x128xf32>
    %507 = arith.mulf %506, %505 : vector<16x128xf32>
    %cst_262 = arith.constant -1.45315206 : f32
    %508 = vector.broadcast %cst_262 : f32 to vector<16x128xf32>
    %509 = arith.addf %507, %508 : vector<16x128xf32>
    %510 = arith.mulf %509, %505 : vector<16x128xf32>
    %cst_263 = arith.constant 1.42141378 : f32
    %511 = vector.broadcast %cst_263 : f32 to vector<16x128xf32>
    %512 = arith.addf %510, %511 : vector<16x128xf32>
    %513 = arith.mulf %512, %505 : vector<16x128xf32>
    %cst_264 = arith.constant -0.284496725 : f32
    %514 = vector.broadcast %cst_264 : f32 to vector<16x128xf32>
    %515 = arith.addf %513, %514 : vector<16x128xf32>
    %516 = arith.mulf %515, %505 : vector<16x128xf32>
    %cst_265 = arith.constant 0.254829586 : f32
    %517 = vector.broadcast %cst_265 : f32 to vector<16x128xf32>
    %518 = arith.addf %516, %517 : vector<16x128xf32>
    %519 = arith.mulf %518, %505 : vector<16x128xf32>
    %cst_266 = arith.constant 0.000000e+00 : f32
    %520 = vector.broadcast %cst_266 : f32 to vector<16x128xf32>
    %521 = arith.subf %520, %499 : vector<16x128xf32>
    %522 = arith.mulf %521, %499 : vector<16x128xf32>
    %523 = math.exp %522 : vector<16x128xf32>
    %524 = arith.mulf %519, %523 : vector<16x128xf32>
    %cst_267 = arith.constant 1.000000e+00 : f32
    %525 = vector.broadcast %cst_267 : f32 to vector<16x128xf32>
    %526 = arith.subf %525, %524 : vector<16x128xf32>
    %527 = arith.mulf %498, %526 : vector<16x128xf32>
    %cst_268 = arith.constant 1.000000e+00 : f32
    %528 = vector.broadcast %cst_268 : f32 to vector<16x128xf32>
    %529 = arith.addf %528, %527 : vector<16x128xf32>
    %530 = arith.mulf %491, %529 : vector<16x128xf32>
    %c1_269 = arith.constant 1 : index
    %c0_270 = arith.constant 0 : index
    %c0_271 = arith.constant 0 : index
    %531 = vector.load %arg14[%c1_269, %c0_270, %c0_271] : memref<2x128x32xf32, #tpu.memory_space<vmem>>, vector<1x128x32xf32>
    %532 = vector.shape_cast %531 : vector<1x128x32xf32> to vector<128x32xf32>
    %cst_272 = arith.constant dense<0.000000e+00> : vector<16x32xf32>
    %533 = tpu.matmul %530, %532, %cst_272 {dimension_numbers = #tpu.dot_dimension_numbers<[1], [0], [0], [1], [0, 0, 1, 1], [], []>} : vector<16x128xf32>, vector<128x32xf32>, vector<16x32xf32> -> vector<16x32xf32>
    %534 = arith.addf %533, %460 : vector<16x32xf32>
    %c0_273 = arith.constant 0 : index
    %c0_274 = arith.constant 0 : index
    %535 = vector.load %arg15[%c0_273, %c0_274] : memref<1x32xf32, #tpu.memory_space<vmem>>, vector<1x32xf32>
    %c0_275 = arith.constant 0 : index
    %c0_276 = arith.constant 0 : index
    %536 = vector.load %arg16[%c0_275, %c0_276] : memref<1x32xf32, #tpu.memory_space<vmem>>, vector<1x32xf32>
    %cst_277 = arith.constant dense<0.000000e+00> : vector<16xf32>
    %537 = vector.multi_reduction <add>, %534, %cst_277 [1] : vector<16x32xf32> to vector<16xf32>
    %538 = vector.shape_cast %537 : vector<16xf32> to vector<16x1xf32>
    %cst_278 = arith.constant 3.200000e+01 : f32
    %539 = vector.broadcast %cst_278 : f32 to vector<16x1xf32>
    %540 = arith.divf %538, %539 : vector<16x1xf32>
    %541 = vector.broadcast %540 : vector<16x1xf32> to vector<16x32xf32>
    %542 = arith.subf %534, %541 : vector<16x32xf32>
    %543 = arith.mulf %542, %542 : vector<16x32xf32>
    %cst_279 = arith.constant dense<0.000000e+00> : vector<16xf32>
    %544 = vector.multi_reduction <add>, %543, %cst_279 [1] : vector<16x32xf32> to vector<16xf32>
    %545 = vector.shape_cast %544 : vector<16xf32> to vector<16x1xf32>
    %cst_280 = arith.constant 3.200000e+01 : f32
    %546 = vector.broadcast %cst_280 : f32 to vector<16x1xf32>
    %547 = arith.divf %545, %546 : vector<16x1xf32>
    %548 = vector.broadcast %540 : vector<16x1xf32> to vector<16x32xf32>
    %549 = arith.subf %534, %548 : vector<16x32xf32>
    %cst_281 = arith.constant 9.99999974E-6 : f32
    %550 = vector.broadcast %cst_281 : f32 to vector<16x1xf32>
    %551 = arith.addf %547, %550 : vector<16x1xf32>
    %552 = math.rsqrt %551 : vector<16x1xf32>
    %553 = vector.broadcast %552 : vector<16x1xf32> to vector<16x32xf32>
    %554 = arith.mulf %549, %553 : vector<16x32xf32>
    %555 = vector.broadcast %535 : vector<1x32xf32> to vector<16x32xf32>
    %556 = arith.mulf %554, %555 : vector<16x32xf32>
    %557 = vector.broadcast %536 : vector<1x32xf32> to vector<16x32xf32>
    %558 = arith.addf %556, %557 : vector<16x32xf32>
    %c0_282 = arith.constant 0 : index
    %c0_283 = arith.constant 0 : index
    %559 = vector.load %arg17[%c0_282, %c0_283] : memref<16x32xf32, #tpu.memory_space<vmem>>, vector<16x32xf32>
    tpu.vector_store %arg17[%c0_282, %c0_283], %558 {strides = array<i32>} : memref<16x32xf32, #tpu.memory_space<vmem>>, vector<16x32xf32>,
    return
  }
}

</mosaic_0001>

<bundles_post_ra>
// kernel: perceiver_resampler.1
= control target key start
LH: loop header
LB: loop body
LE: loop exit
PB: predicated region body
PF: predicated region fallthrough
CT: control target
= control target key end

     0   :  { %s9466_s0 = inlined_call_operand.vmem [shape: f32[32,32], index: 0, kind: input, shape index: {}]   ;;  %s9467_s1 = inlined_call_operand.vmem [shape: f32[1,32], index: 1, kind: input, shape index: {}]   ;;  %s9468_s2 = inlined_call_operand.hbm [shape: f32[16,32], index: 2, kind: input, shape index: {}]   ;;  %s9469_s3 = inlined_call_operand.hbm [shape: f32[16,32], index: 3, kind: input, shape index: {}]   ;;  %s9470_s4 = inlined_call_operand.hbm [shape: f32[16,16], index: 4, kind: input, shape index: {}]   ;;  %s9471_s5 = inlined_call_operand.vmem [shape: f32[2,1,32], index: 5, kind: input, shape index: {}]   ;;  %s9472_s6 = inlined_call_operand.vmem [shape: f32[2,1,32], index: 6, kind: input, shape index: {}]   ;;  %s9473_s7 = inlined_call_operand.hbm [shape: f32[2,1,32], index: 7, kind: input, shape index: {}]   ;;  %s9474_s8 = inlined_call_operand.hbm [shape: f32[2,1,32], index: 8, kind: input, shape index: {}]   ;;  %s9475_s9 = inlined_call_operand.vmem [shape: f32[2,4,32,32], index: 9, kind: input, shape index: {}]   ;;  %s9476_s10 = inlined_call_operand.hbm [shape: f32[2,4,32,32], index: 10, kind: input, shape index: {}]   ;;  %s9477_s11 = inlined_call_operand.hbm [shape: f32[2,1,32], index: 11, kind: input, shape index: {}]   ;;  %s9478_s12 = inlined_call_operand.hbm [shape: f32[2,1,32], index: 12, kind: input, shape index: {}]   ;;  %s9479_s13 = inlined_call_operand.vmem [shape: f32[2,32,128], index: 13, kind: input, shape index: {}]   ;;  %s9480_s14 = inlined_call_operand.vmem [shape: f32[2,128,32], index: 14, kind: input, shape index: {}]   ;;  %s9481_s15 = inlined_call_operand.vmem [shape: f32[1,32], index: 15, kind: input, shape index: {}]   ;;  %s9482_s16 = inlined_call_operand.vmem [shape: f32[1,32], index: 16, kind: input, shape index: {}]   ;;  %s9483_s17 = inlined_call_operand.hbm [shape: f32[16,32], index: 17, kind: output, shape index: {}]  }
   0x1   :  { %9489 = sst [smem:[#allocation23_spill]] %s9466_s0 }
   0x2   :  { %9490 = sst [smem:[#allocation24_spill]] %s9467_s1 }
   0x3   :  { %22 = vsyncpa [#allocation3], 0 }
   0x4   :  { %23 = vsyncpa [#allocation6], 0 }
   0x5   :  { %24 = vsyncpa [#allocation9], 0 }
   0x6   :  { %25 = vsyncpa [#allocation12], 0 }
   0x7   :  { %26 = vsyncpa [#allocation15], 0 }
   0x8   :  { %27 = vsyncpa [#allocation4], 0  ;;  %s8086_s24 = smov [#allocation5]   ;;  %s8087_s26 = smov [#allocation8]  }
   0x9   :  { %s49_s25 = sshll.u32 %s8086_s24, 4  ;;  %s77_s27 = sshll.u32 %s8087_s26, 4  ;;  %s50_s25 = int_to_ptr.vmem [resolvable:$true] %s49_s25  ;;  %s8190_s27 = int_to_ptr.vmem [resolvable:$true] %s77_s27 }
   0xa   :  { %s7876_s0 = scalar_lea.hbm %s9469_s3, 256 }
   0xb   :  { %p7877_p0 = scmp.ne.s32.totalorder %s9469_s3, %s7876_s0  ;;  %p7880_p1 = scmp.lt.u32.totalorder %s7876_s0, %s9469_s3 }
   0xd   :  { %p7882_p2 = pnand %p7880_p1, %p7877_p0 }
   0xf   :  { %7885 = shalt.err (!%p7882_p2)
}
  0x10   :  { %s7886_s20 = scalar_lea.vmem %s50_s25, 256  ;;  %p7891_p4 = scmp.lt.s32.totalorder %s50_s25, %s50_s25 }
  0x11   :  { %p7887_p3 = scmp.ne.s32.totalorder %s50_s25, %s7886_s20  ;;  %p7892_p5 = scmp.lt.s32.totalorder %s7886_s20, %s7886_s20 }
  0x13   :  { %p7893_p6 = por %p7892_p5, %p7891_p4 }
  0x15   :  { %p7894_p7 = pnand %p7893_p6, %p7887_p3 }
  0x17   :  { %7897 = shalt.err (!%p7894_p7)
}
  0x18   :  { %s9485_s21 = smov 128   ;;  %s9487_s22 = smov 8  }
  0x19   :  { %55 = dma.hbm_to_vmem [thread:$0]  %s9469_s3, 256, %s50_s25, [#allocation6], %s9485_s21, %s9485_s21, %s9487_s22  }
  0x1a   :  { %s7898_s29 = scalar_lea.hbm %s9473_s7, 32 }
  0x1b   :  { %p7899_p8 = scmp.ne.s32.totalorder %s9473_s7, %s7898_s29  ;;  %p7902_p9 = scmp.lt.u32.totalorder %s7898_s29, %s9473_s7 }
  0x1d   :  { %p7904_p10 = pnand %p7902_p9, %p7899_p8 }
  0x1f   :  { %7907 = shalt.err (!%p7904_p10)
}
  0x20   :  { %s7908_s1 = scalar_lea.vmem %s8190_s27, 32  ;;  %p7913_p12 = scmp.lt.s32.totalorder %s8190_s27, %s8190_s27 }
  0x21   :  { %p7909_p11 = scmp.ne.s32.totalorder %s8190_s27, %s7908_s1  ;;  %p7914_p13 = scmp.lt.s32.totalorder %s7908_s1, %s7908_s1 }
  0x23   :  { %p7915_p0 = por %p7914_p13, %p7913_p12 }
  0x25   :  { %p7916_p1 = pnand %p7915_p0, %p7909_p11 }
  0x27   :  { %7919 = shalt.err (!%p7916_p1)
}
  0x28   :  { %s8090_s3 = smov 16   ;;  %s8091_s25 = smov 1  }
  0x29   :  { %83 = dma.hbm_to_vmem [thread:$0]  %s9473_s7, 32, %s8190_s27, [#allocation9], %s8090_s3, %s8090_s3, %s8091_s25  }
  0x2a   :  { %s8092_s24 = smov [#allocation11]   ;;  %s8093_s28 = smov [#allocation2]  }
  0x2b   :  { %s103_s26 = sshll.u32 %s8092_s24, 4  ;;  %s37_s29 = sshll.u32 %s8093_s28, 4  ;;  %s104_s26 = int_to_ptr.vmem [resolvable:$true] %s103_s26  ;;  %s8227_s29 = int_to_ptr.vmem [resolvable:$true] %s37_s29 }
  0x2c   :  { %s7920_s18 = scalar_lea.hbm %s9476_s10, 4096 }
  0x2d   :  { %p7921_p2 = scmp.ne.s32.totalorder %s9476_s10, %s7920_s18  ;;  %p7924_p3 = scmp.lt.u32.totalorder %s7920_s18, %s9476_s10 }
  0x2f   :  { %p7926_p4 = pnand %p7924_p3, %p7921_p2 }
  0x31   :  { %7929 = shalt.err (!%p7926_p4)
}
  0x32   :  { %s7930_s7 = scalar_lea.vmem %s104_s26, 4096  ;;  %p7935_p6 = scmp.lt.s32.totalorder %s104_s26, %s104_s26 }
  0x33   :  { %p7931_p5 = scmp.ne.s32.totalorder %s104_s26, %s7930_s7  ;;  %p7936_p7 = scmp.lt.s32.totalorder %s7930_s7, %s7930_s7 }
  0x35   :  { %p7937_p8 = por %p7936_p7, %p7935_p6 }
  0x37   :  { %p7938_p9 = pnand %p7937_p8, %p7931_p5 }
  0x39   :  { %7941 = shalt.err (!%p7938_p9)
}
  0x3a   :  { %s9491_s27 = smov 8   ;;  %s9492_s20 = smov 128  }
  0x3b   :  { %109 = dma.hbm_to_vmem [thread:$0]  %s9476_s10, 4096, %s104_s26, [#allocation12], %s9492_s20, %s9492_s20, %s9491_s27  }
  0x3c   :  { %s7942_s21 = scalar_lea.hbm %s9468_s2, 256 }
  0x3d   :  { %p7943_p10 = scmp.ne.s32.totalorder %s9468_s2, %s7942_s21  ;;  %p7946_p11 = scmp.lt.u32.totalorder %s7942_s21, %s9468_s2 }
  0x3f   :  { %p7948_p12 = pnand %p7946_p11, %p7943_p10 }
  0x41   :  { %7951 = shalt.err (!%p7948_p12)
}
  0x42   :  { %s7952_s1 = scalar_lea.vmem %s8227_s29, 256  ;;  %p7957_p0 = scmp.lt.s32.totalorder %s8227_s29, %s8227_s29 }
  0x43   :  { %p7953_p13 = scmp.ne.s32.totalorder %s8227_s29, %s7952_s1  ;;  %p7958_p1 = scmp.lt.s32.totalorder %s7952_s1, %s7952_s1 }
  0x45   :  { %p7959_p2 = por %p7958_p1, %p7957_p0 }
  0x47   :  { %p7960_p3 = pnand %p7959_p2, %p7953_p13 }
  0x49   :  { %7963 = shalt.err (!%p7960_p3)
}
  0x4a   :  { %43 = dma.hbm_to_vmem [thread:$0]  %s9468_s2, 256, %s8227_s29, [#allocation3], %s9492_s20, %s9492_s20, %s9491_s27  }
  0x4b   :  { %s8094_s7 = smov [#allocation7]   ;;  %s8095_s24 = smov [#allocation10]  }
  0x4c   :  { %s61_s23 = sshll.u32 %s8094_s7, 4  ;;  %s89_s28 = sshll.u32 %s8095_s24, 4  ;;  %s62_s23 = int_to_ptr.vmem [resolvable:$true] %s61_s23  ;;  %s8264_s28 = int_to_ptr.vmem [resolvable:$true] %s89_s28 }
  0x4d   :  { %s7964_s22 = scalar_lea.hbm %s9470_s4, 256 }
  0x4e   :  { %p7965_p4 = scmp.ne.s32.totalorder %s9470_s4, %s7964_s22  ;;  %p7968_p5 = scmp.lt.u32.totalorder %s7964_s22, %s9470_s4 }
  0x50   :  { %p7970_p6 = pnand %p7968_p5, %p7965_p4 }
  0x52   :  { %7973 = shalt.err (!%p7970_p6)
}
  0x53   :  { %s7974_s2 = scalar_lea.vmem %s62_s23, 256  ;;  %p7979_p8 = scmp.lt.s32.totalorder %s62_s23, %s62_s23 }
  0x54   :  { %p7975_p7 = scmp.ne.s32.totalorder %s62_s23, %s7974_s2  ;;  %p7980_p9 = scmp.lt.s32.totalorder %s7974_s2, %s7974_s2 }
  0x56   :  { %p7981_p10 = por %p7980_p9, %p7979_p8 }
  0x58   :  { %p7982_p11 = pnand %p7981_p10, %p7975_p7 }
  0x5a   :  { %7985 = shalt.err (!%p7982_p11)
}
  0x5b   :  { %67 = dma.hbm_to_vmem [thread:$0]  %s9470_s4, 256, %s62_s23, [#allocation6], %s9492_s20, %s9492_s20, %s9491_s27  }
  0x5c   :  { %s7986_s24 = scalar_lea.hbm %s9474_s8, 32 }
  0x5d   :  { %p7987_p12 = scmp.ne.s32.totalorder %s9474_s8, %s7986_s24  ;;  %p7990_p13 = scmp.lt.u32.totalorder %s7986_s24, %s9474_s8 }
  0x5f   :  { %p7992_p0 = pnand %p7990_p13, %p7987_p12 }
  0x61   :  { %7995 = shalt.err (!%p7992_p0)
}
  0x62   :  { %s7996_s18 = scalar_lea.vmem %s8264_s28, 32  ;;  %p8001_p2 = scmp.lt.s32.totalorder %s8264_s28, %s8264_s28 }
  0x63   :  { %p7997_p1 = scmp.ne.s32.totalorder %s8264_s28, %s7996_s18  ;;  %p8002_p3 = scmp.lt.s32.totalorder %s7996_s18, %s7996_s18 }
  0x65   :  { %p8003_p4 = por %p8002_p3, %p8001_p2 }
  0x67   :  { %p8004_p5 = pnand %p8003_p4, %p7997_p1 }
  0x69   :  { %8007 = shalt.err (!%p8004_p5)
}
  0x6a   :  { %95 = dma.hbm_to_vmem [thread:$0]  %s9474_s8, 32, %s8264_s28, [#allocation9], %s8090_s3, %s8090_s3, %s8091_s25  }
  0x6b   :  { %s8096_s19 = smov [#allocation13]   ;;  %s8097_s2 = smov [#allocation14]  }
  0x6c   :  { %s115_s1 = sshll.u32 %s8096_s19, 4  ;;  %s127_s29 = sshll.u32 %s8097_s2, 4  ;;  %s116_s1 = int_to_ptr.vmem [resolvable:$true] %s115_s1  ;;  %s8301_s29 = int_to_ptr.vmem [resolvable:$true] %s127_s29 }
  0x6d   :  { %s8008_s7 = scalar_lea.hbm %s9477_s11, 32 }
  0x6e   :  { %p8009_p6 = scmp.ne.s32.totalorder %s9477_s11, %s8008_s7  ;;  %p8012_p7 = scmp.lt.u32.totalorder %s8008_s7, %s9477_s11 }
  0x70   :  { %p8014_p8 = pnand %p8012_p7, %p8009_p6 }
  0x72   :  { %8017 = shalt.err (!%p8014_p8)
}
  0x73   :  { %s8018_s8 = scalar_lea.vmem %s116_s1, 32  ;;  %p8023_p10 = scmp.lt.s32.totalorder %s116_s1, %s116_s1 }
  0x74   :  { %p8019_p9 = scmp.ne.s32.totalorder %s116_s1, %s8018_s8  ;;  %p8024_p11 = scmp.lt.s32.totalorder %s8018_s8, %s8018_s8 }
  0x76   :  { %p8025_p12 = por %p8024_p11, %p8023_p10 }
  0x78   :  { %p8026_p13 = pnand %p8025_p12, %p8019_p9 }
  0x7a   :  { %8029 = shalt.err (!%p8026_p13)
}
  0x7b   :  { %121 = dma.hbm_to_vmem [thread:$0]  %s9477_s11, 32, %s116_s1, [#allocation12], %s8090_s3, %s8090_s3, %s8091_s25  }
  0x7c   :  { %s8030_s23 = scalar_lea.hbm %s9478_s12, 32 }
  0x7d   :  { %p8031_p0 = scmp.ne.s32.totalorder %s9478_s12, %s8030_s23  ;;  %p8034_p1 = scmp.lt.u32.totalorder %s8030_s23, %s9478_s12 }
  0x7f   :  { %p8036_p2 = pnand %p8034_p1, %p8031_p0 }
  0x81   :  { %8039 = shalt.err (!%p8036_p2)
}
  0x82   :  { %s8040_s7 = scalar_lea.vmem %s8301_s29, 32  ;;  %p8045_p4 = scmp.lt.s32.totalorder %s8301_s29, %s8301_s29 }
  0x83   :  { %p8041_p3 = scmp.ne.s32.totalorder %s8301_s29, %s8040_s7  ;;  %p8046_p5 = scmp.lt.s32.totalorder %s8040_s7, %s8040_s7 }
  0x85   :  { %p8047_p6 = por %p8046_p5, %p8045_p4 }
  0x87   :  { %p8048_p7 = pnand %p8047_p6, %p8041_p3 }
  0x89   :  { %8051 = shalt.err (!%p8048_p7)
}
  0x8a   :  { %133 = dma.hbm_to_vmem [thread:$0]  %s9478_s12, 32, %s8301_s29, [#allocation15], %s8090_s3, %s8090_s3, %s8091_s25  }
  0x8b   :  { %8074 = dma.done.wait [#allocation3], 256  }
  0x8c   :  { %8075 = vsyncadd [#allocation3], 4294967040 }
  0x8d   :  { %8076 = dma.done.wait [#allocation6], 512  }
  0x8e   :  { %8077 = vsyncadd [#allocation6], 4294966784 }
  0x8f   :  { %8078 = dma.done.wait [#allocation9], 64  }
  0x90   :  { %8079 = vsyncadd [#allocation9], 4294967232 }
  0x91   :  { %8080 = dma.done.wait [#allocation12], 4128  }
  0x92   :  { %8081 = vsyncadd [#allocation12], 4294963168 }
  0x93   :  { %8082 = dma.done.wait [#allocation15], 32  }
  0x94   :  { %8083 = vsyncadd [#allocation15], 4294967264  ;;  %vm189_vm0 = vcmask 261120   ;;  %v181_v0 = vld [vmem:[#allocation2] sm:$0xff]  ;;  %v182_v1 = vld [vmem:[#allocation2 + $0x8] sm:$0xff]  ;;  %s9493_s21 = sld [smem:[#allocation23_spill]] }
  0x95   :  { %v265_v3 = vsel %vm189_vm0, %v181_v0, 0.0  ;;  %s9494_s25 = sld [smem:[#allocation24_spill]]  ;;  %v268_v5 = vsel %vm189_vm0, %v182_v1, 0.0  ;;  %v307_v37 = vld [vmem:[%s9475_s9] sm:$0xff]  ;;  %v308_v38 = vld [vmem:[%s9475_s9 + $0x8] sm:$0xff]  ;;  %v309_v40 = vld [vmem:[%s9475_s9 + $0x10] sm:$0xff] }
  0x96   :  { %266 = vadd.xlane.f32.xlu0 %v265_v3  ;;  %v7188_v39 = vpack.c.bf16 %v308_v38, %v307_v37  ;;  %v310_v41 = vld [vmem:[%s9475_s9 + $0x18] sm:$0xff]  ;;  %v5910_v56 = vld [vmem:[#allocation8] ss:$0 sm:$0xff]  ;;  %v5911_v60 = vld [vmem:[#allocation10] ss:$0 sm:$0xff]  ;;  %vm570_vm2 = vcmask 130048  }
  0x97   :  { %v7192_v42 = vpack.c.bf16 %v310_v41, %v309_v40  ;;  %vm8393_vm1 = vmpackc.low %vm189_vm0, %vm189_vm0  ;;  %s8099_s29 = smov [#allocation16]  }
  0x98   :  { %7189 = vmatprep.subr.bf16.mxu0 %v7188_v39  ;;  %s5891_s22 = sshll.u32 %s8099_s29, 4  ;;  %s5892_s22 = int_to_ptr.vmem [resolvable:$true] %s5891_s22 }
  0x99   :  { %7191 = vmatpush3.bf16.msra.mxu0 %v7188_v39  ;;  %s8052_s8 = scalar_lea.vmem %s5892_s22, 256  ;;  %p8057_p9 = scmp.lt.s32.totalorder %s5892_s22, %s5892_s22 }
  0x9a   :  { %v166_v2 = vld [vmem:[%s9493_s21] sm:$0xff]  ;;  %v168_v7 = vld [vmem:[%s9493_s21 + $0x10] sm:$0xff]  ;;  %269 = vadd.xlane.f32.xlu0 %v268_v5  ;;  %v167_v17 = vld [vmem:[%s9493_s21 + $0x8] sm:$0xff]  ;;  %7193 = vmatprep.subr.bf16.mxu0 %v7192_v42  ;;  %p8053_p8 = scmp.ne.s32.totalorder %s5892_s22, %s8052_s8  ;;  %p8058_p10 = scmp.lt.s32.totalorder %s8052_s8, %s8052_s8 }
  0x9b   :  { %v5907_v4 = vld [vmem:[%s9494_s25] ss:$0 sm:$0xff]  ;;  %v169_v24 = vld [vmem:[%s9493_s21 + $0x18] sm:$0xff] }
  0x9c   :  { %v177_v6 = vadd.f32 %v5907_v4, %v166_v2  ;;  %v179_v9 = vadd.f32 %v5907_v4, %v168_v7  ;;  %v178_v22 = vadd.f32 %v5907_v4, %v167_v17  ;;  %v180_v29 = vadd.f32 %v5907_v4, %v169_v24  ;;  %v311_v7 = vld [vmem:[#allocation11] sm:$0xff]  ;;  %p8059_p11 = por %p8058_p10, %p8057_p9 }
  0x9d   :  { %7195 = vmatpush3.bf16.msra.mxu0 %v7192_v42  ;;  %v313_v42 = vld [vmem:[#allocation11 + $0x10] sm:$0xff] }
  0x9e   :  { %v190_v8 = vsel %vm189_vm0, %v177_v6, 0.0  ;;  %v196_v10 = vsel %vm189_vm0, %v179_v9, 0.0  ;;  %v193_v28 = vsel %vm189_vm0, %v178_v22, 0.0  ;;  %v199_v34 = vsel %vm189_vm0, %v180_v29, 0.0  ;;  %p8060_p12 = pnand %p8059_p11, %p8053_p8 }
  0x9f   :  { %191 = vadd.xlane.f32.xlu0 %v190_v8  ;;  %v312_v8 = vld [vmem:[#allocation11 + $0x8] sm:$0xff] }
  0xa3   :  { %197 = vadd.xlane.f32.xlu0 %v196_v10 }
 0x123   :  { %v267_v11 = vpop.xlane.xlu0 %266 }
 0x124   :  { %v271_v12 = vmul.f32 0.03125, %v267_v11 }
 0x126   :  { %v273_v13 = vsub.f32 %v181_v0, %v271_v12 }
 0x127   :  { %v270_v14 = vpop.xlane.xlu0 %269 }
 0x128   :  { %v272_v15 = vmul.f32 0.03125, %v270_v14  ;;  %v275_v16 = vmul.f32 %v273_v13, %v273_v13 }
 0x12a   :  { %v274_v18 = vsub.f32 %v182_v1, %v272_v15  ;;  %v277_v19 = vsel %vm189_vm0, %v275_v16, 0.0 }
 0x12b   :  { %278 = vadd.xlane.f32.xlu1 %v277_v19 }
 0x12c   :  { %v192_v20 = vpop.xlane.xlu0 %191  ;;  %v276_v21 = vmul.f32 %v274_v18, %v274_v18 }
 0x12d   :  { %v203_v23 = vmul.f32 0.03125, %v192_v20 }
 0x12e   :  { %v280_v25 = vsel %vm189_vm0, %v276_v21, 0.0 }
 0x12f   :  { %v8359_v26 = vsub.f32 %v177_v6, %v203_v23  ;;  %281 = vadd.xlane.f32.xlu1 %v280_v25  ;;  %v5908_v25 = vld [vmem:[%s9471_s5] ss:$0 sm:$0xff] }
 0x130   :  { %v198_v27 = vpop.xlane.xlu0 %197 }
 0x131   :  { %v211_v30 = vmul.f32 %v8359_v26, %v8359_v26  ;;  %v205_v31 = vmul.f32 0.03125, %v198_v27 }
 0x133   :  { %v215_v32 = vsel %vm189_vm0, %v211_v30, 0.0  ;;  %v8365_v33 = vsub.f32 %v179_v9, %v205_v31  ;;  %194 = vadd.xlane.f32.xlu1 %v193_v28  ;;  %v7214_v9 = vpack.c.bf16 %v312_v8, %v311_v7  ;;  %v5909_v31 = vld [vmem:[%s9472_s6] ss:$0 sm:$0xff] }
 0x134   :  { %216 = vadd.xlane.f32.xlu0 %v215_v32 }
 0x135   :  { %v213_v35 = vmul.f32 %v8365_v33, %v8365_v33 }
 0x137   :  { %v221_v36 = vsel %vm189_vm0, %v213_v35, 0.0  ;;  %200 = vadd.xlane.f32.xlu1 %v199_v34 }
 0x138   :  { %222 = vadd.xlane.f32.xlu0 %v221_v36 }
 0x1b8   :  { %v279_v43 = vpop.xlane.xlu1 %278 }
 0x1b9   :  { %v283_v44 = vmul.f32 0.03125, %v279_v43  ;;  %v314_v43 = vld [vmem:[#allocation11 + $0x18] sm:$0xff] }
 0x1bb   :  { %v285_v45 = vadd.f32 1e-05, %v283_v44 }
 0x1bc   :  { %v282_v46 = vpop.xlane.xlu1 %281 }
 0x1bd   :  { %7730 = vrsqrt.f32 %v285_v45  ;;  %v284_v47 = vmul.f32 0.03125, %v282_v46  ;;  %v7218_v46 = vpack.c.bf16 %v314_v43, %v313_v42 }
 0x1bf   :  { %v286_v48 = vadd.f32 1e-05, %v284_v47  ;;  %v5934_v47 = vld [vmem:[%s9475_s9 + $0x20] sm:$0xff] }
 0x1c0   :  { %v195_v49 = vpop.xlane.xlu1 %194 }
 0x1c1   :  { %7732 = vrsqrt.f32 %v286_v48  ;;  %v204_v50 = vmul.f32 0.03125, %v195_v49  ;;  %v217_v10 = vpop.xlane.xlu0 %216  ;;  %v5935_v48 = vld [vmem:[%s9475_s9 + $0x28] sm:$0xff] }
 0x1c2   :  { %v227_v11 = vmul.f32 0.03125, %v217_v10  ;;  %v7242_v49 = vpack.c.bf16 %v5935_v48, %v5934_v47 }
 0x1c3   :  { %v208_v51 = vsub.f32 %v178_v22, %v204_v50  ;;  %v5936_v50 = vld [vmem:[%s9475_s9 + $0x30] sm:$0xff] }
 0x1c4   :  { %v201_v52 = vpop.xlane.xlu1 %200 }
 0x1c5   :  { %v206_v53 = vmul.f32 0.03125, %v201_v52  ;;  %v212_v54 = vmul.f32 %v208_v51, %v208_v51  ;;  %v223_v12 = vpop.xlane.xlu0 %222 }
 0x1c6   :  { %v229_v14 = vmul.f32 0.03125, %v223_v12 }
 0x1c7   :  { %v7731_v55 = vpop.eup %7730  ;;  %v210_v57 = vsub.f32 %v180_v29, %v206_v53  ;;  %v218_v58 = vsel %vm189_vm0, %v212_v54, 0.0  ;;  %v939_v53 = vld [vmem:[#allocation11 + $0x20] sm:$0xff]  ;;  %v940_v54 = vld [vmem:[#allocation11 + $0x28] sm:$0xff] }
 0x1c8   :  { %v289_v59 = vmul.f32 %v7731_v55, %v273_v13  ;;  %219 = vadd.xlane.f32.xlu1 %v218_v58  ;;  %v231_v13 = vadd.f32 1e-05, %v227_v11  ;;  %v233_v15 = vadd.f32 1e-05, %v229_v14  ;;  %v8483_v55 = vpack.c.bf16 %v940_v54, %v939_v53 }
 0x1c9   :  { %v214_v61 = vmul.f32 %v210_v57, %v210_v57 }
 0x1ca   :  { %v297_v62 = vmul.f32 %v5910_v56, %v289_v59  ;;  %7734 = vrsqrt.f32 %v231_v13  ;;  %v8501_v59 = vld [vmem:[#allocation5] sm:$0xff] }
 0x1cb   :  { %v7733_v63 = vpop.eup %7732  ;;  %v224_v0 = vsel %vm189_vm0, %v214_v61, 0.0  ;;  %7736 = vrsqrt.f32 %v233_v15 }
 0x1cc   :  { %v8385_v1 = vadd.f32 %v5911_v60, %v297_v62  ;;  %v290_v2 = vmul.f32 %v7733_v63, %v274_v18  ;;  %225 = vadd.xlane.f32.xlu1 %v224_v0  ;;  %v8505_v63 = vld [vmem:[#allocation5 + $0x8] sm:$0xff]  ;;  %v8507_v0 = vld [vmem:[#allocation7 + $0x8] sm:$0xff] }
 0x1ce   :  { %v298_v3 = vmul.f32 %v5910_v56, %v290_v2  ;;  %6528 = vmatprep.mubr.msk.f32.mxu0 %vm189_vm0, %v8385_v1  ;;  %v941_v56 = vld [vmem:[#allocation11 + $0x30] sm:$0xff] }
 0x1d0   :  { %v8389_v4 = vadd.f32 %v5911_v60, %v298_v3  ;;  %v8503_v60 = vld [vmem:[#allocation7] sm:$0xff] }
 0x1d2   :  { %6529 = vmatmul.mubr.msk.f32.vlgmr.msra.gmra.mrb[0].mxu0 %vm189_vm0, %v8389_v4  ;;  %v8401_v6 = vpack.c.bf16 %v8389_v4, %v8385_v1 }
 0x1d4   :  { %7210 = vmatprep.subr.msk.bf16.mxu0 %vm8393_vm1, %v8401_v6  ;;  %v7735_v22 = vpop.eup %7734 }
 0x1d5   :  { %7213 = vmatpush3.bf16.xpose.msk.msra.mxu0 %vm8393_vm1, %v8401_v6  ;;  %v8410_v23 = vmul.f32 %v7735_v22, %v8359_v26  ;;  %v7737_v24 = vpop.eup %7736 }
 0x1d6   :  { %7215 = vmatprep.subr.bf16.mxu0 %v7214_v9  ;;  %v8417_v29 = vmul.f32 %v7737_v24, %v8365_v33 }
 0x1d7   :  { %v249_v28 = vmul.f32 %v5908_v25, %v8410_v23 }
 0x1d8   :  { %v251_v35 = vmul.f32 %v5908_v25, %v8417_v29 }
 0x1d9   :  { %v8425_v34 = vadd.f32 %v5909_v31, %v249_v28 }
 0x1da   :  { %v8437_v39 = vadd.f32 %v5909_v31, %v251_v35 }
 0x255   :  { %v220_v16 = vpop.xlane.xlu1 %219 }
 0x256   :  { %v228_v17 = vmul.f32 0.03125, %v220_v16 }
 0x258   :  { %v232_v18 = vadd.f32 1e-05, %v228_v17 }
 0x259   :  { %v226_v19 = vpop.xlane.xlu1 %225 }
 0x25a   :  { %7738 = vrsqrt.f32 %v232_v18  ;;  %v230_v20 = vmul.f32 0.03125, %v226_v19 }
 0x25c   :  { %v234_v21 = vadd.f32 1e-05, %v230_v20 }
 0x25e   :  { %7740 = vrsqrt.f32 %v234_v21 }
 0x264   :  { %v7739_v27 = vpop.eup %7738 }
 0x265   :  { %v8419_v30 = vmul.f32 %v7739_v27, %v208_v51  ;;  %v5937_v51 = vld [vmem:[%s9475_s9 + $0x38] sm:$0xff] }
 0x266   :  { %v7246_v52 = vpack.c.bf16 %v5937_v51, %v5936_v50 }
 0x267   :  { %v250_v26 = vmul.f32 %v5908_v25, %v8419_v30 }
 0x268   :  { %v7741_v32 = vpop.eup %7740 }
 0x269   :  { %v8428_v36 = vadd.f32 %v5909_v31, %v250_v26  ;;  %v8430_v37 = vmul.f32 %v7741_v32, %v210_v57  ;;  %v942_v57 = vld [vmem:[#allocation11 + $0x38] sm:$0xff] }
 0x26a   :  { %v8490_v58 = vpack.c.bf16 %v942_v57, %v941_v56 }
 0x26b   :  { %v8434_v33 = vpack.c.bf16 %v8428_v36, %v8425_v34  ;;  %v252_v38 = vmul.f32 %v5908_v25, %v8430_v37 }
 0x26d   :  { %v8439_v40 = vadd.f32 %v5909_v31, %v252_v38  ;;  %7198 = vmatprep.subr.msk.bf16.mxu1 %vm8393_vm1, %v8434_v33 }
 0x26e   :  { %7201 = vmatpush3.bf16.xpose.msk.msra.mxu1 %vm8393_vm1, %v8434_v33 }
 0x26f   :  { %v8449_v41 = vpack.c.bf16 %v8439_v40, %v8437_v39 }
 0x271   :  { %7204 = vmatprep.subr.msk.bf16.mxu1 %vm8393_vm1, %v8449_v41 }
 0x276   :  { %7207 = vmatpush3.bf16.xpose.msk.msra.mxu1 %vm8393_vm1, %v8449_v41 }
 0x277   :  { %7223 = vmatprep.subr.bf16.mxu1 %v7214_v9 }
 0x2a5   :  { %v6530_v44 = vpop.f32.mrb[0].mxu0 }
 0x2a6   :  { %v387_v45 = vpop.f32.mrb[1].mxu0 }
 0x2a7   :  { %6539 = vmatprep.mubr.msk.f32.mxu1 %vm189_vm0, %v387_v45  ;;  %6546 = vmatprep.mubr.msk.f32.mxu0 %vm189_vm0, %v387_v45 }
 0x2a8   :  { %6540 = vmatmul.mubr.msk.f32.vlgmr.msra.gmra.mrb[0].mxu1 %vm189_vm0, %v6530_v44  ;;  %6547 = vmatmul.mubr.msk.f32.vlgmr.msra.gmra.mrb[2].mxu0 %vm189_vm0, %v6530_v44 }
 0x2a9   :  { %7217 = vmatpush3.bf16.msra.mxu0 %v7214_v9  ;;  %7225 = vmatpush3.bf16.msra.mxu1 %v7214_v9 }
 0x2aa   :  { %6557 = vmatprep.mubr.msk.f32.mxu0 %vm189_vm0, %v8425_v34  ;;  %6571 = vmatprep.mubr.msk.f32.mxu1 %vm189_vm0, %v8385_v1 }
 0x2ab   :  { %7219 = vmatprep.subr.bf16.mxu0 %v7218_v46  ;;  %7227 = vmatprep.subr.bf16.mxu1 %v7218_v46 }
 0x2ad   :  { %7221 = vmatpush3.bf16.msra.mxu0 %v7218_v46  ;;  %7229 = vmatpush3.bf16.msra.mxu1 %v7218_v46 }
 0x2ae   :  { %7243 = vmatprep.subr.bf16.mxu0 %v7242_v49 }
 0x2b0   :  { %6558 = vmatmul.mubr.msk.f32.vlgmr.msra.gmra.mrb[4].mxu0 %vm189_vm0, %v8428_v36  ;;  %6572 = vmatmul.mubr.msk.f32.vlgmr.msra.gmra.mrb[2].mxu1 %vm189_vm0, %v8389_v4 }
 0x2b1   :  { %6560 = vmatprep.mubr.msk.f32.mxu0 %vm189_vm0, %v8437_v39  ;;  %7245 = vmatpush3.bf16.msra.mxu0 %v7242_v49 }
 0x2b2   :  { %7247 = vmatprep.subr.bf16.mxu0 %v7246_v52 }
 0x2b4   :  { %6561 = vmatmul.mubr.msk.f32.gmra.mrb[6].mxu0 %vm189_vm0, %v8439_v40 }
 0x2b5   :  { %7249 = vmatpush3.bf16.msra.mxu0 %v7246_v52  ;;  %6600 = vmatprep.mubr.msk.f32.mxu0 %vm189_vm0, %v8385_v1 }
 0x2b6   :  { %7277 = vmatprep.subr.bf16.mxu0 %v8483_v55 }
 0x2b8   :  { %6601 = vmatmul.mubr.msk.f32.vlgmr.msra.gmra.mrb[8].mxu0 %vm189_vm0, %v8389_v4 }
 0x2b9   :  { %7279 = vmatpush3.bf16.msra.mxu0 %v8483_v55  ;;  %6643 = vmatprep.mubr.msk.f32.mxu0 %vm189_vm0, %v8385_v1 }
 0x2ba   :  { %7281 = vmatprep.subr.bf16.mxu0 %v8490_v58 }
 0x2bd   :  { %7283 = vmatpush3.bf16.msra.mxu0 %v8490_v58 }
 0x2c0   :  { %6644 = vmatmul.mubr.msk.f32.vlgmr.msra.gmra.mrb[10].mxu0 %vm189_vm0, %v8389_v4 }
 0x37b   :  { %v6541_v61 = vpop.f32.mrb[0].mxu1  ;;  %v6548_v62 = vpop.f32.mrb[2].mxu0 }
 0x37c   :  { %v480_v2 = vpop.f32.mrb[1].mxu1  ;;  %v555_v3 = vpop.f32.mrb[3].mxu0  ;;  %v486_v9 = vadd.f32 %v6541_v61, %v8505_v63  ;;  %v561_v10 = vadd.f32 %v6548_v62, %v8507_v0  ;;  %v5960_v61 = vld [vmem:[%s9475_s9 + $0x40] sm:$0xff]  ;;  %v5961_v62 = vld [vmem:[%s9475_s9 + $0x48] sm:$0xff] }
 0x37d   :  { %v481_v7 = vadd.f32 %v480_v2, %v8501_v59  ;;  %v556_v8 = vadd.f32 %v555_v3, %v8503_v60  ;;  %v7296_v2 = vpack.c.bf16 %v5961_v62, %v5960_v61  ;;  %v5962_v3 = vld [vmem:[%s9475_s9 + $0x50] sm:$0xff] }
 0x37e   :  { %v574_v15 = vsel %vm570_vm2, %v561_v10, -inf  ;;  %v567_v16 = vsel %vm189_vm0, %v486_v9, -inf }
 0x37f   :  { %v571_v11 = vsel %vm570_vm2, %v556_v8, -inf  ;;  %v564_v12 = vsel %vm189_vm0, %v481_v7, -inf }
 0x380   :  { %572 = vmax.xlane.f32.xlu1 %v571_v11  ;;  %565 = vmax.xlane.f32.xlu0 %v564_v12 }
 0x383   :  { %v6559_v13 = vpop.f32.mrb[4].mxu0  ;;  %v6573_v14 = vpop.f32.mrb[2].mxu1 }
 0x384   :  { %v673_v17 = vpop.f32.mrb[5].mxu0  ;;  %v758_v18 = vpop.f32.mrb[3].mxu1  ;;  %575 = vmax.xlane.f32.xlu1 %v574_v15  ;;  %568 = vmax.xlane.f32.xlu0 %v567_v16 }
 0x385   :  { %v7234_v19 = vpack.c.bf16 %v6559_v13, %v673_v17  ;;  %v7230_v20 = vpack.c.bf16 %v6573_v14, %v758_v18 }
 0x387   :  { %v6562_v21 = vpop.f32.mrb[6].mxu0  ;;  %7231 = vmatprep.subr.bf16.mxu1 %v7230_v20 }
 0x388   :  { %v683_v22 = vpop.f32.mrb[7].mxu0  ;;  %7233 = vmatpush3.bf16.msra.mxu1 %v7230_v20 }
 0x389   :  { %v7238_v24 = vpack.c.bf16 %v6562_v21, %v683_v22  ;;  %7235 = vmatprep.subr.bf16.mxu1 %v7234_v19 }
 0x38b   :  { %v6602_v25 = vpop.f32.mrb[8].mxu0 }
 0x38c   :  { %v1009_v27 = vpop.f32.mrb[9].mxu0 }
 0x393   :  { %v6645_v28 = vpop.f32.mrb[10].mxu0 }
 0x394   :  { %v1367_v31 = vpop.f32.mrb[11].mxu0 }
 0x395   :  { %v7284_v26 = vpack.c.bf16 %v6645_v28, %v1367_v31 }
 0x397   :  { %7285 = vmatprep.subr.bf16.mxu0 %v7284_v26 }
 0x398   :  { %7287 = vmatpush3.bf16.msra.mxu0 %v7284_v26 }
 0x40d   :  { %v573_v32 = vpop.xlane.xlu1 %572  ;;  %v566_v35 = vpop.xlane.xlu0 %565 }
 0x40e   :  { %v577_v38 = vmax.f32 %v566_v35, %v573_v32  ;;  %v1550_v35 = vld [vmem:[#allocation11 + $0x50] sm:$0xff] }
 0x410   :  { %v585_v42 = vsub.f32 %v556_v8, %v577_v38  ;;  %v579_v45 = vsub.f32 %v481_v7, %v577_v38  ;;  %v5963_v7 = vld [vmem:[%s9475_s9 + $0x58] sm:$0xff]  ;;  %v1551_v38 = vld [vmem:[#allocation11 + $0x58] sm:$0xff] }
 0x411   :  { %v576_v43 = vpop.xlane.xlu1 %575  ;;  %v569_v44 = vpop.xlane.xlu0 %568  ;;  %v7300_v8 = vpack.c.bf16 %v5963_v7, %v5962_v3 }
 0x412   :  { %v587_v46 = vmul.f32 1.442695, %v585_v42  ;;  %v578_v47 = vmax.f32 %v569_v44, %v576_v43  ;;  %v581_v49 = vmul.f32 1.442695, %v579_v45  ;;  %v7326_v44 = vpack.c.bf16 %v1551_v38, %v1550_v35 }
 0x414   :  { %v586_v48 = vsub.f32 %v561_v10, %v578_v47  ;;  %7742 = vpow2.f32 %v587_v46  ;;  %v580_v51 = vsub.f32 %v486_v9, %v578_v47 }
 0x416   :  { %v589_v50 = vmul.f32 1.442695, %v586_v48  ;;  %v583_v52 = vmul.f32 1.442695, %v580_v51 }
 0x418   :  { %7744 = vpow2.f32 %v589_v50 }
 0x419   :  { %7746 = vpow2.f32 %v581_v49 }
 0x41a   :  { %7748 = vpow2.f32 %v583_v52 }
 0x41e   :  { %v8517_v53 = vpop.eup %7742 }
 0x41f   :  { %6578 = vmatprep.mubr.msk.f32.mxu1 %vm570_vm2, %v8517_v53 }
 0x422   :  { %v8521_v54 = vpop.eup %7744 }
 0x423   :  { %v8523_v56 = vpop.eup %7746  ;;  %6579 = vmatmul.mubr.msk.f32.vlgmr.msra.gmra.mrb[4].mxu1 %vm570_vm2, %v8521_v54 }
 0x424   :  { %7237 = vmatpush3.bf16.msra.mxu1 %v7234_v19  ;;  %6589 = vmatprep.mubr.msk.f32.mxu1 %vm189_vm0, %v8523_v56  ;;  %v8532_v57 = vpop.eup %7748 }
 0x425   :  { %7239 = vmatprep.subr.bf16.mxu1 %v7238_v24 }
 0x428   :  { %7241 = vmatpush3.bf16.msra.mxu1 %v7238_v24 }
 0x429   :  { %7252 = vmatprep.subr.msk.bf16.mxu1 %vm8393_vm1, %v8434_v33 }
 0x42b   :  { %6590 = vmatmul.mubr.msk.f32.vlgmr.msra.gmra.mrb[4].mxu1 %vm189_vm0, %v8532_v57 }
 0x42c   :  { %6611 = vmatprep.mubr.msk.f32.mxu1 %vm189_vm0, %v1009_v27 }
 0x431   :  { %7255 = vmatpush3.bf16.xpose.msk.msra.mxu1 %vm8393_vm1, %v8434_v33 }
 0x432   :  { %7258 = vmatprep.subr.msk.bf16.mxu1 %vm8393_vm1, %v8449_v41 }
 0x439   :  { %7261 = vmatpush3.bf16.xpose.msk.msra.mxu1 %vm8393_vm1, %v8449_v41 }
 0x43a   :  { %7264 = vmatprep.subr.msk.bf16.mxu1 %vm8393_vm1, %v8401_v6 }
 0x440   :  { %6612 = vmatmul.mubr.msk.f32.vlgmr.msra.gmra.mrb[6].mxu1 %vm189_vm0, %v6602_v25 }
 0x441   :  { %7267 = vmatpush3.bf16.xpose.msk.msra.mxu1 %vm8393_vm1, %v8401_v6  ;;  %6618 = vmatprep.mubr.msk.f32.mxu1 %vm189_vm0, %v1009_v27 }
 0x442   :  { %7269 = vmatprep.subr.bf16.mxu1 %v8483_v55 }
 0x448   :  { %6619 = vmatmul.mubr.msk.f32.vlgmr.msra.gmra.mrb[8].mxu1 %vm189_vm0, %v6602_v25 }
 0x449   :  { %7271 = vmatpush3.bf16.msra.mxu1 %v8483_v55  ;;  %6629 = vmatprep.mubr.msk.f32.mxu1 %vm189_vm0, %v8425_v34  ;;  %v1548_v55 = vld [vmem:[#allocation11 + $0x40] sm:$0xff] }
 0x44a   :  { %7273 = vmatprep.subr.bf16.mxu1 %v8490_v58 }
 0x44d   :  { %7275 = vmatpush3.bf16.msra.mxu1 %v8490_v58  ;;  %v1549_v58 = vld [vmem:[#allocation11 + $0x48] sm:$0xff] }
 0x44e   :  { %7297 = vmatprep.subr.bf16.mxu1 %v7296_v2  ;;  %v8595_v9 = vpack.c.bf16 %v1549_v58, %v1548_v55 }
 0x450   :  { %6630 = vmatmul.mubr.msk.f32.vlgmr.msra.gmra.mrb[10].mxu1 %vm189_vm0, %v8428_v36 }
 0x451   :  { %6632 = vmatprep.mubr.msk.f32.mxu1 %vm189_vm0, %v8437_v39  ;;  %7299 = vmatpush3.bf16.msra.mxu1 %v7296_v2 }
 0x452   :  { %7301 = vmatprep.subr.bf16.mxu1 %v7300_v8 }
 0x454   :  { %6633 = vmatmul.mubr.msk.f32.gmra.mrb[12].mxu1 %vm189_vm0, %v8439_v40 }
 0x455   :  { %7303 = vmatpush3.bf16.msra.mxu1 %v7300_v8  ;;  %6672 = vmatprep.mubr.msk.f32.mxu1 %vm189_vm0, %v8385_v1 }
 0x456   :  { %7306 = vmatprep.subr.msk.bf16.mxu1 %vm8393_vm1, %v8434_v33 }
 0x458   :  { %6673 = vmatmul.mubr.msk.f32.vlgmr.msra.gmra.mrb[14].mxu1 %vm189_vm0, %v8389_v4 }
 0x45e   :  { %7309 = vmatpush3.bf16.xpose.msk.msra.mxu1 %vm8393_vm1, %v8434_v33 }
 0x45f   :  { %7312 = vmatprep.subr.msk.bf16.mxu1 %vm8393_vm1, %v8449_v41 }
 0x466   :  { %7315 = vmatpush3.bf16.xpose.msk.msra.mxu1 %vm8393_vm1, %v8449_v41 }
 0x467   :  { %7331 = vmatprep.subr.bf16.mxu1 %v8595_v9 }
 0x4fe   :  { %v8598_v10 = vpop.f32.mrb[4].mxu1 }
 0x4ff   :  { %v8600_v11 = vpop.f32.mrb[5].mxu1 }
 0x513   :  { %v6613_v12 = vpop.f32.mrb[6].mxu1 }
 0x514   :  { %v1090_v13 = vpop.f32.mrb[7].mxu1  ;;  %v1096_v15 = vadd.f32 %v6613_v12, %v8505_v63 }
 0x515   :  { %v1091_v14 = vadd.f32 %v1090_v13, %v8501_v59 }
 0x516   :  { %v1177_v18 = vsel %vm189_vm0, %v1096_v15, -inf }
 0x517   :  { %v1174_v16 = vsel %vm189_vm0, %v1091_v14, -inf }
 0x518   :  { %1175 = vmax.xlane.f32.xlu0 %v1174_v16 }
 0x51b   :  { %v6620_v17 = vpop.f32.mrb[8].mxu1 }
 0x51c   :  { %v1165_v19 = vpop.f32.mrb[9].mxu1  ;;  %1178 = vmax.xlane.f32.xlu0 %v1177_v18  ;;  %v1171_v21 = vadd.f32 %v6620_v17, %v8507_v0  ;;  %v5988_v17 = vld [vmem:[%s9475_s9 + $0x70] sm:$0xff]  ;;  %v5989_v18 = vld [vmem:[%s9475_s9 + $0x78] sm:$0xff] }
 0x51d   :  { %v1166_v20 = vadd.f32 %v1165_v19, %v8503_v60  ;;  %v7354_v19 = vpack.c.bf16 %v5989_v18, %v5988_v17 }
 0x51e   :  { %v1183_v25 = vsel %vm570_vm2, %v1171_v21, -inf }
 0x51f   :  { %v1180_v22 = vsel %vm570_vm2, %v1166_v20, -inf }
 0x520   :  { %1181 = vmax.xlane.f32.xlu1 %v1180_v22 }
 0x523   :  { %v6631_v24 = vpop.f32.mrb[10].mxu1 }
 0x524   :  { %v1282_v27 = vpop.f32.mrb[11].mxu1  ;;  %1184 = vmax.xlane.f32.xlu1 %v1183_v25 }
 0x525   :  { %v7288_v28 = vpack.c.bf16 %v6631_v24, %v1282_v27 }
 0x527   :  { %v6634_v31 = vpop.f32.mrb[12].mxu1  ;;  %7289 = vmatprep.subr.bf16.mxu0 %v7288_v28 }
 0x528   :  { %v1292_v26 = vpop.f32.mrb[13].mxu1 }
 0x529   :  { %v7292_v32 = vpack.c.bf16 %v6634_v31, %v1292_v26  ;;  %v2157_v31 = vld [vmem:[#allocation11 + $0x60] sm:$0xff]  ;;  %v2158_v26 = vld [vmem:[#allocation11 + $0x68] sm:$0xff] }
 0x52b   :  { %v6674_v42 = vpop.f32.mrb[14].mxu1 }
 0x52c   :  { %v1618_v43 = vpop.f32.mrb[15].mxu1 }
 0x52d   :  { %6683 = vmatprep.mubr.msk.f32.mxu1 %vm189_vm0, %v1618_v43 }
 0x52e   :  { %6684 = vmatmul.mubr.msk.f32.vlgmr.msra.gmra.mrb[16].mxu1 %vm189_vm0, %v6674_v42 }
 0x52f   :  { %7333 = vmatpush3.bf16.msra.mxu1 %v8595_v9  ;;  %6715 = vmatprep.mubr.msk.f32.mxu1 %vm189_vm0, %v8385_v1 }
 0x530   :  { %7335 = vmatprep.subr.bf16.mxu1 %v7326_v44 }
 0x533   :  { %7337 = vmatpush3.bf16.msra.mxu1 %v7326_v44 }
 0x536   :  { %6716 = vmatmul.mubr.msk.f32.vlgmr.msra.gmra.mrb[18].mxu1 %vm189_vm0, %v8389_v4 }
 0x5a5   :  { %v1176_v45 = vpop.xlane.xlu0 %1175 }
 0x5a9   :  { %v1179_v49 = vpop.xlane.xlu0 %1178 }
 0x5ad   :  { %v1182_v46 = vpop.xlane.xlu1 %1181 }
 0x5ae   :  { %v1186_v47 = vmax.f32 %v1176_v45, %v1182_v46 }
 0x5b0   :  { %v1194_v48 = vsub.f32 %v1166_v20, %v1186_v47  ;;  %v1188_v51 = vsub.f32 %v1091_v14, %v1186_v47  ;;  %v5986_v14 = vld [vmem:[%s9475_s9 + $0x60] sm:$0xff] }
 0x5b1   :  { %v1185_v50 = vpop.xlane.xlu1 %1184 }
 0x5b2   :  { %v1196_v52 = vmul.f32 1.442695, %v1194_v48  ;;  %v1187_v61 = vmax.f32 %v1179_v49, %v1185_v50  ;;  %v1190_v2 = vmul.f32 1.442695, %v1188_v51 }
 0x5b4   :  { %v1195_v62 = vsub.f32 %v1171_v21, %v1187_v61  ;;  %7750 = vpow2.f32 %v1196_v52  ;;  %v1189_v7 = vsub.f32 %v1096_v15, %v1187_v61  ;;  %v5987_v15 = vld [vmem:[%s9475_s9 + $0x68] sm:$0xff] }
 0x5b5   :  { %v7350_v16 = vpack.c.bf16 %v5987_v15, %v5986_v14  ;;  %v2159_v61 = vld [vmem:[#allocation11 + $0x70] sm:$0xff] }
 0x5b6   :  { %v1198_v3 = vmul.f32 1.442695, %v1195_v62  ;;  %v1192_v8 = vmul.f32 1.442695, %v1189_v7  ;;  %v2160_v62 = vld [vmem:[#allocation11 + $0x78] sm:$0xff] }
 0x5b7   :  { %v7380_v7 = vpack.c.bf16 %v2160_v62, %v2159_v61  ;;  %v597_v62 = vsel %vm570_vm2, %v8517_v53, 0.0 }
 0x5b8   :  { %7752 = vpow2.f32 %v1198_v3 }
 0x5b9   :  { %7754 = vpow2.f32 %v1190_v2 }
 0x5ba   :  { %7756 = vpow2.f32 %v1192_v8 }
 0x5be   :  { %v8617_v55 = vpop.eup %7750 }
 0x5bf   :  { %6650 = vmatprep.mubr.msk.f32.mxu0 %vm570_vm2, %v8617_v55 }
 0x5c2   :  { %v8621_v58 = vpop.eup %7752 }
 0x5c3   :  { %v8623_v12 = vpop.eup %7754  ;;  %6651 = vmatmul.mubr.msk.f32.vlgmr.msra.gmra.mrb[12].mxu0 %vm570_vm2, %v8621_v58 }
 0x5c4   :  { %7291 = vmatpush3.bf16.msra.mxu0 %v7288_v28  ;;  %6661 = vmatprep.mubr.msk.f32.mxu0 %vm189_vm0, %v8623_v12  ;;  %v8632_v13 = vpop.eup %7756 }
 0x5c5   :  { %7293 = vmatprep.subr.bf16.mxu0 %v7292_v32 }
 0x5c8   :  { %7295 = vmatpush3.bf16.msra.mxu0 %v7292_v32 }
 0x5c9   :  { %7318 = vmatprep.subr.msk.bf16.mxu0 %vm8393_vm1, %v8401_v6 }
 0x5cb   :  { %6662 = vmatmul.mubr.msk.f32.vlgmr.msra.gmra.mrb[12].mxu0 %vm189_vm0, %v8632_v13 }
 0x5cc   :  { %6690 = vmatprep.mubr.msk.f32.mxu0 %vm189_vm0, %v1618_v43 }
 0x5d1   :  { %7321 = vmatpush3.bf16.xpose.msk.msra.mxu0 %vm8393_vm1, %v8401_v6 }
 0x5d2   :  { %7323 = vmatprep.subr.bf16.mxu0 %v8595_v9 }
 0x5d8   :  { %6691 = vmatmul.mubr.msk.f32.vlgmr.msra.gmra.mrb[14].mxu0 %vm189_vm0, %v6674_v42 }
 0x5d9   :  { %7325 = vmatpush3.bf16.msra.mxu0 %v8595_v9  ;;  %6701 = vmatprep.mubr.msk.f32.mxu0 %vm189_vm0, %v8425_v34 }
 0x5da   :  { %7327 = vmatprep.subr.bf16.mxu0 %v7326_v44 }
 0x5dd   :  { %7329 = vmatpush3.bf16.msra.mxu0 %v7326_v44 }
 0x5de   :  { %7351 = vmatprep.subr.bf16.mxu0 %v7350_v16 }
 0x5e0   :  { %6702 = vmatmul.mubr.msk.f32.vlgmr.msra.gmra.mrb[16].mxu0 %vm189_vm0, %v8428_v36 }
 0x5e1   :  { %6704 = vmatprep.mubr.msk.f32.mxu0 %vm189_vm0, %v8437_v39  ;;  %7353 = vmatpush3.bf16.msra.mxu0 %v7350_v16 }
 0x5e2   :  { %7355 = vmatprep.subr.bf16.mxu0 %v7354_v19 }
 0x5e4   :  { %6705 = vmatmul.mubr.msk.f32.gmra.mrb[18].mxu0 %vm189_vm0, %v8439_v40 }
 0x5e5   :  { %7357 = vmatpush3.bf16.msra.mxu0 %v7354_v19  ;;  %6744 = vmatprep.mubr.msk.f32.mxu0 %vm189_vm0, %v8385_v1 }
 0x5e6   :  { %7360 = vmatprep.subr.msk.bf16.mxu0 %vm8393_vm1, %v8434_v33 }
 0x5e8   :  { %6745 = vmatmul.mubr.msk.f32.vlgmr.msra.gmra.mrb[20].mxu0 %vm189_vm0, %v8389_v4 }
 0x5ee   :  { %7363 = vmatpush3.bf16.xpose.msk.msra.mxu0 %vm8393_vm1, %v8434_v33 }
 0x5ef   :  { %7366 = vmatprep.subr.msk.bf16.mxu0 %vm8393_vm1, %v8449_v41 }
 0x5f6   :  { %7369 = vmatpush3.bf16.xpose.msk.msra.mxu0 %vm8393_vm1, %v8449_v41  ;;  %v8683_v41 = vpack.c.bf16 %v2158_v26, %v2157_v31 }
 0x5f8   :  { %7385 = vmatprep.subr.bf16.mxu0 %v8683_v41 }
 0x601   :  { %v6685_v9 = vpop.f32.mrb[16].mxu1 }
 0x602   :  { %v1699_v20 = vpop.f32.mrb[17].mxu1  ;;  %v1705_v22 = vadd.f32 %v6685_v9, %v8505_v63 }
 0x603   :  { %v1700_v21 = vadd.f32 %v1699_v20, %v8501_v59 }
 0x604   :  { %v1786_v33 = vsel %vm189_vm0, %v1705_v22, -inf }
 0x605   :  { %v1783_v24 = vsel %vm189_vm0, %v1700_v21, -inf }
 0x606   :  { %1784 = vmax.xlane.f32.xlu0 %v1783_v24 }
 0x609   :  { %v6717_v25 = vpop.f32.mrb[18].mxu1 }
 0x60a   :  { %v1976_v27 = vpop.f32.mrb[19].mxu1  ;;  %1787 = vmax.xlane.f32.xlu0 %v1786_v33 }
 0x60b   :  { %v7338_v28 = vpack.c.bf16 %v6717_v25, %v1976_v27 }
 0x60d   :  { %7339 = vmatprep.subr.bf16.mxu1 %v7338_v28 }
 0x60e   :  { %7341 = vmatpush3.bf16.msra.mxu1 %v7338_v28 }
 0x693   :  { %v1785_v8 = vpop.xlane.xlu0 %1784 }
 0x697   :  { %v1788_v17 = vpop.xlane.xlu0 %1787 }
 0x69e   :  { %v8686_v32 = vpop.f32.mrb[12].mxu0 }
 0x69f   :  { %v8688_v35 = vpop.f32.mrb[13].mxu0 }
 0x6ab   :  { %v6692_v38 = vpop.f32.mrb[14].mxu0 }
 0x6ac   :  { %v1774_v42 = vpop.f32.mrb[15].mxu0  ;;  %v1780_v44 = vadd.f32 %v6692_v38, %v8507_v0 }
 0x6ad   :  { %v1775_v43 = vadd.f32 %v1774_v42, %v8503_v60 }
 0x6ae   :  { %v1792_v47 = vsel %vm570_vm2, %v1780_v44, -inf }
 0x6af   :  { %v1789_v45 = vsel %vm570_vm2, %v1775_v43, -inf }
 0x6b0   :  { %1790 = vmax.xlane.f32.xlu1 %v1789_v45 }
 0x6b3   :  { %v6703_v46 = vpop.f32.mrb[16].mxu0 }
 0x6b4   :  { %v1891_v48 = vpop.f32.mrb[17].mxu0  ;;  %1793 = vmax.xlane.f32.xlu1 %v1792_v47 }
 0x6b5   :  { %v7342_v49 = vpack.c.bf16 %v6703_v46, %v1891_v48 }
 0x6b7   :  { %v6706_v50 = vpop.f32.mrb[18].mxu0  ;;  %7343 = vmatprep.subr.bf16.mxu1 %v7342_v49 }
 0x6b8   :  { %v1901_v51 = vpop.f32.mrb[19].mxu0 }
 0x6b9   :  { %v7346_v52 = vpack.c.bf16 %v6706_v50, %v1901_v51 }
 0x6bb   :  { %v6746_v2 = vpop.f32.mrb[20].mxu0 }
 0x6bc   :  { %v2227_v3 = vpop.f32.mrb[21].mxu0 }
 0x6bd   :  { %6755 = vmatprep.mubr.msk.f32.mxu0 %vm189_vm0, %v2227_v3 }
 0x6be   :  { %6756 = vmatmul.mubr.msk.f32.vlgmr.msra.gmra.mrb[22].mxu0 %vm189_vm0, %v6746_v2 }
 0x6bf   :  { %7387 = vmatpush3.bf16.msra.mxu0 %v8683_v41  ;;  %6787 = vmatprep.mubr.msk.f32.mxu0 %vm189_vm0, %v8385_v1 }
 0x6c0   :  { %7389 = vmatprep.subr.bf16.mxu0 %v7380_v7 }
 0x6c3   :  { %7391 = vmatpush3.bf16.msra.mxu0 %v7380_v7 }
 0x6c6   :  { %6788 = vmatmul.mubr.msk.f32.vlgmr.msra.gmra.mrb[24].mxu0 %vm189_vm0, %v8389_v4 }
 0x73d   :  { %v1791_v14 = vpop.xlane.xlu1 %1790 }
 0x73e   :  { %v1795_v15 = vmax.f32 %v1785_v8, %v1791_v14 }
 0x740   :  { %v1803_v16 = vsub.f32 %v1775_v43, %v1795_v15  ;;  %v1797_v19 = vsub.f32 %v1700_v21, %v1795_v15  ;;  %v1203_v43 = vsel %vm189_vm0, %v8632_v13, 0.0 }
 0x741   :  { %v1794_v18 = vpop.xlane.xlu1 %1793 }
 0x742   :  { %v1805_v9 = vmul.f32 1.442695, %v1803_v16  ;;  %v1796_v20 = vmax.f32 %v1788_v17, %v1794_v18  ;;  %v1799_v25 = vmul.f32 1.442695, %v1797_v19 }
 0x744   :  { %v1804_v24 = vsub.f32 %v1780_v44, %v1796_v20  ;;  %7758 = vpow2.f32 %v1805_v9  ;;  %v1798_v27 = vsub.f32 %v1705_v22, %v1796_v20 }
 0x746   :  { %v1807_v33 = vmul.f32 1.442695, %v1804_v24  ;;  %v1801_v1 = vmul.f32 1.442695, %v1798_v27 }
 0x748   :  { %7760 = vpow2.f32 %v1807_v33 }
 0x749   :  { %7762 = vpow2.f32 %v1799_v25 }
 0x74a   :  { %7764 = vpow2.f32 %v1801_v1 }
 0x74e   :  { %v8701_v28 = vpop.eup %7758 }
 0x74f   :  { %6722 = vmatprep.mubr.msk.f32.mxu1 %vm570_vm2, %v8701_v28  ;;  %v1815_v8 = vsel %vm570_vm2, %v8701_v28, 0.0 }
 0x752   :  { %v8705_v4 = vpop.eup %7760 }
 0x753   :  { %v7763_v31 = vpop.eup %7762  ;;  %6723 = vmatmul.mubr.msk.f32.vlgmr.msra.gmra.mrb[20].mxu1 %vm570_vm2, %v8705_v4  ;;  %v1818_v53 = vsel %vm570_vm2, %v8705_v4, 0.0 }
 0x754   :  { %7345 = vmatpush3.bf16.msra.mxu1 %v7342_v49  ;;  %6733 = vmatprep.mubr.msk.f32.mxu1 %vm189_vm0, %v7763_v31  ;;  %v7765_v21 = vpop.eup %7764  ;;  %v1809_v44 = vsel %vm189_vm0, %v7763_v31, 0.0 }
 0x755   :  { %7347 = vmatprep.subr.bf16.mxu1 %v7346_v52  ;;  %v1812_v45 = vsel %vm189_vm0, %v7765_v21, 0.0 }
 0x758   :  { %7349 = vmatpush3.bf16.msra.mxu1 %v7346_v52 }
 0x759   :  { %7372 = vmatprep.subr.msk.bf16.mxu1 %vm8393_vm1, %v8401_v6 }
 0x75b   :  { %6734 = vmatmul.mubr.msk.f32.vlgmr.msra.gmra.mrb[20].mxu1 %vm189_vm0, %v7765_v21 }
 0x75c   :  { %6762 = vmatprep.mubr.msk.f32.mxu1 %vm189_vm0, %v2227_v3  ;;  %v600_v3 = vsel %vm570_vm2, %v8521_v54, 0.0 }
 0x761   :  { %7375 = vmatpush3.bf16.xpose.msk.msra.mxu1 %vm8393_vm1, %v8401_v6 }
 0x762   :  { %7377 = vmatprep.subr.bf16.mxu1 %v8683_v41 }
 0x768   :  { %6763 = vmatmul.mubr.msk.f32.vlgmr.msra.gmra.mrb[22].mxu1 %vm189_vm0, %v6746_v2 }
 0x769   :  { %7379 = vmatpush3.bf16.msra.mxu1 %v8683_v41  ;;  %6773 = vmatprep.mubr.msk.f32.mxu1 %vm189_vm0, %v8425_v34 }
 0x76a   :  { %7381 = vmatprep.subr.bf16.mxu1 %v7380_v7 }
 0x76d   :  { %7383 = vmatpush3.bf16.msra.mxu1 %v7380_v7  ;;  %v1209_v7 = vsel %vm570_vm2, %v8621_v58, 0.0 }
 0x770   :  { %6774 = vmatmul.mubr.msk.f32.vlgmr.msra.gmra.mrb[24].mxu1 %vm189_vm0, %v8428_v36 }
 0x771   :  { %6776 = vmatprep.mubr.msk.f32.mxu1 %vm189_vm0, %v8437_v39 }
 0x774   :  { %6777 = vmatmul.mubr.msk.f32.gmra.mrb[26].mxu1 %vm189_vm0, %v8439_v40  ;;  %v591_v40 = vsel %vm189_vm0, %v8523_v56, 0.0 }
 0x791   :  { %v6757_v6 = vpop.f32.mrb[22].mxu0 }
 0x792   :  { %v2308_v22 = vpop.f32.mrb[23].mxu0  ;;  %v8731_v41 = vadd.f32 %v6757_v6, %v8505_v63  ;;  %v594_v63 = vsel %vm189_vm0, %v8532_v57, 0.0 }
 0x793   :  { %v2309_v26 = vadd.f32 %v2308_v22, %v8501_v59  ;;  %v1200_v59 = vsel %vm189_vm0, %v8623_v12, 0.0 }
 0x794   :  { %v2395_v36 = vsel %vm189_vm0, %v8731_v41, -inf }
 0x795   :  { %v2392_v34 = vsel %vm189_vm0, %v2309_v26, -inf }
 0x796   :  { %2393 = vmax.xlane.f32.xlu0 %v2392_v34 }
 0x799   :  { %v6789_v38 = vpop.f32.mrb[24].mxu0 }
 0x79a   :  { %v2585_v42 = vpop.f32.mrb[25].mxu0  ;;  %2396 = vmax.xlane.f32.xlu0 %v2395_v36 }
 0x79b   :  { %v7392_v39 = vpack.c.bf16 %v6789_v38, %v2585_v42 }
 0x79d   :  { %7393 = vmatprep.subr.bf16.mxu0 %v7392_v39 }
 0x79e   :  { %7395 = vmatpush3.bf16.msra.mxu0 %v7392_v39  ;;  %592 = vadd.xlane.f32.xlu0 %v591_v40 }
 0x7a2   :  { %1201 = vadd.xlane.f32.xlu0 %v1200_v59 }
 0x7a6   :  { %595 = vadd.xlane.f32.xlu0 %v594_v63 }
 0x7aa   :  { %1204 = vadd.xlane.f32.xlu0 %v1203_v43 }
 0x7ae   :  { %1810 = vadd.xlane.f32.xlu0 %v1809_v44 }
 0x7b2   :  { %1813 = vadd.xlane.f32.xlu0 %v1812_v45  ;;  %v6022_v45 = vld [vmem:[%s9475_s9 + $0x80] sm:$0xff] }
 0x823   :  { %v2394_v14 = vpop.xlane.xlu0 %2393 }
 0x827   :  { %v2397_v15 = vpop.xlane.xlu0 %2396 }
 0x82e   :  { %v8746_v56 = vpop.f32.mrb[20].mxu1 }
 0x82f   :  { %v8748_v46 = vpop.f32.mrb[21].mxu1 }
 0x83b   :  { %v6764_v12 = vpop.f32.mrb[22].mxu1 }
 0x83c   :  { %v2383_v47 = vpop.f32.mrb[23].mxu1  ;;  %v2389_v57 = vadd.f32 %v6764_v12, %v8507_v0  ;;  %v1206_v0 = vsel %vm570_vm2, %v8617_v55, 0.0  ;;  %v593_v55 = vpop.xlane.xlu0 %592  ;;  %v6023_v12 = vld [vmem:[%s9475_s9 + $0x88] sm:$0xff] }
 0x83d   :  { %v2384_v48 = vadd.f32 %v2383_v47, %v8503_v60 }
 0x83e   :  { %v2401_v50 = vsel %vm570_vm2, %v2389_v57, -inf }
 0x83f   :  { %v2398_v49 = vsel %vm570_vm2, %v2384_v48, -inf }
 0x840   :  { %2399 = vmax.xlane.f32.xlu1 %v2398_v49  ;;  %v1202_v19 = vpop.xlane.xlu0 %1201 }
 0x843   :  { %v6775_v13 = vpop.f32.mrb[24].mxu1 }
 0x844   :  { %v2500_v51 = vpop.f32.mrb[25].mxu1  ;;  %2402 = vmax.xlane.f32.xlu1 %v2401_v50  ;;  %v596_v31 = vpop.xlane.xlu0 %595  ;;  %v7444_v50 = vpack.c.bf16 %v6023_v12, %v6022_v45 }
 0x845   :  { %v8754_v52 = vpack.c.bf16 %v6775_v13, %v2500_v51  ;;  %v8790_v51 = vld [vmem:[%s9471_s5 + $0x1] ss:$0 sm:$0xff] }
 0x847   :  { %v6778_v61 = vpop.f32.mrb[26].mxu1  ;;  %7397 = vmatprep.subr.bf16.mxu0 %v8754_v52 }
 0x848   :  { %v2510_v2 = vpop.f32.mrb[27].mxu1  ;;  %598 = vadd.xlane.f32.xlu1 %v597_v62  ;;  %v1205_v22 = vpop.xlane.xlu0 %1204 }
 0x849   :  { %v8759_v60 = vpack.c.bf16 %v6778_v61, %v2510_v2  ;;  %v6024_v61 = vld [vmem:[%s9475_s9 + $0x90] sm:$0xff] }
 0x84c   :  { %1207 = vadd.xlane.f32.xlu1 %v1206_v0  ;;  %v1811_v43 = vpop.xlane.xlu0 %1810  ;;  %v3047_v0 = vmul.f32 %v8790_v51, %v8419_v30 }
 0x850   :  { %601 = vadd.xlane.f32.xlu1 %v600_v3  ;;  %v1814_v3 = vpop.xlane.xlu0 %1813 }
 0x854   :  { %1210 = vadd.xlane.f32.xlu1 %v1209_v7 }
 0x858   :  { %1816 = vadd.xlane.f32.xlu1 %v1815_v8 }
 0x85c   :  { %1819 = vadd.xlane.f32.xlu1 %v1818_v53  ;;  %v3046_v53 = vmul.f32 %v8790_v51, %v8410_v23 }
 0x8cd   :  { %v2400_v16 = vpop.xlane.xlu1 %2399 }
 0x8ce   :  { %v2404_v17 = vmax.f32 %v2394_v14, %v2400_v16 }
 0x8d0   :  { %v2406_v18 = vsub.f32 %v2309_v26, %v2404_v17  ;;  %v2412_v54 = vsub.f32 %v2384_v48, %v2404_v17 }
 0x8d1   :  { %v2403_v9 = vpop.xlane.xlu1 %2402 }
 0x8d2   :  { %v2408_v20 = vmul.f32 1.442695, %v2406_v18  ;;  %v2414_v58 = vmul.f32 1.442695, %v2412_v54  ;;  %v2405_v24 = vmax.f32 %v2397_v15, %v2403_v9 }
 0x8d4   :  { %7766 = vpow2.f32 %v2408_v20  ;;  %v2407_v25 = vsub.f32 %v8731_v41, %v2405_v24  ;;  %v2413_v33 = vsub.f32 %v2389_v57, %v2405_v24 }
 0x8d5   :  { %7768 = vpow2.f32 %v2414_v58  ;;  %v599_v27 = vpop.xlane.xlu1 %598 }
 0x8d6   :  { %v2410_v1 = vmul.f32 1.442695, %v2407_v25  ;;  %v2416_v28 = vmul.f32 1.442695, %v2413_v33  ;;  %v603_v4 = vadd.f32 %v599_v27, %v593_v55 }
 0x8d8   :  { %7770 = vpow2.f32 %v2410_v1 }
 0x8d9   :  { %7772 = vpow2.f32 %v2416_v28  ;;  %v1208_v21 = vpop.xlane.xlu1 %1207 }
 0x8da   :  { %7774 = vrcp.f32 %v603_v4  ;;  %v1212_v6 = vadd.f32 %v1208_v21, %v1202_v19 }
 0x8dc   :  { %7776 = vrcp.f32 %v1212_v6 }
 0x8dd   :  { %v602_v26 = vpop.xlane.xlu1 %601 }
 0x8de   :  { %v7767_v34 = vpop.eup %7766  ;;  %v604_v38 = vadd.f32 %v602_v26, %v596_v31 }
 0x8df   :  { %v7769_v36 = vpop.eup %7768  ;;  %v2418_v41 = vsel %vm189_vm0, %v7767_v34, 0.0 }
 0x8e0   :  { %6794 = vmatprep.mubr.msk.f32.mxu0 %vm570_vm2, %v7769_v36  ;;  %v2424_v42 = vsel %vm570_vm2, %v7769_v36, 0.0  ;;  %2419 = vadd.xlane.f32.xlu0 %v2418_v41  ;;  %7778 = vrcp.f32 %v604_v38 }
 0x8e1   :  { %2425 = vadd.xlane.f32.xlu1 %v2424_v42  ;;  %v1211_v39 = vpop.xlane.xlu1 %1210 }
 0x8e2   :  { %v7771_v40 = vpop.eup %7770  ;;  %v1213_v59 = vadd.f32 %v1211_v39, %v1205_v22 }
 0x8e3   :  { %v7773_v63 = vpop.eup %7772  ;;  %v2421_v44 = vsel %vm189_vm0, %v7771_v40, 0.0 }
 0x8e4   :  { %v7775_v47 = vpop.eup %7774  ;;  %7780 = vrcp.f32 %v1213_v59  ;;  %6795 = vmatmul.mubr.msk.f32.vlgmr.msra.gmra.mrb[26].mxu0 %vm570_vm2, %v7773_v63  ;;  %v2427_v48 = vsel %vm570_vm2, %v7773_v63, 0.0  ;;  %2422 = vadd.xlane.f32.xlu0 %v2421_v44 }
 0x8e5   :  { %7399 = vmatpush3.bf16.msra.mxu0 %v8754_v52  ;;  %6805 = vmatprep.mubr.msk.f32.mxu0 %vm189_vm0, %v7767_v34  ;;  %v1817_v57 = vpop.xlane.xlu1 %1816  ;;  %v6025_v52 = vld [vmem:[%s9475_s9 + $0x98] sm:$0xff]  ;;  %v929_v62 = vmul.f32 %v7775_v47, %v8600_v11  ;;  %v8808_v11 = vld [vmem:[%s9472_s6 + $0x1] ss:$0 sm:$0xff]  ;;  %v7870_v34 = vld [vmem:[#allocation2 + $0x8] sm:$0xff] }
 0x8e6   :  { %v7777_v49 = vpop.eup %7776  ;;  %7401 = vmatprep.subr.bf16.mxu0 %v8759_v60  ;;  %2428 = vadd.xlane.f32.xlu1 %v2427_v48  ;;  %v1821_v13 = vadd.f32 %v1817_v57, %v1811_v43  ;;  %v7448_v15 = vpack.c.bf16 %v6025_v52, %v6024_v61  ;;  %v8811_v30 = vadd.f32 %v8808_v11, %v3047_v0  ;;  %v2806_v57 = vld [vmem:[%s9479_s13] sm:$0xff]  ;;  %v2809_v61 = vld [vmem:[%s9479_s13 + $0x18] sm:$0xff] }
 0x8e7   :  { %v1538_v2 = vmul.f32 %v7777_v49, %v8688_v35  ;;  %v8815_v55 = vadd.f32 %v8808_v11, %v3046_v53  ;;  %v2807_v49 = vld [vmem:[%s9479_s13 + $0x8] sm:$0xff] }
 0x8e8   :  { %7782 = vrcp.f32 %v1821_v13  ;;  %v7404_v13 = vpack.c.bf16 %v2807_v49, %v2806_v57 }
 0x8e9   :  { %7403 = vmatpush3.bf16.msra.mxu0 %v8759_v60  ;;  %v1820_v7 = vpop.xlane.xlu1 %1819  ;;  %v1540_v8 = vadd.f32 %v1538_v2, %v929_v62  ;;  %v8821_v17 = vpack.c.bf16 %v8811_v30, %v8815_v55 }
 0x8ea   :  { %v1822_v14 = vadd.f32 %v1820_v7, %v1814_v3  ;;  %7445 = vmatprep.subr.bf16.mxu0 %v7444_v50  ;;  %v7779_v35 = vpop.eup %7778  ;;  %7405 = vmatprep.subr.bf16.mxu1 %v7404_v13 }
 0x8eb   :  { %v930_v23 = vmul.f32 %v7779_v35, %v8598_v10  ;;  %7407 = vmatpush3.bf16.msra.mxu1 %v7404_v13 }
 0x8ec   :  { %7784 = vrcp.f32 %v1822_v14  ;;  %6806 = vmatmul.mubr.msk.f32.vlgmr.msra.gmra.mrb[26].mxu0 %vm189_vm0, %v7771_v40  ;;  %v6012_v14 = vld [vmem:[#allocation13] ss:$0 sm:$0xff] }
 0x8ed   :  { %7447 = vmatpush3.bf16.msra.mxu0 %v7444_v50  ;;  %v2808_v50 = vld [vmem:[%s9479_s13 + $0x10] sm:$0xff] }
 0x8ee   :  { %v7781_v60 = vpop.eup %7780  ;;  %7449 = vmatprep.subr.bf16.mxu0 %v7448_v15  ;;  %v7408_v52 = vpack.c.bf16 %v2809_v61, %v2808_v50 }
 0x8ef   :  { %v1539_v16 = vmul.f32 %v7781_v60, %v8686_v32 }
 0x8f0   :  { %7409 = vmatprep.subr.bf16.mxu1 %v7408_v52 }
 0x8f1   :  { %7451 = vmatpush3.bf16.msra.mxu0 %v7448_v15  ;;  %v1541_v18 = vadd.f32 %v1539_v16, %v930_v23  ;;  %7411 = vmatpush3.bf16.msra.mxu1 %v7408_v52  ;;  %v6013_v23 = vld [vmem:[#allocation14] ss:$0 sm:$0xff] }
 0x8f2   :  { %v7783_v54 = vpop.eup %7782  ;;  %7454 = vmatprep.subr.msk.bf16.mxu0 %vm8393_vm1, %v8821_v17 }
 0x8f3   :  { %v2147_v19 = vmul.f32 %v7783_v54, %v8748_v46 }
 0x8f5   :  { %v2149_v9 = vadd.f32 %v2147_v19, %v1540_v8 }
 0x8f6   :  { %v7785_v20 = vpop.eup %7784 }
 0x8f7   :  { %v2148_v58 = vmul.f32 %v7785_v20, %v8746_v56  ;;  %v7871_v56 = vld [vmem:[#allocation2] sm:$0xff]  ;;  %v2946_v20 = vld [vmem:[%s9480_s14 + $0x8] sm:$0xff] }
 0x8f9   :  { %v2150_v10 = vadd.f32 %v2148_v58, %v1541_v18 }
 0x96d   :  { %v2420_v32 = vpop.xlane.xlu0 %2419 }
 0x96e   :  { %v2426_v24 = vpop.xlane.xlu1 %2425 }
 0x96f   :  { %v2430_v1 = vadd.f32 %v2426_v24, %v2420_v32  ;;  %v2948_v24 = vld [vmem:[%s9480_s14 + $0x18] sm:$0xff] }
 0x971   :  { %v2423_v33 = vpop.xlane.xlu0 %2422 }
 0x973   :  { %v2429_v25 = vpop.xlane.xlu1 %2428 }
 0x974   :  { %v2431_v27 = vadd.f32 %v2429_v25, %v2423_v33  ;;  %v2949_v25 = vld [vmem:[%s9480_s14 + $0x20] sm:$0xff]  ;;  %v2950_v33 = vld [vmem:[%s9480_s14 + $0x28] sm:$0xff] }
 0x976   :  { %7786 = vrcp.f32 %v2431_v27  ;;  %v7420_v27 = vpack.c.bf16 %v2950_v33, %v2949_v25 }
 0x977   :  { %7788 = vrcp.f32 %v2430_v1  ;;  %v2951_v1 = vld [vmem:[%s9480_s14 + $0x30] sm:$0xff] }
 0x980   :  { %v7787_v28 = vpop.eup %7786 }
 0x981   :  { %v7789_v31 = vpop.eup %7788 }
 0x9bf   :  { %v6807_v4 = vpop.f32.mrb[26].mxu0 }
 0x9c0   :  { %v2757_v21 = vmul.f32 %v7787_v28, %v6807_v4  ;;  %v2747_v6 = vpop.f32.mrb[27].mxu0  ;;  %v2952_v28 = vld [vmem:[%s9480_s14 + $0x38] sm:$0xff] }
 0x9c1   :  { %v2756_v22 = vmul.f32 %v7789_v31, %v2747_v6  ;;  %v7424_v4 = vpack.c.bf16 %v2952_v28, %v2951_v1  ;;  %v2953_v31 = vld [vmem:[%s9480_s14 + $0x40] sm:$0xff] }
 0x9c2   :  { %v2759_v46 = vadd.f32 %v2757_v21, %v2150_v10  ;;  %v2947_v10 = vld [vmem:[%s9480_s14 + $0x10] sm:$0xff]  ;;  %v2954_v21 = vld [vmem:[%s9480_s14 + $0x48] sm:$0xff] }
 0x9c3   :  { %v2758_v26 = vadd.f32 %v2756_v22, %v2149_v9  ;;  %v2945_v9 = vld [vmem:[%s9480_s14] sm:$0xff]  ;;  %v7416_v32 = vpack.c.bf16 %v2948_v24, %v2947_v10  ;;  %v7428_v6 = vpack.c.bf16 %v2954_v21, %v2953_v31  ;;  %v2955_v22 = vld [vmem:[%s9480_s14 + $0x50] sm:$0xff] }
 0x9c4   :  { %v8828_v38 = vadd.f32 %v7870_v34, %v2759_v46  ;;  %v7412_v58 = vpack.c.bf16 %v2946_v20, %v2945_v9  ;;  %v2956_v46 = vld [vmem:[%s9480_s14 + $0x58] sm:$0xff]  ;;  %v2957_v34 = vld [vmem:[%s9480_s14 + $0x60] sm:$0xff] }
 0x9c5   :  { %v8830_v36 = vadd.f32 %v7871_v56, %v2758_v26  ;;  %v7432_v26 = vpack.c.bf16 %v2956_v46, %v2955_v22  ;;  %v2958_v56 = vld [vmem:[%s9480_s14 + $0x68] sm:$0xff] }
 0x9c6   :  { %v2767_v41 = vsel %vm189_vm0, %v8828_v38, 0.0  ;;  %7413 = vmatprep.subr.bf16.mxu1 %v7412_v58 }
 0x9c7   :  { %2768 = vadd.xlane.f32.xlu1 %v2767_v41  ;;  %v2764_v42 = vsel %vm189_vm0, %v8830_v36, 0.0  ;;  %v7436_v41 = vpack.c.bf16 %v2958_v56, %v2957_v34 }
 0x9c8   :  { %2765 = vadd.xlane.f32.xlu0 %v2764_v42  ;;  %v2959_v42 = vld [vmem:[%s9480_s14 + $0x70] sm:$0xff] }
 0xa54   :  { %v2769_v39 = vpop.xlane.xlu1 %2768 }
 0xa55   :  { %v2771_v40 = vmul.f32 0.03125, %v2769_v39  ;;  %v2766_v59 = vpop.xlane.xlu0 %2765  ;;  %v2960_v39 = vld [vmem:[%s9480_s14 + $0x78] sm:$0xff] }
 0xa56   :  { %v2770_v63 = vmul.f32 0.03125, %v2766_v59  ;;  %v3112_v59 = vld [vmem:[#allocation11 + $0x80] sm:$0xff] }
 0xa57   :  { %v2773_v43 = vsub.f32 %v8828_v38, %v2771_v40  ;;  %v7440_v40 = vpack.c.bf16 %v2960_v39, %v2959_v42 }
 0xa58   :  { %v2772_v44 = vsub.f32 %v8830_v36, %v2770_v63  ;;  %v3113_v63 = vld [vmem:[#allocation11 + $0x88] sm:$0xff] }
 0xa59   :  { %v2775_v45 = vmul.f32 %v2773_v43, %v2773_v43 }
 0xa5a   :  { %v2774_v12 = vmul.f32 %v2772_v44, %v2772_v44 }
 0xa5b   :  { %v2779_v47 = vsel %vm189_vm0, %v2775_v45, 0.0 }
 0xa5c   :  { %2780 = vadd.xlane.f32.xlu1 %v2779_v47  ;;  %v2776_v48 = vsel %vm189_vm0, %v2774_v12, 0.0 }
 0xa5d   :  { %2777 = vadd.xlane.f32.xlu0 %v2776_v48 }
 0xae9   :  { %v2781_v62 = vpop.xlane.xlu1 %2780 }
 0xaea   :  { %v2783_v2 = vmul.f32 0.03125, %v2781_v62  ;;  %v2778_v0 = vpop.xlane.xlu0 %2777 }
 0xaeb   :  { %v2782_v3 = vmul.f32 0.03125, %v2778_v0 }
 0xaec   :  { %v2785_v7 = vadd.f32 1e-05, %v2783_v2 }
 0xaed   :  { %v2784_v8 = vadd.f32 1e-05, %v2782_v3 }
 0xaee   :  { %7790 = vrsqrt.f32 %v2785_v7 }
 0xaef   :  { %7792 = vrsqrt.f32 %v2784_v8 }
 0xaf8   :  { %v7791_v53 = vpop.eup %7790 }
 0xaf9   :  { %v7793_v15 = vpop.eup %7792  ;;  %v2789_v35 = vmul.f32 %v7791_v53, %v2773_v43  ;;  %v8902_v43 = vpack.c.bf16 %v3113_v63, %v3112_v59  ;;  %v3115_v59 = vld [vmem:[#allocation11 + $0x98] sm:$0xff] }
 0xafa   :  { %v2788_v60 = vmul.f32 %v7793_v15, %v2772_v44 }
 0xafb   :  { %v2797_v16 = vmul.f32 %v6012_v14, %v2789_v35 }
 0xafc   :  { %v2796_v18 = vmul.f32 %v6012_v14, %v2788_v60 }
 0xafd   :  { %v2805_v19 = vadd.f32 %v6013_v23, %v2797_v16 }
 0xafe   :  { %v2804_v54 = vadd.f32 %v6013_v23, %v2796_v18 }
 0xb00   :  { %6816 = vmatprep.mubr.msk.f32.mxu1 %vm189_vm0, %v2804_v54 }
 0xb01   :  { %6817 = vmatmul.mubr.msk.f32.vlgmr.msra.gmra.mrb[28].mxu1 %vm189_vm0, %v2805_v19 }
 0xb02   :  { %7415 = vmatpush3.bf16.msra.mxu1 %v7412_v58 }
 0xb03   :  { %7417 = vmatprep.subr.bf16.mxu1 %v7416_v32 }
 0xb06   :  { %7419 = vmatpush3.bf16.msra.mxu1 %v7416_v32 }
 0xb07   :  { %7421 = vmatprep.subr.bf16.mxu1 %v7420_v27 }
 0xb0a   :  { %7423 = vmatpush3.bf16.msra.mxu1 %v7420_v27 }
 0xb0b   :  { %7425 = vmatprep.subr.bf16.mxu1 %v7424_v4 }
 0xb0e   :  { %7427 = vmatpush3.bf16.msra.mxu1 %v7424_v4 }
 0xb0f   :  { %7429 = vmatprep.subr.bf16.mxu1 %v7428_v6 }
 0xb12   :  { %7431 = vmatpush3.bf16.msra.mxu1 %v7428_v6  ;;  %v8098_v6 = vmov -1.0  }
 0xb13   :  { %7433 = vmatprep.subr.bf16.mxu1 %v7432_v26 }
 0xb16   :  { %7435 = vmatpush3.bf16.msra.mxu1 %v7432_v26 }
 0xb17   :  { %7437 = vmatprep.subr.bf16.mxu1 %v7436_v41 }
 0xb1a   :  { %7439 = vmatpush3.bf16.msra.mxu1 %v7436_v41 }
 0xb1b   :  { %7441 = vmatprep.subr.bf16.mxu1 %v7440_v40 }
 0xb1e   :  { %7443 = vmatpush3.bf16.msra.mxu1 %v7440_v40  ;;  %v3114_v40 = vld [vmem:[#allocation11 + $0x90] sm:$0xff] }
 0xb1f   :  { %7471 = vmatprep.subr.bf16.mxu1 %v8902_v43 }
 0xbd4   :  { %v6818_v44 = vpop.f32.mrb[28].mxu1 }
 0xbd5   :  { %v2894_v45 = vmul.f32 0.70710677, %v6818_v44  ;;  %v2882_v12 = vpop.f32.mrb[29].mxu1  ;;  %v2892_v63 = vmul.f32 0.5, %v6818_v44  ;;  %v3049_v44 = vmul.f32 %v8790_v51, %v8430_v37 }
 0xbd6   :  { %v2893_v47 = vmul.f32 0.70710677, %v2882_v12  ;;  %v2891_v42 = vmul.f32 0.5, %v2882_v12  ;;  %v3048_v12 = vmul.f32 %v8790_v51, %v8417_v29 }
 0xbd7   :  { %v2900_v48 = vand.u32 2147483647, %v2894_v45  ;;  %vm2896_vm3 = vcmp.ge.f32.partialorder %v2894_v45, 0.0 }
 0xbd8   :  { %v2899_v57 = vand.u32 2147483647, %v2893_v47  ;;  %vm2895_vm4 = vcmp.ge.f32.partialorder %v2893_v47, 0.0  ;;  %v2898_v22 = vsel %vm2896_vm3, 1.0, %v8098_v6  ;;  %v8919_v47 = vadd.f32 %v8808_v11, %v3048_v12  ;;  %v9027_v12 = vld [vmem:[#allocation5 + $0x8] sm:$0xff] }
 0xbd9   :  { %v2902_v49 = vmul.f32 0.3275911, %v2900_v48  ;;  %v2928_v52 = vsub.f32 0.0, %v2900_v48  ;;  %v2897_v34 = vsel %vm2895_vm4, 1.0, %v8098_v6 }
 0xbda   :  { %v2901_v13 = vmul.f32 0.3275911, %v2899_v57  ;;  %v2927_v62 = vsub.f32 0.0, %v2899_v57 }
 0xbdb   :  { %v2904_v50 = vadd.f32 1.0, %v2902_v49  ;;  %v2930_v0 = vmul.f32 %v2928_v52, %v2900_v48  ;;  %v8926_v49 = vadd.f32 %v8808_v11, %v3049_v44 }
 0xbdc   :  { %v2903_v61 = vadd.f32 1.0, %v2901_v13  ;;  %v2929_v8 = vmul.f32 %v2927_v62, %v2899_v57  ;;  %v8907_v57 = vpack.c.bf16 %v3115_v59, %v3114_v40  ;;  %v3740_v40 = vld [vmem:[#allocation11 + $0xa8] sm:$0xff] }
 0xbdd   :  { %7794 = vrcp.f32 %v2904_v50  ;;  %v2933_v15 = vmul.f32 1.442695, %v2930_v0 }
 0xbde   :  { %7796 = vrcp.f32 %v2903_v61  ;;  %v2931_v23 = vmul.f32 1.442695, %v2929_v8 }
 0xbdf   :  { %7798 = vpow2.f32 %v2933_v15 }
 0xbe0   :  { %7800 = vpow2.f32 %v2931_v23 }
 0xbe7   :  { %v7795_v2 = vpop.eup %7794 }
 0xbe8   :  { %v7797_v3 = vpop.eup %7796  ;;  %v2910_v7 = vmul.f32 1.0614054, %v7795_v2 }
 0xbe9   :  { %v2909_v53 = vmul.f32 1.0614054, %v7797_v3  ;;  %v7799_v27 = vpop.eup %7798 }
 0xbea   :  { %v2912_v14 = vadd.f32 -1.4531521, %v2910_v7  ;;  %v7801_v28 = vpop.eup %7800 }
 0xbeb   :  { %v2911_v35 = vadd.f32 -1.4531521, %v2909_v53 }
 0xbec   :  { %v2914_v60 = vmul.f32 %v7795_v2, %v2912_v14 }
 0xbed   :  { %v2913_v16 = vmul.f32 %v7797_v3, %v2911_v35 }
 0xbee   :  { %v2916_v18 = vadd.f32 1.4214138, %v2914_v60 }
 0xbef   :  { %v2915_v54 = vadd.f32 1.4214138, %v2913_v16 }
 0xbf0   :  { %v2918_v19 = vmul.f32 %v7795_v2, %v2916_v18 }
 0xbf1   :  { %v2917_v9 = vmul.f32 %v7797_v3, %v2915_v54 }
 0xbf2   :  { %v2920_v20 = vadd.f32 -0.28449672, %v2918_v19 }
 0xbf3   :  { %v2919_v58 = vadd.f32 -0.28449672, %v2917_v9 }
 0xbf4   :  { %v2922_v10 = vmul.f32 %v7795_v2, %v2920_v20 }
 0xbf5   :  { %v2921_v24 = vmul.f32 %v7797_v3, %v2919_v58 }
 0xbf6   :  { %v2924_v32 = vadd.f32 0.2548296, %v2922_v10  ;;  %v6020_v10 = vld [vmem:[#allocation8 + $0x1] ss:$0 sm:$0xff] }
 0xbf7   :  { %v2923_v25 = vadd.f32 0.2548296, %v2921_v24 }
 0xbf8   :  { %v2926_v33 = vmul.f32 %v7795_v2, %v2924_v32 }
 0xbf9   :  { %v2925_v1 = vmul.f32 %v7797_v3, %v2923_v25 }
 0xbfa   :  { %v2936_v4 = vmul.f32 %v7799_v27, %v2926_v33  ;;  %v6021_v33 = vld [vmem:[#allocation10 + $0x1] ss:$0 sm:$0xff] }
 0xbfb   :  { %v2935_v31 = vmul.f32 %v7801_v28, %v2925_v1 }
 0xbfc   :  { %v2938_v21 = vsub.f32 1.0, %v2936_v4 }
 0xbfd   :  { %v2937_v46 = vsub.f32 1.0, %v2935_v31  ;;  %v8956_v31 = vpack.c.bf16 %v8926_v49, %v8919_v47 }
 0xbfe   :  { %v2940_v26 = vmul.f32 %v2938_v21, %v2898_v22 }
 0xbff   :  { %v2939_v56 = vmul.f32 %v2937_v46, %v2897_v34  ;;  %v6049_v34 = vld [vmem:[%s9475_s9 + $0xa8] sm:$0xff] }
 0xc00   :  { %v2942_v41 = vadd.f32 1.0, %v2940_v26  ;;  %v6048_v26 = vld [vmem:[%s9475_s9 + $0xa0] sm:$0xff] }
 0xc01   :  { %v2941_v39 = vadd.f32 1.0, %v2939_v56  ;;  %v7498_v56 = vpack.c.bf16 %v6049_v34, %v6048_v26 }
 0xc02   :  { %v2944_v45 = vmul.f32 %v2942_v41, %v2892_v63  ;;  %v6050_v41 = vld [vmem:[%s9475_s9 + $0xb0] sm:$0xff] }
 0xc03   :  { %v2943_v48 = vmul.f32 %v2941_v39, %v2891_v42  ;;  %v6051_v42 = vld [vmem:[%s9475_s9 + $0xb8] sm:$0xff] }
 0xc04   :  { %v7502_v39 = vpack.c.bf16 %v6051_v42, %v6050_v41 }
 0xc05   :  { %6851 = vmatprep.mubr.f32.mxu1 %v2943_v48 }
 0xc06   :  { %6852 = vmatmul.mubr.f32.vlgmr.msra.gmra.mrb[30].mxu1 %v2944_v45  ;;  %v9022_v45 = vld [vmem:[#allocation5] sm:$0xff] }
 0xc07   :  { %7473 = vmatpush3.bf16.msra.mxu1 %v8902_v43  ;;  %6891 = vmatprep.mubr.msk.f32.mxu1 %vm189_vm0, %v8815_v55 }
 0xc08   :  { %7475 = vmatprep.subr.bf16.mxu1 %v8907_v57 }
 0xc0b   :  { %7477 = vmatpush3.bf16.msra.mxu1 %v8907_v57 }
 0xc0e   :  { %6892 = vmatmul.mubr.msk.f32.vlgmr.msra.gmra.mrb[32].mxu1 %vm189_vm0, %v8811_v30 }
 0xc0f   :  { %6894 = vmatprep.mubr.msk.f32.mxu1 %vm189_vm0, %v8919_v47 }
 0xc12   :  { %6895 = vmatmul.mubr.msk.f32.gmra.mrb[34].mxu1 %vm189_vm0, %v8926_v49 }
 0xcd9   :  { %v6853_v29 = vpop.f32.mrb[30].mxu1 }
 0xcda   :  { %v8931_v13 = vadd.f32 %v6853_v29, %v8828_v38  ;;  %v3027_v37 = vpop.f32.mrb[31].mxu1 }
 0xcdb   :  { %v8934_v51 = vadd.f32 %v3027_v37, %v8830_v36 }
 0xcdc   :  { %v3067_v50 = vsel %vm189_vm0, %v8931_v13, 0.0 }
 0xcdd   :  { %3068 = vadd.xlane.f32.xlu1 %v3067_v50  ;;  %v3064_v61 = vsel %vm189_vm0, %v8934_v51, 0.0 }
 0xcde   :  { %3065 = vadd.xlane.f32.xlu0 %v3064_v61 }
 0xce1   :  { %v6893_v11 = vpop.f32.mrb[32].mxu1 }
 0xce2   :  { %v3473_v52 = vpop.f32.mrb[33].mxu1 }
 0xce3   :  { %v8940_v62 = vpack.c.bf16 %v6893_v11, %v3473_v52  ;;  %v9036_v11 = vld [vmem:[#allocation7] sm:$0xff] }
 0xce5   :  { %v6896_v2 = vpop.f32.mrb[34].mxu1 }
 0xce6   :  { %v3483_v0 = vpop.f32.mrb[35].mxu1 }
 0xce7   :  { %v8942_v38 = vpack.c.bf16 %v6896_v2, %v3483_v0  ;;  %v9039_v2 = vld [vmem:[#allocation7 + $0x8] sm:$0xff] }
 0xd6a   :  { %v3069_v3 = vpop.xlane.xlu1 %3068 }
 0xd6b   :  { %v3071_v7 = vmul.f32 0.03125, %v3069_v3  ;;  %v3066_v36 = vpop.xlane.xlu0 %3065 }
 0xd6c   :  { %v3070_v8 = vmul.f32 0.03125, %v3066_v36 }
 0xd6d   :  { %v3073_v53 = vsub.f32 %v8931_v13, %v3071_v7 }
 0xd6e   :  { %v3072_v14 = vsub.f32 %v8934_v51, %v3070_v8 }
 0xd6f   :  { %v3075_v15 = vmul.f32 %v3073_v53, %v3073_v53 }
 0xd70   :  { %v3074_v35 = vmul.f32 %v3072_v14, %v3072_v14 }
 0xd71   :  { %v3079_v60 = vsel %vm189_vm0, %v3075_v15, 0.0  ;;  %v3742_v15 = vld [vmem:[#allocation11 + $0xb8] sm:$0xff] }
 0xd72   :  { %3080 = vadd.xlane.f32.xlu1 %v3079_v60  ;;  %v3076_v23 = vsel %vm189_vm0, %v3074_v35, 0.0 }
 0xd73   :  { %3077 = vadd.xlane.f32.xlu0 %v3076_v23 }
 0xdff   :  { %v3081_v16 = vpop.xlane.xlu1 %3080 }
 0xe00   :  { %v3083_v18 = vmul.f32 0.03125, %v3081_v16  ;;  %v3078_v54 = vpop.xlane.xlu0 %3077  ;;  %v6074_v16 = vld [vmem:[%s9475_s9 + $0xc0] sm:$0xff] }
 0xe01   :  { %v3082_v19 = vmul.f32 0.03125, %v3078_v54 }
 0xe02   :  { %v3085_v9 = vadd.f32 1e-05, %v3083_v18  ;;  %v6075_v18 = vld [vmem:[%s9475_s9 + $0xc8] sm:$0xff] }
 0xe03   :  { %v3084_v20 = vadd.f32 1e-05, %v3082_v19  ;;  %v7552_v54 = vpack.c.bf16 %v6075_v18, %v6074_v16  ;;  %v6076_v19 = vld [vmem:[%s9475_s9 + $0xd0] sm:$0xff]  ;;  %v4958_v18 = vld [vmem:[#allocation11 + $0xe8] sm:$0xff] }
 0xe04   :  { %7802 = vrsqrt.f32 %v3085_v9  ;;  %v6077_v9 = vld [vmem:[%s9475_s9 + $0xd8] sm:$0xff] }
 0xe05   :  { %7804 = vrsqrt.f32 %v3084_v20  ;;  %v7556_v20 = vpack.c.bf16 %v6077_v9, %v6076_v19  ;;  %v4957_v16 = vld [vmem:[#allocation11 + $0xe0] sm:$0xff] }
 0xe0e   :  { %v7803_v58 = vpop.eup %7802 }
 0xe0f   :  { %v7805_v24 = vpop.eup %7804  ;;  %v3089_v32 = vmul.f32 %v7803_v58, %v3073_v53  ;;  %v4348_v58 = vld [vmem:[#allocation11 + $0xc0] sm:$0xff] }
 0xe10   :  { %v3088_v25 = vmul.f32 %v7805_v24, %v3072_v14  ;;  %v3741_v14 = vld [vmem:[#allocation11 + $0xb0] sm:$0xff] }
 0xe11   :  { %v3097_v27 = vmul.f32 %v6020_v10, %v3089_v32  ;;  %v9047_v23 = vpack.c.bf16 %v3742_v15, %v3741_v14  ;;  %v6101_v14 = vld [vmem:[%s9475_s9 + $0xe8] sm:$0xff] }
 0xe12   :  { %v3096_v1 = vmul.f32 %v6020_v10, %v3088_v25  ;;  %v4349_v10 = vld [vmem:[#allocation11 + $0xc8] sm:$0xff] }
 0xe13   :  { %v8950_v4 = vadd.f32 %v6021_v33, %v3097_v27  ;;  %v9087_v24 = vpack.c.bf16 %v4349_v10, %v4348_v58 }
 0xe14   :  { %v8948_v28 = vadd.f32 %v6021_v33, %v3096_v1 }
 0xe16   :  { %6862 = vmatprep.mubr.msk.f32.mxu0 %vm189_vm0, %v8948_v28  ;;  %v8968_v21 = vpack.c.bf16 %v8950_v4, %v8948_v28 }
 0xe17   :  { %6863 = vmatmul.mubr.msk.f32.vlgmr.msra.gmra.mrb[28].mxu0 %vm189_vm0, %v8950_v4 }
 0xe18   :  { %7457 = vmatpush3.bf16.xpose.msk.msra.mxu0 %vm8393_vm1, %v8821_v17 }
 0xe19   :  { %7460 = vmatprep.subr.msk.bf16.mxu0 %vm8393_vm1, %v8956_v31 }
 0xe20   :  { %7463 = vmatpush3.bf16.xpose.msk.msra.mxu0 %vm8393_vm1, %v8956_v31 }
 0xe21   :  { %7466 = vmatprep.subr.msk.bf16.mxu0 %vm8393_vm1, %v8968_v21 }
 0xeea   :  { %v6864_v22 = vpop.f32.mrb[28].mxu0 }
 0xeeb   :  { %v3188_v46 = vpop.f32.mrb[29].mxu0 }
 0xeec   :  { %6873 = vmatprep.mubr.msk.f32.mxu0 %vm189_vm0, %v3188_v46 }
 0xeed   :  { %6874 = vmatmul.mubr.msk.f32.vlgmr.msra.gmra.mrb[30].mxu0 %vm189_vm0, %v6864_v22 }
 0xeee   :  { %7469 = vmatpush3.bf16.xpose.msk.msra.mxu0 %vm8393_vm1, %v8968_v21  ;;  %6880 = vmatprep.mubr.msk.f32.mxu0 %vm189_vm0, %v3188_v46 }
 0xeef   :  { %7479 = vmatprep.subr.bf16.mxu0 %v8902_v43 }
 0xef5   :  { %6881 = vmatmul.mubr.msk.f32.vlgmr.msra.gmra.mrb[32].mxu0 %vm189_vm0, %v6864_v22 }
 0xef6   :  { %7481 = vmatpush3.bf16.msra.mxu0 %v8902_v43  ;;  %6905 = vmatprep.mubr.msk.f32.mxu0 %vm189_vm0, %v8948_v28  ;;  %v3739_v43 = vld [vmem:[#allocation11 + $0xa0] sm:$0xff] }
 0xef7   :  { %7483 = vmatprep.subr.bf16.mxu0 %v8907_v57  ;;  %v9019_v59 = vpack.c.bf16 %v3740_v40, %v3739_v43 }
 0xefa   :  { %7485 = vmatpush3.bf16.msra.mxu0 %v8907_v57 }
 0xefb   :  { %7499 = vmatprep.subr.bf16.mxu0 %v7498_v56 }
 0xefd   :  { %6906 = vmatmul.mubr.msk.f32.vlgmr.msra.gmra.mrb[34].mxu0 %vm189_vm0, %v8950_v4 }
 0xefe   :  { %7501 = vmatpush3.bf16.msra.mxu0 %v7498_v56  ;;  %6934 = vmatprep.mubr.msk.f32.mxu0 %vm189_vm0, %v8948_v28 }
 0xeff   :  { %7503 = vmatprep.subr.bf16.mxu0 %v7502_v39 }
 0xf02   :  { %7505 = vmatpush3.bf16.msra.mxu0 %v7502_v39 }
 0xf03   :  { %7508 = vmatprep.subr.msk.bf16.mxu0 %vm8393_vm1, %v8821_v17 }
 0xf05   :  { %6935 = vmatmul.mubr.msk.f32.vlgmr.msra.gmra.mrb[36].mxu0 %vm189_vm0, %v8950_v4 }
 0xf0b   :  { %7511 = vmatpush3.bf16.xpose.msk.msra.mxu0 %vm8393_vm1, %v8821_v17 }
 0xf0c   :  { %7514 = vmatprep.subr.msk.bf16.mxu0 %vm8393_vm1, %v8956_v31 }
 0xf13   :  { %7517 = vmatpush3.bf16.xpose.msk.msra.mxu0 %vm8393_vm1, %v8956_v31 }
 0xf14   :  { %7533 = vmatprep.subr.bf16.mxu0 %v9019_v59 }
 0xfc0   :  { %v6875_v63 = vpop.f32.mrb[30].mxu0 }
 0xfc1   :  { %v3281_v48 = vpop.f32.mrb[31].mxu0  ;;  %v9030_v44 = vadd.f32 %v9027_v12, %v6875_v63 }
 0xfc2   :  { %v9025_v57 = vadd.f32 %v9022_v45, %v3281_v48 }
 0xfc3   :  { %v3368_v50 = vsel %vm189_vm0, %v9030_v44, -inf }
 0xfc4   :  { %v3365_v29 = vsel %vm189_vm0, %v9025_v57, -inf }
 0xfc5   :  { %3366 = vmax.xlane.f32.xlu0 %v3365_v29 }
 0xfc8   :  { %v6882_v37 = vpop.f32.mrb[32].mxu0 }
 0xfc9   :  { %v3356_v61 = vpop.f32.mrb[33].mxu0  ;;  %3369 = vmax.xlane.f32.xlu0 %v3368_v50  ;;  %v3362_v0 = vadd.f32 %v9039_v2, %v6882_v37 }
 0xfca   :  { %v3357_v52 = vadd.f32 %v9036_v11, %v3356_v61 }
 0xfcb   :  { %v3374_v36 = vsel %vm570_vm2, %v3362_v0, -inf }
 0xfcc   :  { %v3371_v3 = vsel %vm570_vm2, %v3357_v52, -inf }
 0xfcd   :  { %3372 = vmax.xlane.f32.xlu1 %v3371_v3  ;;  %v4351_v3 = vld [vmem:[#allocation11 + $0xd8] sm:$0xff] }
 0xfd0   :  { %v6907_v7 = vpop.f32.mrb[34].mxu0 }
 0xfd1   :  { %v3558_v8 = vpop.f32.mrb[35].mxu0  ;;  %3375 = vmax.xlane.f32.xlu1 %v3374_v36 }
 0xfd2   :  { %v7486_v53 = vpack.c.bf16 %v6907_v7, %v3558_v8 }
 0xfd4   :  { %7487 = vmatprep.subr.bf16.mxu1 %v7486_v53 }
 0xfd5   :  { %7489 = vmatpush3.bf16.msra.mxu1 %v7486_v53  ;;  %v6100_v53 = vld [vmem:[%s9475_s9 + $0xe0] sm:$0xff] }
 0xfd6   :  { %7491 = vmatprep.subr.bf16.mxu1 %v8940_v62  ;;  %v7606_v15 = vpack.c.bf16 %v6101_v14, %v6100_v53 }
 0xfd8   :  { %v9045_v35 = vpop.f32.mrb[36].mxu0 }
 0xfd9   :  { %v3809_v60 = vpop.f32.mrb[37].mxu0 }
 0xfda   :  { %6945 = vmatprep.mubr.msk.f32.mxu0 %vm189_vm0, %v3809_v60 }
 0xfdb   :  { %6946 = vmatmul.mubr.msk.f32.vlgmr.msra.gmra.mrb[38].mxu0 %vm189_vm0, %v9045_v35 }
 0xfdc   :  { %7535 = vmatpush3.bf16.msra.mxu0 %v9019_v59  ;;  %6977 = vmatprep.mubr.msk.f32.mxu0 %vm189_vm0, %v8948_v28 }
 0xfdd   :  { %7537 = vmatprep.subr.bf16.mxu0 %v9047_v23 }
 0xfe0   :  { %7539 = vmatpush3.bf16.msra.mxu0 %v9047_v23 }
 0xfe1   :  { %7553 = vmatprep.subr.bf16.mxu0 %v7552_v54 }
 0xfe3   :  { %6978 = vmatmul.mubr.msk.f32.vlgmr.msra.gmra.mrb[40].mxu0 %vm189_vm0, %v8950_v4 }
 0xfe4   :  { %7555 = vmatpush3.bf16.msra.mxu0 %v7552_v54  ;;  %7006 = vmatprep.mubr.msk.f32.mxu0 %vm189_vm0, %v8948_v28  ;;  %v9187_v54 = vpack.c.bf16 %v4958_v18, %v4957_v16 }
 0xfe5   :  { %7557 = vmatprep.subr.bf16.mxu0 %v7556_v20 }
 0xfe8   :  { %7559 = vmatpush3.bf16.msra.mxu0 %v7556_v20 }
 0xfe9   :  { %7562 = vmatprep.subr.msk.bf16.mxu0 %vm8393_vm1, %v8821_v17 }
 0xfeb   :  { %7007 = vmatmul.mubr.msk.f32.vlgmr.msra.gmra.mrb[42].mxu0 %vm189_vm0, %v8950_v4 }
 0xff1   :  { %7565 = vmatpush3.bf16.xpose.msk.msra.mxu0 %vm8393_vm1, %v8821_v17 }
 0xff2   :  { %7568 = vmatprep.subr.msk.bf16.mxu0 %vm8393_vm1, %v8956_v31 }
 0xff9   :  { %7571 = vmatpush3.bf16.xpose.msk.msra.mxu0 %vm8393_vm1, %v8956_v31 }
 0xffa   :  { %7587 = vmatprep.subr.bf16.mxu0 %v9087_v24 }
0x1052   :  { %v3367_v32 = vpop.xlane.xlu0 %3366 }
0x1056   :  { %v3370_v1 = vpop.xlane.xlu0 %3369 }
0x105a   :  { %v3373_v25 = vpop.xlane.xlu1 %3372 }
0x105b   :  { %v3377_v33 = vmax.f32 %v3367_v32, %v3373_v25 }
0x105d   :  { %v3385_v27 = vsub.f32 %v3357_v52, %v3377_v33  ;;  %v3379_v46 = vsub.f32 %v9025_v57, %v3377_v33 }
0x105e   :  { %v3376_v22 = vpop.xlane.xlu1 %3375 }
0x105f   :  { %v3387_v26 = vmul.f32 1.442695, %v3385_v27  ;;  %v3378_v34 = vmax.f32 %v3370_v1, %v3376_v22  ;;  %v3381_v41 = vmul.f32 1.442695, %v3379_v46 }
0x1061   :  { %v3386_v56 = vsub.f32 %v3362_v0, %v3378_v34  ;;  %7806 = vpow2.f32 %v3387_v26  ;;  %v3380_v39 = vsub.f32 %v9030_v44, %v3378_v34  ;;  %v4350_v0 = vld [vmem:[#allocation11 + $0xd0] sm:$0xff] }
0x1062   :  { %v9146_v8 = vpack.c.bf16 %v4351_v3, %v4350_v0 }
0x1063   :  { %v3389_v42 = vmul.f32 1.442695, %v3386_v56  ;;  %v3383_v43 = vmul.f32 1.442695, %v3380_v39 }
0x1065   :  { %7808 = vpow2.f32 %v3389_v42 }
0x1066   :  { %7810 = vpow2.f32 %v3381_v41 }
0x1067   :  { %7812 = vpow2.f32 %v3383_v43 }
0x106b   :  { %v9092_v40 = vpop.eup %7806 }
0x106c   :  { %6912 = vmatprep.mubr.msk.f32.mxu1 %vm570_vm2, %v9092_v40 }
0x106f   :  { %v9096_v63 = vpop.eup %7808 }
0x1070   :  { %v9098_v48 = vpop.eup %7810  ;;  %6913 = vmatmul.mubr.msk.f32.vlgmr.msra.gmra.mrb[36].mxu1 %vm570_vm2, %v9096_v63 }
0x1071   :  { %7493 = vmatpush3.bf16.msra.mxu1 %v8940_v62  ;;  %6923 = vmatprep.mubr.msk.f32.mxu1 %vm189_vm0, %v9098_v48  ;;  %v9110_v57 = vpop.eup %7812 }
0x1072   :  { %7495 = vmatprep.subr.bf16.mxu1 %v8942_v38 }
0x1075   :  { %7497 = vmatpush3.bf16.msra.mxu1 %v8942_v38 }
0x1076   :  { %7520 = vmatprep.subr.msk.bf16.mxu1 %vm8393_vm1, %v8968_v21 }
0x1078   :  { %6924 = vmatmul.mubr.msk.f32.vlgmr.msra.gmra.mrb[36].mxu1 %vm189_vm0, %v9110_v57 }
0x1079   :  { %6952 = vmatprep.mubr.msk.f32.mxu1 %vm189_vm0, %v3809_v60  ;;  %v6103_v60 = vld [vmem:[%s9475_s9 + $0xf8] sm:$0xff] }
0x107e   :  { %7523 = vmatpush3.bf16.xpose.msk.msra.mxu1 %vm8393_vm1, %v8968_v21 }
0x107f   :  { %7525 = vmatprep.subr.bf16.mxu1 %v9019_v59 }
0x1085   :  { %6953 = vmatmul.mubr.msk.f32.vlgmr.msra.gmra.mrb[38].mxu1 %vm189_vm0, %v9045_v35  ;;  %v6102_v35 = vld [vmem:[%s9475_s9 + $0xf0] sm:$0xff] }
0x1086   :  { %7527 = vmatpush3.bf16.msra.mxu1 %v9019_v59  ;;  %6963 = vmatprep.mubr.msk.f32.mxu1 %vm189_vm0, %v8815_v55 }
0x1087   :  { %7529 = vmatprep.subr.bf16.mxu1 %v9047_v23 }
0x108a   :  { %7531 = vmatpush3.bf16.msra.mxu1 %v9047_v23  ;;  %v7610_v23 = vpack.c.bf16 %v6103_v60, %v6102_v35 }
0x108d   :  { %6964 = vmatmul.mubr.msk.f32.vlgmr.msra.gmra.mrb[40].mxu1 %vm189_vm0, %v8811_v30 }
0x108e   :  { %6966 = vmatprep.mubr.msk.f32.mxu1 %vm189_vm0, %v8919_v47 }
0x1091   :  { %6967 = vmatmul.mubr.msk.f32.gmra.mrb[42].mxu1 %vm189_vm0, %v8926_v49 }
0x10ae   :  { %v6947_v62 = vpop.f32.mrb[38].mxu0 }
0x10af   :  { %v3890_v38 = vpop.f32.mrb[39].mxu0  ;;  %v9136_v44 = vadd.f32 %v9027_v12, %v6947_v62 }
0x10b0   :  { %v9133_v59 = vadd.f32 %v9022_v45, %v3890_v38 }
0x10b1   :  { %v3977_v50 = vsel %vm189_vm0, %v9136_v44, -inf }
0x10b2   :  { %v3974_v29 = vsel %vm189_vm0, %v9133_v59, -inf }
0x10b3   :  { %3975 = vmax.xlane.f32.xlu0 %v3974_v29  ;;  %v4959_v29 = vld [vmem:[#allocation11 + $0xf0] sm:$0xff] }
0x10b6   :  { %v6979_v37 = vpop.f32.mrb[40].mxu0 }
0x10b7   :  { %v4167_v61 = vpop.f32.mrb[41].mxu0  ;;  %3978 = vmax.xlane.f32.xlu0 %v3977_v50 }
0x10b8   :  { %v7540_v52 = vpack.c.bf16 %v6979_v37, %v4167_v61  ;;  %v4960_v37 = vld [vmem:[#allocation11 + $0xf8] sm:$0xff] }
0x10ba   :  { %7541 = vmatprep.subr.bf16.mxu1 %v7540_v52 }
0x10bb   :  { %7543 = vmatpush3.bf16.msra.mxu1 %v7540_v52  ;;  %v9212_v52 = vpack.c.bf16 %v4960_v37, %v4959_v29 }
0x10be   :  { %v9142_v7 = vpop.f32.mrb[42].mxu0 }
0x10bf   :  { %v9144_v36 = vpop.f32.mrb[43].mxu0 }
0x10c0   :  { %7017 = vmatprep.mubr.msk.f32.mxu0 %vm189_vm0, %v9144_v36 }
0x10c1   :  { %7018 = vmatmul.mubr.msk.f32.vlgmr.msra.gmra.mrb[44].mxu0 %vm189_vm0, %v9142_v7 }
0x10c2   :  { %7589 = vmatpush3.bf16.msra.mxu0 %v9087_v24  ;;  %7049 = vmatprep.mubr.msk.f32.mxu0 %vm189_vm0, %v8948_v28 }
0x10c3   :  { %7591 = vmatprep.subr.bf16.mxu0 %v9146_v8 }
0x10c6   :  { %7593 = vmatpush3.bf16.msra.mxu0 %v9146_v8 }
0x10c7   :  { %7607 = vmatprep.subr.bf16.mxu0 %v7606_v15 }
0x10c9   :  { %7050 = vmatmul.mubr.msk.f32.vlgmr.msra.gmra.mrb[46].mxu0 %vm189_vm0, %v8950_v4 }
0x10ca   :  { %7609 = vmatpush3.bf16.msra.mxu0 %v7606_v15  ;;  %7078 = vmatprep.mubr.msk.f32.mxu0 %vm189_vm0, %v8948_v28 }
0x10cb   :  { %7611 = vmatprep.subr.bf16.mxu0 %v7610_v23 }
0x10ce   :  { %7613 = vmatpush3.bf16.msra.mxu0 %v7610_v23 }
0x10cf   :  { %7616 = vmatprep.subr.msk.bf16.mxu0 %vm8393_vm1, %v8821_v17 }
0x10d1   :  { %7079 = vmatmul.mubr.msk.f32.vlgmr.msra.gmra.mrb[48].mxu0 %vm189_vm0, %v8950_v4 }
0x10d7   :  { %7619 = vmatpush3.bf16.xpose.msk.msra.mxu0 %vm8393_vm1, %v8821_v17 }
0x10d8   :  { %7622 = vmatprep.subr.msk.bf16.mxu0 %vm8393_vm1, %v8956_v31 }
0x10df   :  { %7625 = vmatpush3.bf16.xpose.msk.msra.mxu0 %vm8393_vm1, %v8956_v31 }
0x10e0   :  { %7641 = vmatprep.subr.bf16.mxu0 %v9187_v54 }
0x1140   :  { %v3976_v0 = vpop.xlane.xlu0 %3975 }
0x1144   :  { %v3979_v15 = vpop.xlane.xlu0 %3978 }
0x114b   :  { %v9190_v19 = vpop.f32.mrb[36].mxu1 }
0x114c   :  { %v9192_v9 = vpop.f32.mrb[37].mxu1 }
0x1158   :  { %v6954_v20 = vpop.f32.mrb[38].mxu1 }
0x1159   :  { %v3965_v17 = vpop.f32.mrb[39].mxu1  ;;  %v3971_v10 = vadd.f32 %v9039_v2, %v6954_v20 }
0x115a   :  { %v3966_v58 = vadd.f32 %v9036_v11, %v3965_v17 }
0x115b   :  { %v3983_v25 = vsel %vm570_vm2, %v3971_v10, -inf }
0x115c   :  { %v3980_v32 = vsel %vm570_vm2, %v3966_v58, -inf }
0x115d   :  { %3981 = vmax.xlane.f32.xlu1 %v3980_v32 }
0x1160   :  { %v6965_v31 = vpop.f32.mrb[40].mxu1 }
0x1161   :  { %v4082_v33 = vpop.f32.mrb[41].mxu1  ;;  %3984 = vmax.xlane.f32.xlu1 %v3983_v25 }
0x1162   :  { %v7544_v27 = vpack.c.bf16 %v6965_v31, %v4082_v33 }
0x1164   :  { %v6968_v1 = vpop.f32.mrb[42].mxu1  ;;  %7545 = vmatprep.subr.bf16.mxu1 %v7544_v27 }
0x1165   :  { %v4092_v22 = vpop.f32.mrb[43].mxu1 }
0x1166   :  { %v7548_v46 = vpack.c.bf16 %v6968_v1, %v4092_v22  ;;  %v3391_v1 = vsel %vm189_vm0, %v9098_v48, 0.0 }
0x1194   :  { %v7019_v26 = vpop.f32.mrb[44].mxu0 }
0x1195   :  { %v4499_v34 = vpop.f32.mrb[45].mxu0  ;;  %v9202_v41 = vadd.f32 %v9027_v12, %v7019_v26 }
0x1196   :  { %v9199_v56 = vadd.f32 %v9022_v45, %v4499_v34 }
0x1197   :  { %v4586_v43 = vsel %vm189_vm0, %v9202_v41, -inf }
0x1198   :  { %v4583_v42 = vsel %vm189_vm0, %v9199_v56, -inf }
0x1199   :  { %4584 = vmax.xlane.f32.xlu0 %v4583_v42 }
0x119c   :  { %v7051_v39 = vpop.f32.mrb[46].mxu0 }
0x119d   :  { %v4776_v62 = vpop.f32.mrb[47].mxu0  ;;  %4587 = vmax.xlane.f32.xlu0 %v4586_v43 }
0x119e   :  { %v7594_v38 = vpack.c.bf16 %v7051_v39, %v4776_v62 }
0x11a4   :  { %v9208_v50 = vpop.f32.mrb[48].mxu0 }
0x11a5   :  { %v9210_v61 = vpop.f32.mrb[49].mxu0 }
0x11a6   :  { %7089 = vmatprep.mubr.msk.f32.mxu0 %vm189_vm0, %v9210_v61 }
0x11a7   :  { %7090 = vmatmul.mubr.msk.f32.vlgmr.msra.gmra.mrb[50].mxu0 %vm189_vm0, %v9208_v50 }
0x11a8   :  { %7643 = vmatpush3.bf16.msra.mxu0 %v9187_v54  ;;  %7121 = vmatprep.mubr.msk.f32.mxu0 %vm189_vm0, %v8948_v28 }
0x11a9   :  { %7645 = vmatprep.subr.bf16.mxu0 %v9212_v52 }
0x11ac   :  { %7647 = vmatpush3.bf16.msra.mxu0 %v9212_v52 }
0x11af   :  { %7122 = vmatmul.mubr.msk.f32.vlgmr.msra.gmra.mrb[52].mxu0 %vm189_vm0, %v8950_v4 }
0x11ea   :  { %v3982_v3 = vpop.xlane.xlu1 %3981 }
0x11eb   :  { %v3986_v53 = vmax.f32 %v3976_v0, %v3982_v3 }
0x11ed   :  { %v3994_v14 = vsub.f32 %v3966_v58, %v3986_v53  ;;  %v3988_v60 = vsub.f32 %v9133_v59, %v3986_v53 }
0x11ee   :  { %v3985_v35 = vpop.xlane.xlu1 %3984 }
0x11ef   :  { %v3996_v23 = vmul.f32 1.442695, %v3994_v14  ;;  %v3987_v16 = vmax.f32 %v3979_v15, %v3985_v35  ;;  %v3990_v28 = vmul.f32 1.442695, %v3988_v60 }
0x11f1   :  { %v3995_v18 = vsub.f32 %v3971_v10, %v3987_v16  ;;  %7814 = vpow2.f32 %v3996_v23  ;;  %v3989_v17 = vsub.f32 %v9136_v44, %v3987_v16 }
0x11f3   :  { %v3998_v20 = vmul.f32 1.442695, %v3995_v18  ;;  %v3992_v32 = vmul.f32 1.442695, %v3989_v17 }
0x11f5   :  { %7816 = vpow2.f32 %v3998_v20 }
0x11f6   :  { %7818 = vpow2.f32 %v3990_v28 }
0x11f7   :  { %7820 = vpow2.f32 %v3992_v32 }
0x11fb   :  { %v9227_v4 = vpop.eup %7814 }
0x11fc   :  { %6984 = vmatprep.mubr.msk.f32.mxu1 %vm570_vm2, %v9227_v4 }
0x11ff   :  { %v9231_v58 = vpop.eup %7816 }
0x1200   :  { %v7819_v59 = vpop.eup %7818  ;;  %6985 = vmatmul.mubr.msk.f32.vlgmr.msra.gmra.mrb[44].mxu1 %vm570_vm2, %v9231_v58 }
0x1201   :  { %7547 = vmatpush3.bf16.msra.mxu1 %v7544_v27  ;;  %6995 = vmatprep.mubr.msk.f32.mxu1 %vm189_vm0, %v7819_v59  ;;  %v7821_v44 = vpop.eup %7820 }
0x1202   :  { %7549 = vmatprep.subr.bf16.mxu1 %v7548_v46  ;;  %v4003_v22 = vsel %vm189_vm0, %v7821_v44, 0.0 }
0x1205   :  { %7551 = vmatpush3.bf16.msra.mxu1 %v7548_v46 }
0x1206   :  { %7574 = vmatprep.subr.msk.bf16.mxu1 %vm8393_vm1, %v8968_v21 }
0x1208   :  { %6996 = vmatmul.mubr.msk.f32.vlgmr.msra.gmra.mrb[44].mxu1 %vm189_vm0, %v7821_v44 }
0x1209   :  { %7024 = vmatprep.mubr.msk.f32.mxu1 %vm189_vm0, %v9144_v36 }
0x120e   :  { %7577 = vmatpush3.bf16.xpose.msk.msra.mxu1 %vm8393_vm1, %v8968_v21 }
0x120f   :  { %7579 = vmatprep.subr.bf16.mxu1 %v9087_v24 }
0x1215   :  { %7025 = vmatmul.mubr.msk.f32.vlgmr.msra.gmra.mrb[46].mxu1 %vm189_vm0, %v9142_v7 }
0x1216   :  { %7581 = vmatpush3.bf16.msra.mxu1 %v9087_v24  ;;  %7035 = vmatprep.mubr.msk.f32.mxu1 %vm189_vm0, %v8815_v55 }
0x1217   :  { %7583 = vmatprep.subr.bf16.mxu1 %v9146_v8 }
0x121a   :  { %7585 = vmatpush3.bf16.msra.mxu1 %v9146_v8 }
0x121b   :  { %7595 = vmatprep.subr.bf16.mxu1 %v7594_v38 }
0x121d   :  { %7036 = vmatmul.mubr.msk.f32.vlgmr.msra.gmra.mrb[48].mxu1 %vm189_vm0, %v8811_v30 }
0x121e   :  { %7038 = vmatprep.mubr.msk.f32.mxu1 %vm189_vm0, %v8919_v47  ;;  %7597 = vmatpush3.bf16.msra.mxu1 %v7594_v38 }
0x1221   :  { %7039 = vmatmul.mubr.msk.f32.gmra.mrb[50].mxu1 %vm189_vm0, %v8926_v49 }
0x1226   :  { %v4585_v53 = vpop.xlane.xlu0 %4584 }
0x122a   :  { %v4588_v23 = vpop.xlane.xlu0 %4587 }
0x127a   :  { %v7091_v7 = vpop.f32.mrb[50].mxu0 }
0x127b   :  { %v5108_v24 = vpop.f32.mrb[51].mxu0  ;;  %v9263_v10 = vadd.f32 %v9027_v12, %v7091_v7  ;;  %v3394_v12 = vsel %vm189_vm0, %v9110_v57, 0.0 }
0x127c   :  { %v9260_v36 = vadd.f32 %v9022_v45, %v5108_v24  ;;  %v4000_v45 = vsel %vm189_vm0, %v7819_v59, 0.0 }
0x127d   :  { %v5195_v25 = vsel %vm189_vm0, %v9263_v10, -inf }
0x127e   :  { %v5192_v8 = vsel %vm189_vm0, %v9260_v36, -inf }
0x127f   :  { %5193 = vmax.xlane.f32.xlu0 %v5192_v8 }
0x1282   :  { %v7123_v31 = vpop.f32.mrb[52].mxu0 }
0x1283   :  { %v5385_v33 = vpop.f32.mrb[53].mxu0  ;;  %5196 = vmax.xlane.f32.xlu0 %v5195_v25 }
0x1284   :  { %v9269_v27 = vpack.c.bf16 %v7123_v31, %v5385_v33 }
0x1287   :  { %3392 = vadd.xlane.f32.xlu0 %v3391_v1 }
0x128b   :  { %4001 = vadd.xlane.f32.xlu0 %v4000_v45  ;;  %v3400_v45 = vsel %vm570_vm2, %v9096_v63, 0.0 }
0x128f   :  { %3395 = vadd.xlane.f32.xlu0 %v3394_v12  ;;  %v4009_v12 = vsel %vm570_vm2, %v9231_v58, 0.0 }
0x1293   :  { %4004 = vadd.xlane.f32.xlu0 %v4003_v22 }
0x12db   :  { %v9277_v46 = vpop.f32.mrb[44].mxu1 }
0x12dc   :  { %v9279_v26 = vpop.f32.mrb[45].mxu1 }
0x12e8   :  { %v7026_v34 = vpop.f32.mrb[46].mxu1 }
0x12e9   :  { %v4574_v42 = vpop.f32.mrb[47].mxu1  ;;  %v4580_v48 = vadd.f32 %v9039_v2, %v7026_v34 }
0x12ea   :  { %v4575_v39 = vadd.f32 %v9036_v11, %v4574_v42 }
0x12eb   :  { %v4592_v57 = vsel %vm570_vm2, %v4580_v48, -inf }
0x12ec   :  { %v4589_v43 = vsel %vm570_vm2, %v4575_v39, -inf }
0x12ed   :  { %4590 = vmax.xlane.f32.xlu1 %v4589_v43 }
0x12f0   :  { %v7037_v62 = vpop.f32.mrb[48].mxu1 }
0x12f1   :  { %v4691_v38 = vpop.f32.mrb[49].mxu1  ;;  %4593 = vmax.xlane.f32.xlu1 %v4592_v57 }
0x12f2   :  { %v7598_v29 = vpack.c.bf16 %v7037_v62, %v4691_v38 }
0x12f4   :  { %v7040_v37 = vpop.f32.mrb[50].mxu1  ;;  %7599 = vmatprep.subr.bf16.mxu1 %v7598_v29 }
0x12f5   :  { %v4701_v0 = vpop.f32.mrb[51].mxu1 }
0x12f6   :  { %v7602_v3 = vpack.c.bf16 %v7040_v37, %v4701_v0 }
0x130c   :  { %v5194_v34 = vpop.xlane.xlu0 %5193 }
0x1310   :  { %v5197_v42 = vpop.xlane.xlu0 %5196 }
0x137a   :  { %v4591_v14 = vpop.xlane.xlu1 %4590 }
0x137b   :  { %v4595_v15 = vmax.f32 %v4585_v53, %v4591_v14 }
0x137d   :  { %v4597_v35 = vsub.f32 %v9199_v56, %v4595_v15  ;;  %v4603_v60 = vsub.f32 %v4575_v39, %v4595_v15  ;;  %v3393_v39 = vpop.xlane.xlu0 %3392 }
0x137e   :  { %v4594_v16 = vpop.xlane.xlu1 %4593 }
0x137f   :  { %v4599_v18 = vmul.f32 1.442695, %v4597_v35  ;;  %v4605_v28 = vmul.f32 1.442695, %v4603_v60  ;;  %v4596_v20 = vmax.f32 %v4588_v23, %v4594_v16 }
0x1381   :  { %7822 = vpow2.f32 %v4599_v18  ;;  %v4598_v17 = vsub.f32 %v9202_v41, %v4596_v20  ;;  %v4604_v32 = vsub.f32 %v4580_v48, %v4596_v20  ;;  %v4002_v58 = vpop.xlane.xlu0 %4001 }
0x1382   :  { %7824 = vpow2.f32 %v4605_v28 }
0x1383   :  { %v4601_v59 = vmul.f32 1.442695, %v4598_v17  ;;  %v4607_v44 = vmul.f32 1.442695, %v4604_v32 }
0x1385   :  { %7826 = vpow2.f32 %v4601_v59  ;;  %v3396_v35 = vpop.xlane.xlu0 %3395 }
0x1386   :  { %7828 = vpow2.f32 %v4607_v44 }
0x1389   :  { %v4005_v20 = vpop.xlane.xlu0 %4004 }
0x138b   :  { %v7823_v7 = vpop.eup %7822 }
0x138c   :  { %v7825_v24 = vpop.eup %7824  ;;  %v4609_v8 = vsel %vm189_vm0, %v7823_v7, 0.0 }
0x138d   :  { %7056 = vmatprep.mubr.msk.f32.mxu1 %vm570_vm2, %v7825_v24  ;;  %4610 = vadd.xlane.f32.xlu0 %v4609_v8  ;;  %v4615_v22 = vsel %vm570_vm2, %v7825_v24, 0.0 }
0x138f   :  { %v7827_v56 = vpop.eup %7826 }
0x1390   :  { %v7829_v31 = vpop.eup %7828  ;;  %v4612_v25 = vsel %vm189_vm0, %v7827_v56, 0.0 }
0x1391   :  { %7057 = vmatmul.mubr.msk.f32.vlgmr.msra.gmra.mrb[52].mxu1 %vm570_vm2, %v7829_v31  ;;  %4613 = vadd.xlane.f32.xlu0 %v4612_v25 }
0x1392   :  { %7601 = vmatpush3.bf16.msra.mxu1 %v7598_v29  ;;  %7067 = vmatprep.mubr.msk.f32.mxu1 %vm189_vm0, %v7823_v7 }
0x1393   :  { %7603 = vmatprep.subr.bf16.mxu1 %v7602_v3 }
0x1396   :  { %7605 = vmatpush3.bf16.msra.mxu1 %v7602_v3 }
0x1397   :  { %7628 = vmatprep.subr.msk.bf16.mxu1 %vm8393_vm1, %v8968_v21 }
0x1399   :  { %7068 = vmatmul.mubr.msk.f32.vlgmr.msra.gmra.mrb[52].mxu1 %vm189_vm0, %v7827_v56 }
0x139a   :  { %7096 = vmatprep.mubr.msk.f32.mxu1 %vm189_vm0, %v9210_v61 }
0x139f   :  { %7631 = vmatpush3.bf16.xpose.msk.msra.mxu1 %vm8393_vm1, %v8968_v21 }
0x13a0   :  { %7633 = vmatprep.subr.bf16.mxu1 %v9187_v54 }
0x13a6   :  { %7097 = vmatmul.mubr.msk.f32.vlgmr.msra.gmra.mrb[54].mxu1 %vm189_vm0, %v9208_v50 }
0x13a7   :  { %7635 = vmatpush3.bf16.msra.mxu1 %v9187_v54  ;;  %7107 = vmatprep.mubr.msk.f32.mxu1 %vm189_vm0, %v8815_v55 }
0x13a8   :  { %7637 = vmatprep.subr.bf16.mxu1 %v9212_v52 }
0x13ab   :  { %7639 = vmatpush3.bf16.msra.mxu1 %v9212_v52 }
0x13ac   :  { %7649 = vmatprep.subr.bf16.mxu1 %v9269_v27 }
0x13ae   :  { %7108 = vmatmul.mubr.msk.f32.vlgmr.msra.gmra.mrb[56].mxu1 %vm189_vm0, %v8811_v30 }
0x13af   :  { %7110 = vmatprep.mubr.msk.f32.mxu1 %vm189_vm0, %v8919_v47  ;;  %7651 = vmatpush3.bf16.msra.mxu1 %v9269_v27  ;;  %v3397_v27 = vsel %vm570_vm2, %v9092_v40, 0.0  ;;  %v4618_v40 = vsel %vm570_vm2, %v7829_v31, 0.0 }
0x13b2   :  { %7111 = vmatmul.mubr.msk.f32.gmra.mrb[58].mxu1 %vm189_vm0, %v8926_v49 }
0x141a   :  { %v4611_v24 = vpop.xlane.xlu0 %4610 }
0x146c   :  { %v9317_v5 = vpop.f32.mrb[52].mxu1 }
0x146d   :  { %v9319_v55 = vpop.f32.mrb[53].mxu1 }
0x1479   :  { %v7098_v21 = vpop.f32.mrb[54].mxu1 }
0x147a   :  { %v5183_v54 = vpop.f32.mrb[55].mxu1  ;;  %v5189_v50 = vadd.f32 %v9039_v2, %v7098_v21  ;;  %v4006_v2 = vsel %vm570_vm2, %v9227_v4, 0.0 }
0x147b   :  { %v5184_v41 = vadd.f32 %v9036_v11, %v5183_v54 }
0x147c   :  { %v5201_v47 = vsel %vm570_vm2, %v5189_v50, -inf }
0x147d   :  { %v5198_v30 = vsel %vm570_vm2, %v5184_v41, -inf }
0x147e   :  { %5199 = vmax.xlane.f32.xlu1 %v5198_v30  ;;  %v4614_v30 = vpop.xlane.xlu0 %4613 }
0x1481   :  { %v7109_v61 = vpop.f32.mrb[56].mxu1 }
0x1482   :  { %v5300_v52 = vpop.f32.mrb[57].mxu1  ;;  %5202 = vmax.xlane.f32.xlu1 %v5201_v47 }
0x1483   :  { %v9325_v33 = vpack.c.bf16 %v7109_v61, %v5300_v52 }
0x1485   :  { %v7112_v49 = vpop.f32.mrb[58].mxu1  ;;  %7653 = vmatprep.subr.bf16.mxu1 %v9325_v33 }
0x1486   :  { %v5310_v1 = vpop.f32.mrb[59].mxu1  ;;  %3398 = vadd.xlane.f32.xlu1 %v3397_v27 }
0x1487   :  { %v9330_v11 = vpack.c.bf16 %v7112_v49, %v5310_v1 }
0x148a   :  { %4007 = vadd.xlane.f32.xlu1 %v4006_v2 }
0x148e   :  { %3401 = vadd.xlane.f32.xlu1 %v3400_v45 }
0x1492   :  { %4010 = vadd.xlane.f32.xlu1 %v4009_v12 }
0x1496   :  { %4616 = vadd.xlane.f32.xlu1 %v4615_v22 }
0x149a   :  { %4619 = vadd.xlane.f32.xlu1 %v4618_v40 }
0x150b   :  { %v5200_v48 = vpop.xlane.xlu1 %5199 }
0x150c   :  { %v5204_v4 = vmax.f32 %v5194_v34, %v5200_v48 }
0x150e   :  { %v5206_v43 = vsub.f32 %v9260_v36, %v5204_v4  ;;  %v5212_v62 = vsub.f32 %v5184_v41, %v5204_v4 }
0x150f   :  { %v5203_v63 = vpop.xlane.xlu1 %5202 }
0x1510   :  { %v5208_v57 = vmul.f32 1.442695, %v5206_v43  ;;  %v5214_v38 = vmul.f32 1.442695, %v5212_v62  ;;  %v5205_v29 = vmax.f32 %v5197_v42, %v5203_v63 }
0x1512   :  { %7830 = vpow2.f32 %v5208_v57  ;;  %v5207_v37 = vsub.f32 %v9263_v10, %v5205_v29  ;;  %v5213_v0 = vsub.f32 %v5189_v50, %v5205_v29 }
0x1513   :  { %7832 = vpow2.f32 %v5214_v38  ;;  %v3399_v3 = vpop.xlane.xlu1 %3398 }
0x1514   :  { %v5210_v53 = vmul.f32 1.442695, %v5207_v37  ;;  %v5216_v14 = vmul.f32 1.442695, %v5213_v0  ;;  %v3403_v15 = vadd.f32 %v3399_v3, %v3393_v39 }
0x1516   :  { %7834 = vpow2.f32 %v5210_v53 }
0x1517   :  { %7836 = vpow2.f32 %v5216_v14  ;;  %v4008_v60 = vpop.xlane.xlu1 %4007 }
0x1518   :  { %7838 = vrcp.f32 %v3403_v15  ;;  %v4012_v36 = vadd.f32 %v4008_v60, %v4002_v58 }
0x151a   :  { %7840 = vrcp.f32 %v4012_v36 }
0x151b   :  { %v3402_v23 = vpop.xlane.xlu1 %3401 }
0x151c   :  { %v7831_v16 = vpop.eup %7830  ;;  %v3404_v18 = vadd.f32 %v3402_v23, %v3396_v35  ;;  %v6128_v23 = vld [vmem:[%s9479_s13 + $0x20] sm:$0xff] }
0x151d   :  { %v7833_v28 = vpop.eup %7832  ;;  %v5218_v10 = vsel %vm189_vm0, %v7831_v16, 0.0 }
0x151e   :  { %7128 = vmatprep.mubr.msk.f32.mxu1 %vm570_vm2, %v7833_v28  ;;  %v5224_v17 = vsel %vm570_vm2, %v7833_v28, 0.0  ;;  %5219 = vadd.xlane.f32.xlu0 %v5218_v10  ;;  %7842 = vrcp.f32 %v3404_v18  ;;  %v6130_v28 = vld [vmem:[%s9479_s13 + $0x30] sm:$0xff] }
0x151f   :  { %5225 = vadd.xlane.f32.xlu1 %v5224_v17  ;;  %v4011_v32 = vpop.xlane.xlu1 %4010 }
0x1520   :  { %v7835_v59 = vpop.eup %7834  ;;  %v4013_v44 = vadd.f32 %v4011_v32, %v4005_v20  ;;  %v6131_v20 = vld [vmem:[%s9479_s13 + $0x38] sm:$0xff] }
0x1521   :  { %v7837_v7 = vpop.eup %7836  ;;  %v5221_v8 = vsel %vm189_vm0, %v7835_v59, 0.0  ;;  %v7664_v10 = vpack.c.bf16 %v6131_v20, %v6130_v28 }
0x1522   :  { %v7839_v56 = vpop.eup %7838  ;;  %7844 = vrcp.f32 %v4013_v44  ;;  %7129 = vmatmul.mubr.msk.f32.vlgmr.msra.gmra.mrb[60].mxu1 %vm570_vm2, %v7837_v7  ;;  %v5227_v31 = vsel %vm570_vm2, %v7837_v7, 0.0  ;;  %5222 = vadd.xlane.f32.xlu0 %v5221_v8 }
0x1523   :  { %7655 = vmatpush3.bf16.msra.mxu1 %v9325_v33  ;;  %7139 = vmatprep.mubr.msk.f32.mxu1 %vm189_vm0, %v7831_v16  ;;  %v4617_v25 = vpop.xlane.xlu1 %4616  ;;  %v3729_v41 = vmul.f32 %v7839_v56, %v9192_v9  ;;  %v6129_v16 = vld [vmem:[%s9479_s13 + $0x28] sm:$0xff]  ;;  %v6126_v56 = vld [vmem:[#allocation13 + $0x1] ss:$0 sm:$0xff] }
0x1524   :  { %v7841_v21 = vpop.eup %7840  ;;  %7657 = vmatprep.subr.bf16.mxu1 %v9330_v11  ;;  %5228 = vadd.xlane.f32.xlu1 %v5227_v31  ;;  %v4621_v54 = vadd.f32 %v4617_v25, %v4611_v24  ;;  %v7660_v18 = vpack.c.bf16 %v6129_v16, %v6128_v23 }
0x1525   :  { %v4338_v50 = vmul.f32 %v7841_v21, %v9279_v26 }
0x1526   :  { %7846 = vrcp.f32 %v4621_v54  ;;  %7661 = vmatprep.subr.bf16.mxu0 %v7660_v18  ;;  %v6127_v54 = vld [vmem:[#allocation14 + $0x1] ss:$0 sm:$0xff] }
0x1527   :  { %7659 = vmatpush3.bf16.msra.mxu1 %v9330_v11  ;;  %v4620_v61 = vpop.xlane.xlu1 %4619  ;;  %v4340_v47 = vadd.f32 %v4338_v50, %v3729_v41  ;;  %7663 = vmatpush3.bf16.msra.mxu0 %v7660_v18 }
0x1528   :  { %v4622_v52 = vadd.f32 %v4620_v61, %v4614_v30  ;;  %v7843_v33 = vpop.eup %7842  ;;  %7665 = vmatprep.subr.bf16.mxu0 %v7664_v10 }
0x1529   :  { %v3730_v27 = vmul.f32 %v7843_v33, %v9190_v19 }
0x152a   :  { %7848 = vrcp.f32 %v4622_v52  ;;  %7140 = vmatmul.mubr.msk.f32.vlgmr.msra.gmra.mrb[60].mxu1 %vm189_vm0, %v7835_v59  ;;  %v6135_v52 = vld [vmem:[%s9480_s14 + $0x88] sm:$0xff] }
0x152b   :  { %7667 = vmatpush3.bf16.msra.mxu0 %v7664_v10 }
0x152c   :  { %v7845_v49 = vpop.eup %7844 }
0x152d   :  { %v4339_v1 = vmul.f32 %v7845_v49, %v9277_v46  ;;  %v6136_v49 = vld [vmem:[%s9480_s14 + $0x90] sm:$0xff] }
0x152f   :  { %v4341_v2 = vadd.f32 %v4339_v1, %v3730_v27  ;;  %v6137_v27 = vld [vmem:[%s9480_s14 + $0x98] sm:$0xff] }
0x1530   :  { %v7847_v9 = vpop.eup %7846  ;;  %v7672_v1 = vpack.c.bf16 %v6137_v27, %v6136_v49 }
0x1531   :  { %v4947_v26 = vmul.f32 %v7847_v9, %v9319_v55  ;;  %v6139_v9 = vld [vmem:[%s9480_s14 + $0xa8] sm:$0xff] }
0x1533   :  { %v4949_v45 = vadd.f32 %v4947_v26, %v4340_v47  ;;  %v6134_v47 = vld [vmem:[%s9480_s14 + $0x80] sm:$0xff] }
0x1534   :  { %v7849_v12 = vpop.eup %7848  ;;  %v7668_v33 = vpack.c.bf16 %v6135_v52, %v6134_v47 }
0x1535   :  { %v4948_v11 = vmul.f32 %v7849_v12, %v9317_v5  ;;  %v6141_v12 = vld [vmem:[%s9480_s14 + $0xb8] sm:$0xff] }
0x1536   :  { %7669 = vmatprep.subr.bf16.mxu0 %v7668_v33 }
0x1537   :  { %v4950_v22 = vadd.f32 %v4948_v11, %v4341_v2  ;;  %v6138_v2 = vld [vmem:[%s9480_s14 + $0xa0] sm:$0xff] }
0x1538   :  { %v7676_v26 = vpack.c.bf16 %v6139_v9, %v6138_v2 }
0x15ab   :  { %v5220_v34 = vpop.xlane.xlu0 %5219 }
0x15ac   :  { %v5226_v40 = vpop.xlane.xlu1 %5225 }
0x15ad   :  { %v5230_v4 = vadd.f32 %v5226_v40, %v5220_v34  ;;  %v6143_v40 = vld [vmem:[%s9480_s14 + $0xc8] sm:$0xff] }
0x15af   :  { %v5223_v39 = vpop.xlane.xlu0 %5222 }
0x15b1   :  { %v5229_v42 = vpop.xlane.xlu1 %5228 }
0x15b2   :  { %v5231_v48 = vadd.f32 %v5229_v42, %v5223_v39  ;;  %v6144_v42 = vld [vmem:[%s9480_s14 + $0xd0] sm:$0xff]  ;;  %v6145_v39 = vld [vmem:[%s9480_s14 + $0xd8] sm:$0xff] }
0x15b4   :  { %7850 = vrcp.f32 %v5231_v48  ;;  %v7688_v48 = vpack.c.bf16 %v6145_v39, %v6144_v42 }
0x15b5   :  { %7852 = vrcp.f32 %v5230_v4  ;;  %v6146_v4 = vld [vmem:[%s9480_s14 + $0xe0] sm:$0xff] }
0x15be   :  { %v7851_v19 = vpop.eup %7850 }
0x15bf   :  { %v7853_v46 = vpop.eup %7852 }
0x15fd   :  { %v7141_v43 = vpop.f32.mrb[60].mxu1 }
0x15fe   :  { %v5557_v62 = vmul.f32 %v7851_v19, %v7141_v43  ;;  %v5547_v63 = vpop.f32.mrb[61].mxu1  ;;  %v6147_v19 = vld [vmem:[%s9480_s14 + $0xe8] sm:$0xff] }
0x15ff   :  { %v5556_v57 = vmul.f32 %v7853_v46, %v5547_v63  ;;  %v7692_v43 = vpack.c.bf16 %v6147_v19, %v6146_v4  ;;  %v6148_v46 = vld [vmem:[%s9480_s14 + $0xf0] sm:$0xff] }
0x1600   :  { %v5559_v55 = vadd.f32 %v5557_v62, %v4950_v22  ;;  %v6142_v22 = vld [vmem:[%s9480_s14 + $0xc0] sm:$0xff]  ;;  %v6149_v62 = vld [vmem:[%s9480_s14 + $0xf8] sm:$0xff] }
0x1601   :  { %v5558_v38 = vadd.f32 %v5556_v57, %v4949_v45  ;;  %v6140_v45 = vld [vmem:[%s9480_s14 + $0xb0] sm:$0xff]  ;;  %v7684_v34 = vpack.c.bf16 %v6143_v40, %v6142_v22  ;;  %v7696_v63 = vpack.c.bf16 %v6149_v62, %v6148_v46 }
0x1602   :  { %v9360_v29 = vadd.f32 %v5559_v55, %v8931_v13  ;;  %v7680_v11 = vpack.c.bf16 %v6141_v12, %v6140_v45 }
0x1603   :  { %v9363_v5 = vadd.f32 %v5558_v38, %v8934_v51 }
0x1604   :  { %v5569_v58 = vsel %vm189_vm0, %v9360_v29, 0.0 }
0x1605   :  { %5570 = vadd.xlane.f32.xlu1 %v5569_v58  ;;  %v5566_v37 = vsel %vm189_vm0, %v9363_v5, 0.0 }
0x1606   :  { %5567 = vadd.xlane.f32.xlu0 %v5566_v37 }
0x1692   :  { %v5571_v0 = vpop.xlane.xlu1 %5570 }
0x1693   :  { %v5573_v3 = vmul.f32 0.03125, %v5571_v0  ;;  %v5568_v53 = vpop.xlane.xlu0 %5567 }
0x1694   :  { %v5572_v14 = vmul.f32 0.03125, %v5568_v53 }
0x1695   :  { %v5575_v15 = vsub.f32 %v9360_v29, %v5573_v3 }
0x1696   :  { %v5574_v13 = vsub.f32 %v9363_v5, %v5572_v14 }
0x1697   :  { %v5577_v35 = vmul.f32 %v5575_v15, %v5575_v15 }
0x1698   :  { %v5576_v60 = vmul.f32 %v5574_v13, %v5574_v13 }
0x1699   :  { %v5581_v51 = vsel %vm189_vm0, %v5577_v35, 0.0 }
0x169a   :  { %5582 = vadd.xlane.f32.xlu1 %v5581_v51  ;;  %v5578_v36 = vsel %vm189_vm0, %v5576_v60, 0.0 }
0x169b   :  { %5579 = vadd.xlane.f32.xlu0 %v5578_v36 }
0x1727   :  { %v5583_v17 = vpop.xlane.xlu1 %5582 }
0x1728   :  { %v5585_v32 = vmul.f32 0.03125, %v5583_v17  ;;  %v5580_v59 = vpop.xlane.xlu0 %5579 }
0x1729   :  { %v5584_v44 = vmul.f32 0.03125, %v5580_v59 }
0x172a   :  { %v5587_v7 = vadd.f32 1e-05, %v5585_v32 }
0x172b   :  { %v5586_v24 = vadd.f32 1e-05, %v5584_v44 }
0x172c   :  { %7854 = vrsqrt.f32 %v5587_v7 }
0x172d   :  { %7856 = vrsqrt.f32 %v5586_v24 }
0x1736   :  { %v7855_v8 = vpop.eup %7854 }
0x1737   :  { %v7857_v31 = vpop.eup %7856  ;;  %v5591_v25 = vmul.f32 %v7855_v8, %v5575_v15 }
0x1738   :  { %v5590_v21 = vmul.f32 %v7857_v31, %v5574_v13 }
0x1739   :  { %v5599_v41 = vmul.f32 %v6126_v56, %v5591_v25 }
0x173a   :  { %v5598_v50 = vmul.f32 %v6126_v56, %v5590_v21 }
0x173b   :  { %v5607_v61 = vadd.f32 %v6127_v54, %v5599_v41 }
0x173c   :  { %v5606_v30 = vadd.f32 %v6127_v54, %v5598_v50 }
0x173e   :  { %7150 = vmatprep.mubr.msk.f32.mxu0 %vm189_vm0, %v5606_v30 }
0x173f   :  { %7151 = vmatmul.mubr.msk.f32.vlgmr.msra.gmra.mrb[54].mxu0 %vm189_vm0, %v5607_v61 }
0x1740   :  { %7671 = vmatpush3.bf16.msra.mxu0 %v7668_v33 }
0x1741   :  { %7673 = vmatprep.subr.bf16.mxu0 %v7672_v1 }
0x1744   :  { %7675 = vmatpush3.bf16.msra.mxu0 %v7672_v1 }
0x1745   :  { %7677 = vmatprep.subr.bf16.mxu0 %v7676_v26 }
0x1748   :  { %7679 = vmatpush3.bf16.msra.mxu0 %v7676_v26 }
0x1749   :  { %7681 = vmatprep.subr.bf16.mxu0 %v7680_v11 }
0x174c   :  { %7683 = vmatpush3.bf16.msra.mxu0 %v7680_v11 }
0x174d   :  { %7685 = vmatprep.subr.bf16.mxu0 %v7684_v34 }
0x1750   :  { %7687 = vmatpush3.bf16.msra.mxu0 %v7684_v34 }
0x1751   :  { %7689 = vmatprep.subr.bf16.mxu0 %v7688_v48 }
0x1754   :  { %7691 = vmatpush3.bf16.msra.mxu0 %v7688_v48 }
0x1755   :  { %7693 = vmatprep.subr.bf16.mxu0 %v7692_v43 }
0x1758   :  { %7695 = vmatpush3.bf16.msra.mxu0 %v7692_v43 }
0x1759   :  { %7697 = vmatprep.subr.bf16.mxu0 %v7696_v63 }
0x175c   :  { %7699 = vmatpush3.bf16.msra.mxu0 %v7696_v63 }
0x1812   :  { %v7152_v57 = vpop.f32.mrb[54].mxu0 }
0x1813   :  { %v5697_v55 = vmul.f32 0.70710677, %v7152_v57  ;;  %v5685_v38 = vpop.f32.mrb[55].mxu0  ;;  %v5695_v22 = vmul.f32 0.5, %v7152_v57 }
0x1814   :  { %v5696_v58 = vmul.f32 0.70710677, %v5685_v38  ;;  %v5694_v12 = vmul.f32 0.5, %v5685_v38 }
0x1815   :  { %v5703_v37 = vand.u32 2147483647, %v5697_v55  ;;  %vm5699_vm5 = vcmp.ge.f32.partialorder %v5697_v55, 0.0 }
0x1816   :  { %v5702_v0 = vand.u32 2147483647, %v5696_v58  ;;  %vm5698_vm6 = vcmp.ge.f32.partialorder %v5696_v58, 0.0  ;;  %v5701_v27 = vsel %vm5699_vm5, 1.0, %v8098_v6 }
0x1817   :  { %v5705_v3 = vmul.f32 0.3275911, %v5703_v37  ;;  %v5731_v13 = vsub.f32 0.0, %v5703_v37  ;;  %v5700_v9 = vsel %vm5698_vm6, 1.0, %v8098_v6 }
0x1818   :  { %v5704_v53 = vmul.f32 0.3275911, %v5702_v0  ;;  %v5730_v35 = vsub.f32 0.0, %v5702_v0 }
0x1819   :  { %v5707_v14 = vadd.f32 1.0, %v5705_v3  ;;  %v5733_v51 = vmul.f32 %v5731_v13, %v5703_v37 }
0x181a   :  { %v5706_v15 = vadd.f32 1.0, %v5704_v53  ;;  %v5732_v16 = vmul.f32 %v5730_v35, %v5702_v0  ;;  %v6150_v35 = vld [vmem:[%s9481_s15] ss:$0 sm:$0xff] }
0x181b   :  { %7858 = vrcp.f32 %v5707_v14  ;;  %v5736_v20 = vmul.f32 1.442695, %v5733_v51 }
0x181c   :  { %7860 = vrcp.f32 %v5706_v15  ;;  %v5734_v32 = vmul.f32 1.442695, %v5732_v16 }
0x181d   :  { %7862 = vpow2.f32 %v5736_v20 }
0x181e   :  { %7864 = vpow2.f32 %v5734_v32 }
0x1825   :  { %v7859_v60 = vpop.eup %7858 }
0x1826   :  { %v7861_v36 = vpop.eup %7860  ;;  %v5713_v23 = vmul.f32 1.0614054, %v7859_v60 }
0x1827   :  { %v5712_v18 = vmul.f32 1.0614054, %v7861_v36  ;;  %v7863_v30 = vpop.eup %7862 }
0x1828   :  { %v5715_v28 = vadd.f32 -1.4531521, %v5713_v23  ;;  %v7865_v47 = vpop.eup %7864  ;;  %v6151_v23 = vld [vmem:[%s9482_s16] ss:$0 sm:$0xff] }
0x1829   :  { %v5714_v10 = vadd.f32 -1.4531521, %v5712_v18 }
0x182a   :  { %v5717_v17 = vmul.f32 %v7859_v60, %v5715_v28 }
0x182b   :  { %v5716_v59 = vmul.f32 %v7861_v36, %v5714_v10 }
0x182c   :  { %v5719_v44 = vadd.f32 1.4214138, %v5717_v17 }
0x182d   :  { %v5718_v7 = vadd.f32 1.4214138, %v5716_v59 }
0x182e   :  { %v5721_v24 = vmul.f32 %v7859_v60, %v5719_v44 }
0x182f   :  { %v5720_v8 = vmul.f32 %v7861_v36, %v5718_v7 }
0x1830   :  { %v5723_v56 = vadd.f32 -0.28449672, %v5721_v24 }
0x1831   :  { %v5722_v31 = vadd.f32 -0.28449672, %v5720_v8 }
0x1832   :  { %v5725_v25 = vmul.f32 %v7859_v60, %v5723_v56 }
0x1833   :  { %v5724_v21 = vmul.f32 %v7861_v36, %v5722_v31 }
0x1834   :  { %v5727_v54 = vadd.f32 0.2548296, %v5725_v25 }
0x1835   :  { %v5726_v41 = vadd.f32 0.2548296, %v5724_v21 }
0x1836   :  { %v5729_v50 = vmul.f32 %v7859_v60, %v5727_v54 }
0x1837   :  { %v5728_v61 = vmul.f32 %v7861_v36, %v5726_v41 }
0x1838   :  { %v5739_v52 = vmul.f32 %v7863_v30, %v5729_v50 }
0x1839   :  { %v5738_v33 = vmul.f32 %v7865_v47, %v5728_v61 }
0x183a   :  { %v5741_v49 = vsub.f32 1.0, %v5739_v52 }
0x183b   :  { %v5740_v1 = vsub.f32 1.0, %v5738_v33 }
0x183c   :  { %v5743_v2 = vmul.f32 %v5741_v49, %v5701_v27 }
0x183d   :  { %v5742_v26 = vmul.f32 %v5740_v1, %v5700_v9 }
0x183e   :  { %v5745_v45 = vadd.f32 1.0, %v5743_v2 }
0x183f   :  { %v5744_v11 = vadd.f32 1.0, %v5742_v26 }
0x1840   :  { %v5747_v34 = vmul.f32 %v5745_v45, %v5695_v22 }
0x1841   :  { %v5746_v40 = vmul.f32 %v5744_v11, %v5694_v12 }
0x1843   :  { %7185 = vmatprep.mubr.f32.mxu0 %v5746_v40 }
0x1844   :  { %7186 = vmatmul.mubr.f32.vlgmr.msra.gmra.mrb[56].mxu0 %v5747_v34 }
0x1917   :  { %v7187_v42 = vpop.f32.mrb[56].mxu0 }
0x1918   :  { %v5837_v39 = vadd.f32 %v7187_v42, %v9360_v29  ;;  %v5831_v48 = vpop.f32.mrb[57].mxu0 }
0x1919   :  { %v5832_v4 = vadd.f32 %v5831_v48, %v9363_v5 }
0x191a   :  { %v5845_v19 = vsel %vm189_vm0, %v5837_v39, 0.0 }
0x191b   :  { %5846 = vadd.xlane.f32.xlu1 %v5845_v19  ;;  %v5842_v6 = vsel %vm189_vm0, %v5832_v4, 0.0 }
0x191c   :  { %5843 = vadd.xlane.f32.xlu0 %v5842_v6 }
0x19a8   :  { %v5847_v43 = vpop.xlane.xlu1 %5846 }
0x19a9   :  { %v5849_v46 = vmul.f32 0.03125, %v5847_v43  ;;  %v5844_v62 = vpop.xlane.xlu0 %5843 }
0x19aa   :  { %v5848_v63 = vmul.f32 0.03125, %v5844_v62 }
0x19ab   :  { %v5851_v57 = vsub.f32 %v5837_v39, %v5849_v46 }
0x19ac   :  { %v5850_v55 = vsub.f32 %v5832_v4, %v5848_v63 }
0x19ad   :  { %v5853_v38 = vmul.f32 %v5851_v57, %v5851_v57 }
0x19ae   :  { %v5852_v58 = vmul.f32 %v5850_v55, %v5850_v55 }
0x19af   :  { %v5857_v37 = vsel %vm189_vm0, %v5853_v38, 0.0 }
0x19b0   :  { %5858 = vadd.xlane.f32.xlu1 %v5857_v37  ;;  %v5854_v29 = vsel %vm189_vm0, %v5852_v58, 0.0 }
0x19b1   :  { %5855 = vadd.xlane.f32.xlu0 %v5854_v29 }
0x1a3d   :  { %v5859_v5 = vpop.xlane.xlu1 %5858 }
0x1a3e   :  { %v5861_v0 = vmul.f32 0.03125, %v5859_v5  ;;  %v5856_v3 = vpop.xlane.xlu0 %5855 }
0x1a3f   :  { %v5860_v53 = vmul.f32 0.03125, %v5856_v3 }
0x1a40   :  { %v5863_v14 = vadd.f32 1e-05, %v5861_v0 }
0x1a41   :  { %v5862_v15 = vadd.f32 1e-05, %v5860_v53 }
0x1a42   :  { %7866 = vrsqrt.f32 %v5863_v14 }
0x1a43   :  { %7868 = vrsqrt.f32 %v5862_v15 }
0x1a4c   :  { %v7867_v13 = vpop.eup %7866 }
0x1a4d   :  { %v7869_v60 = vpop.eup %7868  ;;  %v5867_v51 = vmul.f32 %v7867_v13, %v5851_v57 }
0x1a4e   :  { %v5866_v36 = vmul.f32 %v7869_v60, %v5850_v55 }
0x1a4f   :  { %v5875_v16 = vmul.f32 %v6150_v35, %v5867_v51 }
0x1a50   :  { %v5874_v18 = vmul.f32 %v6150_v35, %v5866_v36 }
0x1a51   :  { %v5883_v28 = vadd.f32 %v6151_v23, %v5875_v16 }
0x1a52   :  { %v5882_v20 = vadd.f32 %v6151_v23, %v5874_v18 }
0x1a53   :  { %5885 = vst.msk [vmem:[#allocation16 + $0x8] sm:$0xff] %vm189_vm0, %v5883_v28 }
0x1a54   :  { %5884 = vst.msk [vmem:[#allocation16] sm:$0xff] %vm189_vm0, %v5882_v20 }
0x1a55   :  { %8063 = shalt.err (!%p8060_p12)
}
0x1a56   :  { %s8064_s28 = scalar_lea.hbm %s9483_s17, 256 }
0x1a57   :  { %p8065_p13 = scmp.ne.s32.totalorder %s9483_s17, %s8064_s28  ;;  %p8068_p0 = scmp.lt.u32.totalorder %s8064_s28, %s9483_s17 }
0x1a59   :  { %p8070_p1 = pnand %p8068_p0, %p8065_p13 }
0x1a5b   :  { %8073 = shalt.err (!%p8070_p1)
}
0x1a5c   :  { %5897 = dma.vmem_to_hbm [thread:$0]  %s5892_s22, 256, %s9483_s17, [#allocation4], %s9492_s20, %s9492_s20, %s9491_s27  }
0x1a5d   :  { %8084 = dma.done.wait [#allocation4], 256  }
0x1a5e   :  { %8085 = vsyncadd [#allocation4], 4294967040 }
0x1a5f   :  { %5901 = vsyncpa [#allocation3], 1 }
0x1a60   :  { %5902 = vsyncpa [#allocation6], 1 }
0x1a61   :  { %5903 = vsyncpa [#allocation9], 1 }
0x1a62   :  { %5904 = vsyncpa [#allocation12], 1 }
0x1a63   :  { %5905 = vsyncpa [#allocation15], 1 }
0x1a64   :  { %5906 = vsyncpa [#allocation4], 1 }

</bundles_post_ra>
